<compile_context>
chip_gen: v5e
topology: v5e:2x2
jax: 0.10.0
libtpu: 0.0.40
codegen_flags: <defaults>
</compile_context>

<pallas_src>
import functools

import jax
import jax.numpy as jnp
from jax.experimental import pallas as pl
from jax.experimental.pallas import tpu as pltpu

NEG_SLOPE = 0.01                 # PyTorch nn.LeakyReLU default
LANE = 128                       # lane width; classifier head padded to this
ROW_ALIGN = 256                  # node padding; guarantees >=2 row tiles of 128
TM_PREF = 512                    # preferred node-row tile
TK_PREF = 1024                   # preferred A-column / reduction tile
ACT_DTYPE = jnp.bfloat16         # streaming dtype for A, activations, weights
X_RESIDENT_BUDGET = 4 * 1024 * 1024  # keep X1/Y2 fully VMEM-resident under this


def _leaky(x):
    return jnp.where(x > 0, x, NEG_SLOPE * x)


def _mm(a, b):
    return jnp.dot(a, b, preferred_element_type=jnp.float32)


def _round_up(x, m):
    return (x + m - 1) // m * m


def _pick_tile(n, preferred, require_two_tiles=False):
    """Largest multiple of 128 dividing n, <= preferred (<= n//2 if asked)."""
    cap = min(preferred, n // 2 if require_two_tiles else n)
    cap = max(cap, 128)
    best, d = 128, 128
    while d <= cap:
        if n % d == 0:
            best = d
        d += 128
    return best


def _full_spec(x):
    """Whole array resident in VMEM; constant index map -> fetched once."""
    return pl.BlockSpec(x.shape, lambda *_: (0,) * x.ndim)


# ---------------------------------------------------------------------------
# Phase 1: per-node feature encoder + GCNConv1 node transform (row-parallel).
# ---------------------------------------------------------------------------
def encoder_kernel(des_ref, tweet_ref, num_ref, cat_ref,
                   wd_ref, bd_ref, wt_ref, bt_ref, wn_ref, bn_ref,
                   wc_ref, bc_ref, wind_ref, wint_ref, winn_ref, winc_ref,
                   bin_ref, wg1_ref, x1_ref):
    d = _leaky(_mm(des_ref[...], wd_ref[...]) + bd_ref[...]).astype(ACT_DTYPE)
    t = _leaky(_mm(tweet_ref[...], wt_ref[...]) + bt_ref[...]).astype(ACT_DTYPE)
    n = _leaky(_mm(num_ref[...], wn_ref[...]) + bn_ref[...]).astype(ACT_DTYPE)
    c = _leaky(_mm(cat_ref[...], wc_ref[...]) + bc_ref[...]).astype(ACT_DTYPE)

    # linear_relu_input on the (virtual) concat: Win was split into four
    # (emb/4, emb) slices in the wrapper, so the concat never materializes.
    h = (_mm(d, wind_ref[...]) + _mm(t, wint_ref[...])
         + _mm(n, winn_ref[...]) + _mm(c, winc_ref[...]) + bin_ref[...])
    x = _leaky(h).astype(ACT_DTYPE)

    # GCNConv1 node transform X @ Wg1 (normalization lives inside A_hat).
    x1_ref[...] = _mm(x, wg1_ref[...]).astype(x1_ref.dtype)


# ---------------------------------------------------------------------------
# Shared aggregation step for phases 2/3: acc += A_hat[i_tile, k_tile] @ X[k].
# ---------------------------------------------------------------------------
def _aggregate_step(a_ref, x_ref, acc_ref, tk, x_resident):
    k = pl.program_id(1)

    @pl.when(k == 0)
    def _():
        acc_ref[...] = jnp.zeros_like(acc_ref)

    if x_resident:
        start = pl.multiple_of(k * tk, tk)
        x_blk = x_ref[pl.ds(start, tk), :]   # slice the VMEM-resident slab
    else:
        x_blk = x_ref[...]
    acc_ref[...] += _mm(a_ref[...], x_blk)   # bf16 operands, f32 accumulation
    return k


# ---------------------------------------------------------------------------
# Phase 2: GCNConv1 aggregation fused with the GCNConv2 node transform.
# ---------------------------------------------------------------------------
def gcn1_aggregate_kernel(a_ref, x1_ref, bg1_ref, wg2_ref, y2_ref, acc_ref,
                          *, tk, x_resident):
    k = _aggregate_step(a_ref, x1_ref, acc_ref, tk, x_resident)

    @pl.when(k == pl.num_programs(1) - 1)
    def _():
        h1 = acc_ref[...] + bg1_ref[...]                   # GCNConv1 output
        # F.dropout(p=0.3, training=False) -> identity (inference semantics).
        # TODO(synk): training-mode dropout (pltpu.prng_* Bernoulli mask) not emitted.
        y2_ref[...] = _mm(h1.astype(wg2_ref.dtype), wg2_ref[...]).astype(y2_ref.dtype)


# ---------------------------------------------------------------------------
# Phase 3: GCNConv2 aggregation fused with the output head (lane-dense store).
# ---------------------------------------------------------------------------
def gcn2_head_kernel(a_ref, y2_ref, bg2_ref, wo1_ref, bo1_ref, wo2_ref, bo2_ref,
                     out_ref, acc_ref, *, tk, x_resident):
    k = _aggregate_step(a_ref, y2_ref, acc_ref, tk, x_resident)

    @pl.when(k == pl.num_programs(1) - 1)
    def _():
        h2 = acc_ref[...] + bg2_ref[...]                               # GCNConv2 output
        z = _leaky(_mm(h2.astype(wo1_ref.dtype), wo1_ref[...]) + bo1_ref[...])
        # linear_output2, zero-padded to 128 lanes (sliced to 2 in the wrapper).
        out_ref[...] = _mm(z.astype(wo2_ref.dtype), wo2_ref[...]) + bo2_ref[...]


# ---------------------------------------------------------------------------
# Plain-JAX glue.
# ---------------------------------------------------------------------------
def build_normalized_adjacency(edge_index, num_nodes, n_pad):
    """A_hat = D^-1/2 (A + I) D^-1/2 as one bf16 message matrix M[dst, src].

    D^-1/2 is folded into A here (rows = dst side, cols = src side), matching
    PyG gcn_norm; the kernels stream A_hat directly with no per-step dinv."""
    src = edge_index[0]
    dst = edge_index[1]
    loop = jnp.arange(num_nodes, dtype=edge_index.dtype)
    src = jnp.concatenate([src, loop])
    dst = jnp.concatenate([dst, loop])
    a = jnp.zeros((n_pad, n_pad), jnp.float32).at[dst, src].add(1.0)
    deg = a.sum(axis=1)                                    # in-degree incl. self loop
    dinv = jnp.where(deg > 0, jax.lax.rsqrt(deg), 0.0)     # padded / isolated rows -> 0
    a_hat = a * dinv[:, None] * dinv[None, :]
    return a_hat.astype(ACT_DTYPE)


@functools.partial(jax.jit, static_argnames=("num_nodes",))
def botgcn_forward(des, tweet, num_prop, cat_prop, edge_index, edge_type,
                   params, num_nodes):
    del edge_type  # unused in the reference forward
    emb = params["win"].shape[0]
    q = emb // 4
    assert emb % 4 == 0 and q % 8 == 0, "embedding_dimension must be a multiple of 32"

    # Adaptive padding / tiling (>=2 row tiles so v7x megacore shards rows).
    n_pad = _round_up(num_nodes, ROW_ALIGN)
    tm = _pick_tile(n_pad, TM_PREF, require_two_tiles=True)
    tk = _pick_tile(n_pad, TK_PREF)
    n_row_tiles = n_pad // tm
    n_k_tiles = n_pad // tk
    x_resident = (n_pad * emb * 2) <= X_RESIDENT_BUDGET

    pad_n = n_pad - num_nodes

    def prep_rows(x):
        return jnp.pad(x, ((0, pad_n), (0, 0))).astype(ACT_DTYPE)

    # Pad the tiny feature dims (6 / 11) to multiples of 16; zero rows in the
    # corresponding weights keep the math identical.
    nump_pad = _round_up(num_prop.shape[1], 16)
    catp_pad = _round_up(cat_prop.shape[1], 16)
    des_p = prep_rows(des)
    tweet_p = prep_rows(tweet)
    num_p = prep_rows(jnp.pad(num_prop, ((0, 0), (0, nump_pad - num_prop.shape[1]))))
    cat_p = prep_rows(jnp.pad(cat_prop, ((0, 0), (0, catp_pad - cat_prop.shape[1]))))

    def bf16_w(name, row_pad=0):
        x = params[name]
        if row_pad:
            x = jnp.pad(x, ((0, row_pad - x.shape[0]), (0, 0)))
        return x.astype(ACT_DTYPE)

    wd = bf16_w("wd")
    wt = bf16_w("wt")
    wn = bf16_w("wn", nump_pad)
    wc = bf16_w("wc", catp_pad)
    wg1 = bf16_w("wg1")
    wg2 = bf16_w("wg2")
    wo1 = bf16_w("wo1")
    win = params["win"].astype(ACT_DTYPE)
    win_d, win_t, win_n, win_c = win[0:q], win[q:2 * q], win[2 * q:3 * q], win[3 * q:4 * q]

    # Lane-dense output head: pad the 2-wide classifier to 128 columns.
    wo2 = jnp.pad(params["wo2"], ((0, 0), (0, LANE - params["wo2"].shape[1]))).astype(ACT_DTYPE)
    bo2 = jnp.pad(params["bo2"], ((0, 0), (0, LANE - params["bo2"].shape[1])))

    a_hat = build_normalized_adjacency(edge_index, num_nodes, n_pad)

    # ---- Phase 1: encoder + GCN1 node transform (row-parallel) ------------
    x1 = pl.pallas_call(
        encoder_kernel,
        out_shape=jax.ShapeDtypeStruct((n_pad, emb), ACT_DTYPE),
        grid=(n_row_tiles,),
        in_specs=[
            pl.BlockSpec((tm, des_p.shape[1]), lambda i: (i, 0)),
            pl.BlockSpec((tm, tweet_p.shape[1]), lambda i: (i, 0)),
            pl.BlockSpec((tm, nump_pad), lambda i: (i, 0)),
            pl.BlockSpec((tm, catp_pad), lambda i: (i, 0)),
        ] + [_full_spec(a) for a in (
            wd, params["bd"], wt, params["bt"], wn, params["bn"],
            wc, params["bc"], win_d, win_t, win_n, win_c,
            params["bin"], wg1)],
        out_specs=pl.BlockSpec((tm, emb), lambda i: (i, 0)),
        compiler_params=pltpu.CompilerParams(dimension_semantics=("parallel",)),
    )(des_p, tweet_p, num_p, cat_p,
      wd, params["bd"], wt, params["bt"], wn, params["bn"],
      wc, params["bc"], win_d, win_t, win_n, win_c,
      params["bin"], wg1)

    gcn_semantics = ("parallel", "arbitrary")

    def x_spec(x):
        if x_resident:
            return _full_spec(x)                       # fetched once, stays in VMEM
        return pl.BlockSpec((tk, emb), lambda i, k: (k, 0))

    # ---- Phase 2: GCN1 aggregation + GCN2 node transform ------------------
    y2 = pl.pallas_call(
        functools.partial(gcn1_aggregate_kernel, tk=tk, x_resident=x_resident),
        out_shape=jax.ShapeDtypeStruct((n_pad, emb), ACT_DTYPE),
        grid=(n_row_tiles, n_k_tiles),
        in_specs=[
            pl.BlockSpec((tm, tk), lambda i, k: (i, k)),
            x_spec(x1),
            _full_spec(params["bg1"]), _full_spec(wg2),
        ],
        out_specs=pl.BlockSpec((tm, emb), lambda i, k: (i, 0)),
        scratch_shapes=[pltpu.VMEM((tm, emb), jnp.float32)],
        compiler_params=pltpu.CompilerParams(dimension_semantics=gcn_semantics),
    )(a_hat, x1, params["bg1"], wg2)

    # ---- Phase 3: GCN2 aggregation + output head ---------------------------
    out_pad = pl.pallas_call(
        functools.partial(gcn2_head_kernel, tk=tk, x_resident=x_resident),
        out_shape=jax.ShapeDtypeStruct((n_pad, LANE), jnp.float32),
        grid=(n_row_tiles, n_k_tiles),
        in_specs=[
            pl.BlockSpec((tm, tk), lambda i, k: (i, k)),
            x_spec(y2),
            _full_spec(params["bg2"]),
            _full_spec(wo1), _full_spec(params["bo1"]),
            _full_spec(wo2), _full_spec(bo2),
        ],
        out_specs=pl.BlockSpec((tm, LANE), lambda i, k: (i, 0)),
        scratch_shapes=[pltpu.VMEM((tm, emb), jnp.float32)],
        compiler_params=pltpu.CompilerParams(dimension_semantics=gcn_semantics),
    )(a_hat, y2, params["bg2"], wo1, params["bo1"], wo2, bo2)

    return out_pad[:num_nodes, :2]


def init_params(key, des_size, tweet_size, num_prop_size, cat_prop_size, emb):
    """Deterministic synthetic params. Weights are stored as (in, out)."""
    q = emb // 4
    shapes = {
        "wd": (des_size, q), "bd": (1, q),
        "wt": (tweet_size, q), "bt": (1, q),
        "wn": (num_prop_size, q), "bn": (1, q),
        "wc": (cat_prop_size, q), "bc": (1, q),
        "win": (emb, emb), "bin": (1, emb),
        "wg1": (emb, emb), "bg1": (1, emb),
        "wg2": (emb, emb), "bg2": (1, emb),
        "wo1": (emb, emb), "bo1": (1, emb),
        "wo2": (emb, 2), "bo2": (1, 2),
    }
    params = {}
    keys = jax.random.split(key, len(shapes))
    for k, (name, shp) in zip(keys, sorted(shapes.items())):
        params[name] = 0.1 * jax.random.normal(k, shp, jnp.float32)
    return params


if __name__ == "__main__":
    # Small shapes consistent with the module (scaled-down BotGCN).
    N = 250           # number of graph nodes (padded to 256 inside the wrapper)
    E = 600           # number of directed edges
    DES = 128         # des_size
    TWEET = 128       # tweet_size
    NUMP = 6          # num_prop_size
    CATP = 11         # cat_prop_size
    EMB = 32          # embedding_dimension (multiple of 32)

    root = jax.random.PRNGKey(0)
    k_des, k_tw, k_np, k_cp, k_src, k_off, k_par = jax.random.split(root, 7)

    des = jax.random.normal(k_des, (N, DES), jnp.float32)
    tweet = jax.random.normal(k_tw, (N, TWEET), jnp.float32)
    num_prop = jax.random.normal(k_np, (N, NUMP), jnp.float32)
    cat_prop = jax.random.normal(k_cp, (N, CATP), jnp.float32)

    # random edges with src != dst (self loops are added by gcn_norm)
    src = jax.random.randint(k_src, (E,), 0, N, jnp.int32)
    off = jax.random.randint(k_off, (E,), 1, N, jnp.int32)
    dst = (src + off) % N
    edge_index = jnp.stack([src, dst], axis=0)
    edge_type = jnp.zeros((E,), jnp.int32)  # unused by the forward pass

    params = init_params(k_par, DES, TWEET, NUMP, CATP, EMB)

    out = botgcn_forward(des, tweet, num_prop, cat_prop, edge_index, edge_type,
                         params, num_nodes=N)
    out = jax.block_until_ready(out)
    assert out.shape == (N, 2) and out.dtype == jnp.float32
    print("KERNEL_OK")
</pallas_src>

<mosaic_0001>
module attributes {stable_mosaic.version = 11 : i64} {
  func.func @encoder_kernel(%arg0: i32, %arg1: memref<128x128xbf16, #tpu.memory_space<vmem>>, %arg2: memref<128x128xbf16, #tpu.memory_space<vmem>>, %arg3: memref<128x16xbf16, #tpu.memory_space<vmem>>, %arg4: memref<128x16xbf16, #tpu.memory_space<vmem>>, %arg5: memref<128x8xbf16, #tpu.memory_space<vmem>>, %arg6: memref<1x8xf32, #tpu.memory_space<vmem>>, %arg7: memref<128x8xbf16, #tpu.memory_space<vmem>>, %arg8: memref<1x8xf32, #tpu.memory_space<vmem>>, %arg9: memref<16x8xbf16, #tpu.memory_space<vmem>>, %arg10: memref<1x8xf32, #tpu.memory_space<vmem>>, %arg11: memref<16x8xbf16, #tpu.memory_space<vmem>>, %arg12: memref<1x8xf32, #tpu.memory_space<vmem>>, %arg13: memref<8x32xbf16, #tpu.memory_space<vmem>>, %arg14: memref<8x32xbf16, #tpu.memory_space<vmem>>, %arg15: memref<8x32xbf16, #tpu.memory_space<vmem>>, %arg16: memref<8x32xbf16, #tpu.memory_space<vmem>>, %arg17: memref<1x32xf32, #tpu.memory_space<vmem>>, %arg18: memref<32x32xbf16, #tpu.memory_space<vmem>>, %arg19: memref<128x32xbf16, #tpu.memory_space<vmem>>) attributes {dimension_semantics = [#tpu.dimension_semantics<parallel>], iteration_bounds = array<i64: 2>, scalar_prefetch = 0 : i64, scratch_operands = 0 : i64, tpu.core_type = #tpu.core_type<tc>, window_params = [{transform_indices = @transform_0, window_bounds = array<i64: 128, 128>}, {transform_indices = @transform_1, window_bounds = array<i64: 128, 128>}, {transform_indices = @transform_2, window_bounds = array<i64: 128, 16>}, {transform_indices = @transform_3, window_bounds = array<i64: 128, 16>}, {pipeline_mode = #tpu.pipeline_mode<synchronous>, transform_indices = @transform_4, window_bounds = array<i64: 128, 8>}, {pipeline_mode = #tpu.pipeline_mode<synchronous>, transform_indices = @transform_5, window_bounds = array<i64: 1, 8>}, {pipeline_mode = #tpu.pipeline_mode<synchronous>, transform_indices = @transform_6, window_bounds = array<i64: 128, 8>}, {pipeline_mode = #tpu.pipeline_mode<synchronous>, transform_indices = @transform_7, window_bounds = array<i64: 1, 8>}, {pipeline_mode = #tpu.pipeline_mode<synchronous>, transform_indices = @transform_8, window_bounds = array<i64: 16, 8>}, {pipeline_mode = #tpu.pipeline_mode<synchronous>, transform_indices = @transform_9, window_bounds = array<i64: 1, 8>}, {pipeline_mode = #tpu.pipeline_mode<synchronous>, transform_indices = @transform_10, window_bounds = array<i64: 16, 8>}, {pipeline_mode = #tpu.pipeline_mode<synchronous>, transform_indices = @transform_11, window_bounds = array<i64: 1, 8>}, {pipeline_mode = #tpu.pipeline_mode<synchronous>, transform_indices = @transform_12, window_bounds = array<i64: 8, 32>}, {pipeline_mode = #tpu.pipeline_mode<synchronous>, transform_indices = @transform_13, window_bounds = array<i64: 8, 32>}, {pipeline_mode = #tpu.pipeline_mode<synchronous>, transform_indices = @transform_14, window_bounds = array<i64: 8, 32>}, {pipeline_mode = #tpu.pipeline_mode<synchronous>, transform_indices = @transform_15, window_bounds = array<i64: 8, 32>}, {pipeline_mode = #tpu.pipeline_mode<synchronous>, transform_indices = @transform_16, window_bounds = array<i64: 1, 32>}, {pipeline_mode = #tpu.pipeline_mode<synchronous>, transform_indices = @transform_17, window_bounds = array<i64: 32, 32>}, {transform_indices = @transform_18, window_bounds = array<i64: 128, 32>}]} {
    %c0 = arith.constant 0 : index
    %c0_0 = arith.constant 0 : index
    %0 = vector.load %arg1[%c0, %c0_0] : memref<128x128xbf16, #tpu.memory_space<vmem>>, vector<128x128xbf16>
    %c0_1 = arith.constant 0 : index
    %c0_2 = arith.constant 0 : index
    %1 = vector.load %arg5[%c0_1, %c0_2] : memref<128x8xbf16, #tpu.memory_space<vmem>>, vector<128x8xbf16>
    %cst = arith.constant dense<0.000000e+00> : vector<128x8xf32>
    %2 = tpu.matmul %0, %1, %cst {dimension_numbers = #tpu.dot_dimension_numbers<[1], [0], [0], [1], [0, 0, 1, 1], [], []>} : vector<128x128xbf16>, vector<128x8xbf16>, vector<128x8xf32> -> vector<128x8xf32>
    %c0_3 = arith.constant 0 : index
    %c0_4 = arith.constant 0 : index
    %3 = vector.load %arg6[%c0_3, %c0_4] : memref<1x8xf32, #tpu.memory_space<vmem>>, vector<1x8xf32>
    %4 = vector.broadcast %3 : vector<1x8xf32> to vector<128x8xf32>
    %5 = arith.addf %2, %4 : vector<128x8xf32>
    %cst_5 = arith.constant 0.000000e+00 : f32
    %6 = vector.broadcast %cst_5 : f32 to vector<128x8xf32>
    %7 = arith.cmpf ogt, %5, %6 : vector<128x8xf32>
    %cst_6 = arith.constant 0.00999999977 : f32
    %8 = vector.broadcast %cst_6 : f32 to vector<128x8xf32>
    %9 = arith.mulf %8, %5 : vector<128x8xf32>
    %10 = arith.select %7, %5, %9 : vector<128x8xi1>, vector<128x8xf32>
    %11 = arith.truncf %10 : vector<128x8xf32> to vector<128x8xbf16>
    %c0_7 = arith.constant 0 : index
    %c0_8 = arith.constant 0 : index
    %12 = vector.load %arg2[%c0_7, %c0_8] : memref<128x128xbf16, #tpu.memory_space<vmem>>, vector<128x128xbf16>
    %c0_9 = arith.constant 0 : index
    %c0_10 = arith.constant 0 : index
    %13 = vector.load %arg7[%c0_9, %c0_10] : memref<128x8xbf16, #tpu.memory_space<vmem>>, vector<128x8xbf16>
    %cst_11 = arith.constant dense<0.000000e+00> : vector<128x8xf32>
    %14 = tpu.matmul %12, %13, %cst_11 {dimension_numbers = #tpu.dot_dimension_numbers<[1], [0], [0], [1], [0, 0, 1, 1], [], []>} : vector<128x128xbf16>, vector<128x8xbf16>, vector<128x8xf32> -> vector<128x8xf32>
    %c0_12 = arith.constant 0 : index
    %c0_13 = arith.constant 0 : index
    %15 = vector.load %arg8[%c0_12, %c0_13] : memref<1x8xf32, #tpu.memory_space<vmem>>, vector<1x8xf32>
    %16 = vector.broadcast %15 : vector<1x8xf32> to vector<128x8xf32>
    %17 = arith.addf %14, %16 : vector<128x8xf32>
    %cst_14 = arith.constant 0.000000e+00 : f32
    %18 = vector.broadcast %cst_14 : f32 to vector<128x8xf32>
    %19 = arith.cmpf ogt, %17, %18 : vector<128x8xf32>
    %cst_15 = arith.constant 0.00999999977 : f32
    %20 = vector.broadcast %cst_15 : f32 to vector<128x8xf32>
    %21 = arith.mulf %20, %17 : vector<128x8xf32>
    %22 = arith.select %19, %17, %21 : vector<128x8xi1>, vector<128x8xf32>
    %23 = arith.truncf %22 : vector<128x8xf32> to vector<128x8xbf16>
    %c0_16 = arith.constant 0 : index
    %c0_17 = arith.constant 0 : index
    %24 = vector.load %arg3[%c0_16, %c0_17] : memref<128x16xbf16, #tpu.memory_space<vmem>>, vector<128x16xbf16>
    %c0_18 = arith.constant 0 : index
    %c0_19 = arith.constant 0 : index
    %25 = vector.load %arg9[%c0_18, %c0_19] : memref<16x8xbf16, #tpu.memory_space<vmem>>, vector<16x8xbf16>
    %cst_20 = arith.constant dense<0.000000e+00> : vector<128x8xf32>
    %26 = tpu.matmul %24, %25, %cst_20 {dimension_numbers = #tpu.dot_dimension_numbers<[1], [0], [0], [1], [0, 0, 1, 1], [], []>} : vector<128x16xbf16>, vector<16x8xbf16>, vector<128x8xf32> -> vector<128x8xf32>
    %c0_21 = arith.constant 0 : index
    %c0_22 = arith.constant 0 : index
    %27 = vector.load %arg10[%c0_21, %c0_22] : memref<1x8xf32, #tpu.memory_space<vmem>>, vector<1x8xf32>
    %28 = vector.broadcast %27 : vector<1x8xf32> to vector<128x8xf32>
    %29 = arith.addf %26, %28 : vector<128x8xf32>
    %cst_23 = arith.constant 0.000000e+00 : f32
    %30 = vector.broadcast %cst_23 : f32 to vector<128x8xf32>
    %31 = arith.cmpf ogt, %29, %30 : vector<128x8xf32>
    %cst_24 = arith.constant 0.00999999977 : f32
    %32 = vector.broadcast %cst_24 : f32 to vector<128x8xf32>
    %33 = arith.mulf %32, %29 : vector<128x8xf32>
    %34 = arith.select %31, %29, %33 : vector<128x8xi1>, vector<128x8xf32>
    %35 = arith.truncf %34 : vector<128x8xf32> to vector<128x8xbf16>
    %c0_25 = arith.constant 0 : index
    %c0_26 = arith.constant 0 : index
    %36 = vector.load %arg4[%c0_25, %c0_26] : memref<128x16xbf16, #tpu.memory_space<vmem>>, vector<128x16xbf16>
    %c0_27 = arith.constant 0 : index
    %c0_28 = arith.constant 0 : index
    %37 = vector.load %arg11[%c0_27, %c0_28] : memref<16x8xbf16, #tpu.memory_space<vmem>>, vector<16x8xbf16>
    %cst_29 = arith.constant dense<0.000000e+00> : vector<128x8xf32>
    %38 = tpu.matmul %36, %37, %cst_29 {dimension_numbers = #tpu.dot_dimension_numbers<[1], [0], [0], [1], [0, 0, 1, 1], [], []>} : vector<128x16xbf16>, vector<16x8xbf16>, vector<128x8xf32> -> vector<128x8xf32>
    %c0_30 = arith.constant 0 : index
    %c0_31 = arith.constant 0 : index
    %39 = vector.load %arg12[%c0_30, %c0_31] : memref<1x8xf32, #tpu.memory_space<vmem>>, vector<1x8xf32>
    %40 = vector.broadcast %39 : vector<1x8xf32> to vector<128x8xf32>
    %41 = arith.addf %38, %40 : vector<128x8xf32>
    %cst_32 = arith.constant 0.000000e+00 : f32
    %42 = vector.broadcast %cst_32 : f32 to vector<128x8xf32>
    %43 = arith.cmpf ogt, %41, %42 : vector<128x8xf32>
    %cst_33 = arith.constant 0.00999999977 : f32
    %44 = vector.broadcast %cst_33 : f32 to vector<128x8xf32>
    %45 = arith.mulf %44, %41 : vector<128x8xf32>
    %46 = arith.select %43, %41, %45 : vector<128x8xi1>, vector<128x8xf32>
    %47 = arith.truncf %46 : vector<128x8xf32> to vector<128x8xbf16>
    %c0_34 = arith.constant 0 : index
    %c0_35 = arith.constant 0 : index
    %48 = vector.load %arg13[%c0_34, %c0_35] : memref<8x32xbf16, #tpu.memory_space<vmem>>, vector<8x32xbf16>
    %cst_36 = arith.constant dense<0.000000e+00> : vector<128x32xf32>
    %49 = tpu.matmul %11, %48, %cst_36 {dimension_numbers = #tpu.dot_dimension_numbers<[1], [0], [0], [1], [0, 0, 1, 1], [], []>} : vector<128x8xbf16>, vector<8x32xbf16>, vector<128x32xf32> -> vector<128x32xf32>
    %c0_37 = arith.constant 0 : index
    %c0_38 = arith.constant 0 : index
    %50 = vector.load %arg14[%c0_37, %c0_38] : memref<8x32xbf16, #tpu.memory_space<vmem>>, vector<8x32xbf16>
    %cst_39 = arith.constant dense<0.000000e+00> : vector<128x32xf32>
    %51 = tpu.matmul %23, %50, %cst_39 {dimension_numbers = #tpu.dot_dimension_numbers<[1], [0], [0], [1], [0, 0, 1, 1], [], []>} : vector<128x8xbf16>, vector<8x32xbf16>, vector<128x32xf32> -> vector<128x32xf32>
    %52 = arith.addf %49, %51 : vector<128x32xf32>
    %c0_40 = arith.constant 0 : index
    %c0_41 = arith.constant 0 : index
    %53 = vector.load %arg15[%c0_40, %c0_41] : memref<8x32xbf16, #tpu.memory_space<vmem>>, vector<8x32xbf16>
    %cst_42 = arith.constant dense<0.000000e+00> : vector<128x32xf32>
    %54 = tpu.matmul %35, %53, %cst_42 {dimension_numbers = #tpu.dot_dimension_numbers<[1], [0], [0], [1], [0, 0, 1, 1], [], []>} : vector<128x8xbf16>, vector<8x32xbf16>, vector<128x32xf32> -> vector<128x32xf32>
    %55 = arith.addf %52, %54 : vector<128x32xf32>
    %c0_43 = arith.constant 0 : index
    %c0_44 = arith.constant 0 : index
    %56 = vector.load %arg16[%c0_43, %c0_44] : memref<8x32xbf16, #tpu.memory_space<vmem>>, vector<8x32xbf16>
    %cst_45 = arith.constant dense<0.000000e+00> : vector<128x32xf32>
    %57 = tpu.matmul %47, %56, %cst_45 {dimension_numbers = #tpu.dot_dimension_numbers<[1], [0], [0], [1], [0, 0, 1, 1], [], []>} : vector<128x8xbf16>, vector<8x32xbf16>, vector<128x32xf32> -> vector<128x32xf32>
    %58 = arith.addf %55, %57 : vector<128x32xf32>
    %c0_46 = arith.constant 0 : index
    %c0_47 = arith.constant 0 : index
    %59 = vector.load %arg17[%c0_46, %c0_47] : memref<1x32xf32, #tpu.memory_space<vmem>>, vector<1x32xf32>
    %60 = vector.broadcast %59 : vector<1x32xf32> to vector<128x32xf32>
    %61 = arith.addf %58, %60 : vector<128x32xf32>
    %cst_48 = arith.constant 0.000000e+00 : f32
    %62 = vector.broadcast %cst_48 : f32 to vector<128x32xf32>
    %63 = arith.cmpf ogt, %61, %62 : vector<128x32xf32>
    %cst_49 = arith.constant 0.00999999977 : f32
    %64 = vector.broadcast %cst_49 : f32 to vector<128x32xf32>
    %65 = arith.mulf %64, %61 : vector<128x32xf32>
    %66 = arith.select %63, %61, %65 : vector<128x32xi1>, vector<128x32xf32>
    %67 = arith.truncf %66 : vector<128x32xf32> to vector<128x32xbf16>
    %c0_50 = arith.constant 0 : index
    %c0_51 = arith.constant 0 : index
    %68 = vector.load %arg18[%c0_50, %c0_51] : memref<32x32xbf16, #tpu.memory_space<vmem>>, vector<32x32xbf16>
    %cst_52 = arith.constant dense<0.000000e+00> : vector<128x32xf32>
    %69 = tpu.matmul %67, %68, %cst_52 {dimension_numbers = #tpu.dot_dimension_numbers<[1], [0], [0], [1], [0, 0, 1, 1], [], []>} : vector<128x32xbf16>, vector<32x32xbf16>, vector<128x32xf32> -> vector<128x32xf32>
    %70 = arith.truncf %69 : vector<128x32xf32> to vector<128x32xbf16>
    %c0_53 = arith.constant 0 : index
    %c0_54 = arith.constant 0 : index
    %71 = vector.load %arg19[%c0_53, %c0_54] : memref<128x32xbf16, #tpu.memory_space<vmem>>, vector<128x32xbf16>
    tpu.vector_store %arg19[%c0_53, %c0_54], %70 {strides = array<i32>} : memref<128x32xbf16, #tpu.memory_space<vmem>>, vector<128x32xbf16>,
    return
  }
  func.func @transform_0(%arg0: i32) -> (i32, i32) {
    %c0_i32 = arith.constant 0 : i32
    %c0_i32_0 = arith.constant 0 : i32
    return %arg0, %c0_i32 : i32, i32
  }
  func.func @transform_1(%arg0: i32) -> (i32, i32) {
    %c0_i32 = arith.constant 0 : i32
    %c0_i32_0 = arith.constant 0 : i32
    return %arg0, %c0_i32 : i32, i32
  }
  func.func @transform_2(%arg0: i32) -> (i32, i32) {
    %c0_i32 = arith.constant 0 : i32
    %c0_i32_0 = arith.constant 0 : i32
    return %arg0, %c0_i32 : i32, i32
  }
  func.func @transform_3(%arg0: i32) -> (i32, i32) {
    %c0_i32 = arith.constant 0 : i32
    %c0_i32_0 = arith.constant 0 : i32
    return %arg0, %c0_i32 : i32, i32
  }
  func.func @transform_4(%arg0: i32) -> (i32, i32) {
    %c0_i32 = arith.constant 0 : i32
    %c0_i32_0 = arith.constant 0 : i32
    %c0_i32_1 = arith.constant 0 : i32
    return %c0_i32, %c0_i32_0 : i32, i32
  }
  func.func @transform_5(%arg0: i32) -> (i32, i32) {
    %c0_i32 = arith.constant 0 : i32
    %c0_i32_0 = arith.constant 0 : i32
    %c0_i32_1 = arith.constant 0 : i32
    return %c0_i32, %c0_i32_0 : i32, i32
  }
  func.func @transform_6(%arg0: i32) -> (i32, i32) {
    %c0_i32 = arith.constant 0 : i32
    %c0_i32_0 = arith.constant 0 : i32
    %c0_i32_1 = arith.constant 0 : i32
    return %c0_i32, %c0_i32_0 : i32, i32
  }
  func.func @transform_7(%arg0: i32) -> (i32, i32) {
    %c0_i32 = arith.constant 0 : i32
    %c0_i32_0 = arith.constant 0 : i32
    %c0_i32_1 = arith.constant 0 : i32
    return %c0_i32, %c0_i32_0 : i32, i32
  }
  func.func @transform_8(%arg0: i32) -> (i32, i32) {
    %c0_i32 = arith.constant 0 : i32
    %c0_i32_0 = arith.constant 0 : i32
    %c0_i32_1 = arith.constant 0 : i32
    return %c0_i32, %c0_i32_0 : i32, i32
  }
  func.func @transform_9(%arg0: i32) -> (i32, i32) {
    %c0_i32 = arith.constant 0 : i32
    %c0_i32_0 = arith.constant 0 : i32
    %c0_i32_1 = arith.constant 0 : i32
    return %c0_i32, %c0_i32_0 : i32, i32
  }
  func.func @transform_10(%arg0: i32) -> (i32, i32) {
    %c0_i32 = arith.constant 0 : i32
    %c0_i32_0 = arith.constant 0 : i32
    %c0_i32_1 = arith.constant 0 : i32
    return %c0_i32, %c0_i32_0 : i32, i32
  }
  func.func @transform_11(%arg0: i32) -> (i32, i32) {
    %c0_i32 = arith.constant 0 : i32
    %c0_i32_0 = arith.constant 0 : i32
    %c0_i32_1 = arith.constant 0 : i32
    return %c0_i32, %c0_i32_0 : i32, i32
  }
  func.func @transform_12(%arg0: i32) -> (i32, i32) {
    %c0_i32 = arith.constant 0 : i32
    %c0_i32_0 = arith.constant 0 : i32
    %c0_i32_1 = arith.constant 0 : i32
    return %c0_i32, %c0_i32_0 : i32, i32
  }
  func.func @transform_13(%arg0: i32) -> (i32, i32) {
    %c0_i32 = arith.constant 0 : i32
    %c0_i32_0 = arith.constant 0 : i32
    %c0_i32_1 = arith.constant 0 : i32
    return %c0_i32, %c0_i32_0 : i32, i32
  }
  func.func @transform_14(%arg0: i32) -> (i32, i32) {
    %c0_i32 = arith.constant 0 : i32
    %c0_i32_0 = arith.constant 0 : i32
    %c0_i32_1 = arith.constant 0 : i32
    return %c0_i32, %c0_i32_0 : i32, i32
  }
  func.func @transform_15(%arg0: i32) -> (i32, i32) {
    %c0_i32 = arith.constant 0 : i32
    %c0_i32_0 = arith.constant 0 : i32
    %c0_i32_1 = arith.constant 0 : i32
    return %c0_i32, %c0_i32_0 : i32, i32
  }
  func.func @transform_16(%arg0: i32) -> (i32, i32) {
    %c0_i32 = arith.constant 0 : i32
    %c0_i32_0 = arith.constant 0 : i32
    %c0_i32_1 = arith.constant 0 : i32
    return %c0_i32, %c0_i32_0 : i32, i32
  }
  func.func @transform_17(%arg0: i32) -> (i32, i32) {
    %c0_i32 = arith.constant 0 : i32
    %c0_i32_0 = arith.constant 0 : i32
    %c0_i32_1 = arith.constant 0 : i32
    return %c0_i32, %c0_i32_0 : i32, i32
  }
  func.func @transform_18(%arg0: i32) -> (i32, i32) {
    %c0_i32 = arith.constant 0 : i32
    %c0_i32_0 = arith.constant 0 : i32
    return %arg0, %c0_i32 : i32, i32
  }
}

module attributes {stable_mosaic.version = 11 : i64} {
  func.func @gcn1_aggregate_kernel(%arg0: i32, %arg1: i32, %arg2: memref<128x256xbf16, #tpu.memory_space<vmem>>, %arg3: memref<256x32xbf16, #tpu.memory_space<vmem>>, %arg4: memref<1x32xf32, #tpu.memory_space<vmem>>, %arg5: memref<32x32xbf16, #tpu.memory_space<vmem>>, %arg6: memref<128x32xbf16, #tpu.memory_space<vmem>>, %arg7: memref<128x32xf32, #tpu.memory_space<vmem>>) attributes {dimension_semantics = [#tpu.dimension_semantics<parallel>, #tpu.dimension_semantics<arbitrary>], iteration_bounds = array<i64: 2, 1>, scalar_prefetch = 0 : i64, scratch_operands = 1 : i64, tpu.core_type = #tpu.core_type<tc>, window_params = [{transform_indices = @transform_0, window_bounds = array<i64: 128, 256>}, {pipeline_mode = #tpu.pipeline_mode<synchronous>, transform_indices = @transform_1, window_bounds = array<i64: 256, 32>}, {pipeline_mode = #tpu.pipeline_mode<synchronous>, transform_indices = @transform_2, window_bounds = array<i64: 1, 32>}, {pipeline_mode = #tpu.pipeline_mode<synchronous>, transform_indices = @transform_3, window_bounds = array<i64: 32, 32>}, {transform_indices = @transform_4, window_bounds = array<i64: 128, 32>}]} {
    %c0_i32 = arith.constant 0 : i32
    %0 = arith.cmpi eq, %arg1, %c0_i32 : i32
    %1 = arith.extui %0 : i1 to i32
    %c0_i32_0 = arith.constant 0 : i32
    %2 = arith.cmpi ne, %1, %c0_i32_0 : i32
    scf.if %2 {
      %cst_9 = arith.constant 0.000000e+00 : f32
      %15 = vector.broadcast %cst_9 : f32 to vector<128x32xf32>
      %c0_10 = arith.constant 0 : index
      %c0_11 = arith.constant 0 : index
      %16 = vector.load %arg7[%c0_10, %c0_11] : memref<128x32xf32, #tpu.memory_space<vmem>>, vector<128x32xf32>
      tpu.vector_store %arg7[%c0_10, %c0_11], %15 {strides = array<i32>} : memref<128x32xf32, #tpu.memory_space<vmem>>, vector<128x32xf32>,
    } else {
    }
    %c256_i32 = arith.constant 256 : i32
    %3 = arith.muli %arg1, %c256_i32 : i32
    %4 = tpu.assume_multiple %3, 256 : i32
    %5 = arith.index_cast %4 : i32 to index
    %c0 = arith.constant 0 : index
    %6 = vector.load %arg3[%5, %c0] : memref<256x32xbf16, #tpu.memory_space<vmem>>, vector<256x32xbf16>
    %c0_1 = arith.constant 0 : index
    %c0_2 = arith.constant 0 : index
    %7 = vector.load %arg7[%c0_1, %c0_2] : memref<128x32xf32, #tpu.memory_space<vmem>>, vector<128x32xf32>
    %c0_3 = arith.constant 0 : index
    %c0_4 = arith.constant 0 : index
    %8 = vector.load %arg2[%c0_3, %c0_4] : memref<128x256xbf16, #tpu.memory_space<vmem>>, vector<128x256xbf16>
    %cst = arith.constant dense<0.000000e+00> : vector<128x32xf32>
    %9 = tpu.matmul %8, %6, %cst {dimension_numbers = #tpu.dot_dimension_numbers<[1], [0], [0], [1], [0, 0, 1, 1], [], []>} : vector<128x256xbf16>, vector<256x32xbf16>, vector<128x32xf32> -> vector<128x32xf32>
    %10 = arith.addf %7, %9 : vector<128x32xf32>
    %c0_5 = arith.constant 0 : index
    %c0_6 = arith.constant 0 : index
    %11 = vector.load %arg7[%c0_5, %c0_6] : memref<128x32xf32, #tpu.memory_space<vmem>>, vector<128x32xf32>
    tpu.vector_store %arg7[%c0_5, %c0_6], %10 {strides = array<i32>} : memref<128x32xf32, #tpu.memory_space<vmem>>, vector<128x32xf32>,
    %c0_i32_7 = arith.constant 0 : i32
    %12 = arith.cmpi eq, %arg1, %c0_i32_7 : i32
    %13 = arith.extui %12 : i1 to i32
    %c0_i32_8 = arith.constant 0 : i32
    %14 = arith.cmpi ne, %13, %c0_i32_8 : i32
    scf.if %14 {
      %c0_9 = arith.constant 0 : index
      %c0_10 = arith.constant 0 : index
      %15 = vector.load %arg7[%c0_9, %c0_10] : memref<128x32xf32, #tpu.memory_space<vmem>>, vector<128x32xf32>
      %c0_11 = arith.constant 0 : index
      %c0_12 = arith.constant 0 : index
      %16 = vector.load %arg4[%c0_11, %c0_12] : memref<1x32xf32, #tpu.memory_space<vmem>>, vector<1x32xf32>
      %17 = vector.broadcast %16 : vector<1x32xf32> to vector<128x32xf32>
      %18 = arith.addf %15, %17 : vector<128x32xf32>
      %19 = arith.truncf %18 : vector<128x32xf32> to vector<128x32xbf16>
      %c0_13 = arith.constant 0 : index
      %c0_14 = arith.constant 0 : index
      %20 = vector.load %arg5[%c0_13, %c0_14] : memref<32x32xbf16, #tpu.memory_space<vmem>>, vector<32x32xbf16>
      %cst_15 = arith.constant dense<0.000000e+00> : vector<128x32xf32>
      %21 = tpu.matmul %19, %20, %cst_15 {dimension_numbers = #tpu.dot_dimension_numbers<[1], [0], [0], [1], [0, 0, 1, 1], [], []>} : vector<128x32xbf16>, vector<32x32xbf16>, vector<128x32xf32> -> vector<128x32xf32>
      %22 = arith.truncf %21 : vector<128x32xf32> to vector<128x32xbf16>
      %c0_16 = arith.constant 0 : index
      %c0_17 = arith.constant 0 : index
      %23 = vector.load %arg6[%c0_16, %c0_17] : memref<128x32xbf16, #tpu.memory_space<vmem>>, vector<128x32xbf16>
      tpu.vector_store %arg6[%c0_16, %c0_17], %22 {strides = array<i32>} : memref<128x32xbf16, #tpu.memory_space<vmem>>, vector<128x32xbf16>,
    } else {
    }
    return
  }
  func.func @transform_0(%arg0: i32, %arg1: i32) -> (i32, i32) {
    %c0_i32 = arith.constant 0 : i32
    return %arg0, %arg1 : i32, i32
  }
  func.func @transform_1(%arg0: i32, %arg1: i32) -> (i32, i32) {
    %c0_i32 = arith.constant 0 : i32
    %c0_i32_0 = arith.constant 0 : i32
    %c0_i32_1 = arith.constant 0 : i32
    return %c0_i32, %c0_i32_0 : i32, i32
  }
  func.func @transform_2(%arg0: i32, %arg1: i32) -> (i32, i32) {
    %c0_i32 = arith.constant 0 : i32
    %c0_i32_0 = arith.constant 0 : i32
    %c0_i32_1 = arith.constant 0 : i32
    return %c0_i32, %c0_i32_0 : i32, i32
  }
  func.func @transform_3(%arg0: i32, %arg1: i32) -> (i32, i32) {
    %c0_i32 = arith.constant 0 : i32
    %c0_i32_0 = arith.constant 0 : i32
    %c0_i32_1 = arith.constant 0 : i32
    return %c0_i32, %c0_i32_0 : i32, i32
  }
  func.func @transform_4(%arg0: i32, %arg1: i32) -> (i32, i32) {
    %c0_i32 = arith.constant 0 : i32
    %c0_i32_0 = arith.constant 0 : i32
    return %arg0, %c0_i32 : i32, i32
  }
}

module attributes {stable_mosaic.version = 11 : i64} {
  func.func @gcn2_head_kernel(%arg0: i32, %arg1: i32, %arg2: memref<128x256xbf16, #tpu.memory_space<vmem>>, %arg3: memref<256x32xbf16, #tpu.memory_space<vmem>>, %arg4: memref<1x32xf32, #tpu.memory_space<vmem>>, %arg5: memref<32x32xbf16, #tpu.memory_space<vmem>>, %arg6: memref<1x32xf32, #tpu.memory_space<vmem>>, %arg7: memref<32x128xbf16, #tpu.memory_space<vmem>>, %arg8: memref<1x128xf32, #tpu.memory_space<vmem>>, %arg9: memref<128x128xf32, #tpu.memory_space<vmem>>, %arg10: memref<128x32xf32, #tpu.memory_space<vmem>>) attributes {dimension_semantics = [#tpu.dimension_semantics<parallel>, #tpu.dimension_semantics<arbitrary>], iteration_bounds = array<i64: 2, 1>, scalar_prefetch = 0 : i64, scratch_operands = 1 : i64, tpu.core_type = #tpu.core_type<tc>, window_params = [{transform_indices = @transform_0, window_bounds = array<i64: 128, 256>}, {pipeline_mode = #tpu.pipeline_mode<synchronous>, transform_indices = @transform_1, window_bounds = array<i64: 256, 32>}, {pipeline_mode = #tpu.pipeline_mode<synchronous>, transform_indices = @transform_2, window_bounds = array<i64: 1, 32>}, {pipeline_mode = #tpu.pipeline_mode<synchronous>, transform_indices = @transform_3, window_bounds = array<i64: 32, 32>}, {pipeline_mode = #tpu.pipeline_mode<synchronous>, transform_indices = @transform_4, window_bounds = array<i64: 1, 32>}, {pipeline_mode = #tpu.pipeline_mode<synchronous>, transform_indices = @transform_5, window_bounds = array<i64: 32, 128>}, {pipeline_mode = #tpu.pipeline_mode<synchronous>, transform_indices = @transform_6, window_bounds = array<i64: 1, 128>}, {transform_indices = @transform_7, window_bounds = array<i64: 128, 128>}]} {
    %c0_i32 = arith.constant 0 : i32
    %0 = arith.cmpi eq, %arg1, %c0_i32 : i32
    %1 = arith.extui %0 : i1 to i32
    %c0_i32_0 = arith.constant 0 : i32
    %2 = arith.cmpi ne, %1, %c0_i32_0 : i32
    scf.if %2 {
      %cst_9 = arith.constant 0.000000e+00 : f32
      %15 = vector.broadcast %cst_9 : f32 to vector<128x32xf32>
      %c0_10 = arith.constant 0 : index
      %c0_11 = arith.constant 0 : index
      %16 = vector.load %arg10[%c0_10, %c0_11] : memref<128x32xf32, #tpu.memory_space<vmem>>, vector<128x32xf32>
      tpu.vector_store %arg10[%c0_10, %c0_11], %15 {strides = array<i32>} : memref<128x32xf32, #tpu.memory_space<vmem>>, vector<128x32xf32>,
    } else {
    }
    %c256_i32 = arith.constant 256 : i32
    %3 = arith.muli %arg1, %c256_i32 : i32
    %4 = tpu.assume_multiple %3, 256 : i32
    %5 = arith.index_cast %4 : i32 to index
    %c0 = arith.constant 0 : index
    %6 = vector.load %arg3[%5, %c0] : memref<256x32xbf16, #tpu.memory_space<vmem>>, vector<256x32xbf16>
    %c0_1 = arith.constant 0 : index
    %c0_2 = arith.constant 0 : index
    %7 = vector.load %arg10[%c0_1, %c0_2] : memref<128x32xf32, #tpu.memory_space<vmem>>, vector<128x32xf32>
    %c0_3 = arith.constant 0 : index
    %c0_4 = arith.constant 0 : index
    %8 = vector.load %arg2[%c0_3, %c0_4] : memref<128x256xbf16, #tpu.memory_space<vmem>>, vector<128x256xbf16>
    %cst = arith.constant dense<0.000000e+00> : vector<128x32xf32>
    %9 = tpu.matmul %8, %6, %cst {dimension_numbers = #tpu.dot_dimension_numbers<[1], [0], [0], [1], [0, 0, 1, 1], [], []>} : vector<128x256xbf16>, vector<256x32xbf16>, vector<128x32xf32> -> vector<128x32xf32>
    %10 = arith.addf %7, %9 : vector<128x32xf32>
    %c0_5 = arith.constant 0 : index
    %c0_6 = arith.constant 0 : index
    %11 = vector.load %arg10[%c0_5, %c0_6] : memref<128x32xf32, #tpu.memory_space<vmem>>, vector<128x32xf32>
    tpu.vector_store %arg10[%c0_5, %c0_6], %10 {strides = array<i32>} : memref<128x32xf32, #tpu.memory_space<vmem>>, vector<128x32xf32>,
    %c0_i32_7 = arith.constant 0 : i32
    %12 = arith.cmpi eq, %arg1, %c0_i32_7 : i32
    %13 = arith.extui %12 : i1 to i32
    %c0_i32_8 = arith.constant 0 : i32
    %14 = arith.cmpi ne, %13, %c0_i32_8 : i32
    scf.if %14 {
      %c0_9 = arith.constant 0 : index
      %c0_10 = arith.constant 0 : index
      %15 = vector.load %arg10[%c0_9, %c0_10] : memref<128x32xf32, #tpu.memory_space<vmem>>, vector<128x32xf32>
      %c0_11 = arith.constant 0 : index
      %c0_12 = arith.constant 0 : index
      %16 = vector.load %arg4[%c0_11, %c0_12] : memref<1x32xf32, #tpu.memory_space<vmem>>, vector<1x32xf32>
      %17 = vector.broadcast %16 : vector<1x32xf32> to vector<128x32xf32>
      %18 = arith.addf %15, %17 : vector<128x32xf32>
      %19 = arith.truncf %18 : vector<128x32xf32> to vector<128x32xbf16>
      %c0_13 = arith.constant 0 : index
      %c0_14 = arith.constant 0 : index
      %20 = vector.load %arg5[%c0_13, %c0_14] : memref<32x32xbf16, #tpu.memory_space<vmem>>, vector<32x32xbf16>
      %cst_15 = arith.constant dense<0.000000e+00> : vector<128x32xf32>
      %21 = tpu.matmul %19, %20, %cst_15 {dimension_numbers = #tpu.dot_dimension_numbers<[1], [0], [0], [1], [0, 0, 1, 1], [], []>} : vector<128x32xbf16>, vector<32x32xbf16>, vector<128x32xf32> -> vector<128x32xf32>
      %c0_16 = arith.constant 0 : index
      %c0_17 = arith.constant 0 : index
      %22 = vector.load %arg6[%c0_16, %c0_17] : memref<1x32xf32, #tpu.memory_space<vmem>>, vector<1x32xf32>
      %23 = vector.broadcast %22 : vector<1x32xf32> to vector<128x32xf32>
      %24 = arith.addf %21, %23 : vector<128x32xf32>
      %cst_18 = arith.constant 0.000000e+00 : f32
      %25 = vector.broadcast %cst_18 : f32 to vector<128x32xf32>
      %26 = arith.cmpf ogt, %24, %25 : vector<128x32xf32>
      %cst_19 = arith.constant 0.00999999977 : f32
      %27 = vector.broadcast %cst_19 : f32 to vector<128x32xf32>
      %28 = arith.mulf %27, %24 : vector<128x32xf32>
      %29 = arith.select %26, %24, %28 : vector<128x32xi1>, vector<128x32xf32>
      %30 = arith.truncf %29 : vector<128x32xf32> to vector<128x32xbf16>
      %c0_20 = arith.constant 0 : index
      %c0_21 = arith.constant 0 : index
      %31 = vector.load %arg7[%c0_20, %c0_21] : memref<32x128xbf16, #tpu.memory_space<vmem>>, vector<32x128xbf16>
      %cst_22 = arith.constant dense<0.000000e+00> : vector<128x128xf32>
      %32 = tpu.matmul %30, %31, %cst_22 {dimension_numbers = #tpu.dot_dimension_numbers<[1], [0], [0], [1], [0, 0, 1, 1], [], []>} : vector<128x32xbf16>, vector<32x128xbf16>, vector<128x128xf32> -> vector<128x128xf32>
      %c0_23 = arith.constant 0 : index
      %c0_24 = arith.constant 0 : index
      %33 = vector.load %arg8[%c0_23, %c0_24] : memref<1x128xf32, #tpu.memory_space<vmem>>, vector<1x128xf32>
      %34 = vector.broadcast %33 : vector<1x128xf32> to vector<128x128xf32>
      %35 = arith.addf %32, %34 : vector<128x128xf32>
      %c0_25 = arith.constant 0 : index
      %c0_26 = arith.constant 0 : index
      %36 = vector.load %arg9[%c0_25, %c0_26] : memref<128x128xf32, #tpu.memory_space<vmem>>, vector<128x128xf32>
      tpu.vector_store %arg9[%c0_25, %c0_26], %35 {strides = array<i32>} : memref<128x128xf32, #tpu.memory_space<vmem>>, vector<128x128xf32>,
    } else {
    }
    return
  }
  func.func @transform_0(%arg0: i32, %arg1: i32) -> (i32, i32) {
    %c0_i32 = arith.constant 0 : i32
    return %arg0, %arg1 : i32, i32
  }
  func.func @transform_1(%arg0: i32, %arg1: i32) -> (i32, i32) {
    %c0_i32 = arith.constant 0 : i32
    %c0_i32_0 = arith.constant 0 : i32
    %c0_i32_1 = arith.constant 0 : i32
    return %c0_i32, %c0_i32_0 : i32, i32
  }
  func.func @transform_2(%arg0: i32, %arg1: i32) -> (i32, i32) {
    %c0_i32 = arith.constant 0 : i32
    %c0_i32_0 = arith.constant 0 : i32
    %c0_i32_1 = arith.constant 0 : i32
    return %c0_i32, %c0_i32_0 : i32, i32
  }
  func.func @transform_3(%arg0: i32, %arg1: i32) -> (i32, i32) {
    %c0_i32 = arith.constant 0 : i32
    %c0_i32_0 = arith.constant 0 : i32
    %c0_i32_1 = arith.constant 0 : i32
    return %c0_i32, %c0_i32_0 : i32, i32
  }
  func.func @transform_4(%arg0: i32, %arg1: i32) -> (i32, i32) {
    %c0_i32 = arith.constant 0 : i32
    %c0_i32_0 = arith.constant 0 : i32
    %c0_i32_1 = arith.constant 0 : i32
    return %c0_i32, %c0_i32_0 : i32, i32
  }
  func.func @transform_5(%arg0: i32, %arg1: i32) -> (i32, i32) {
    %c0_i32 = arith.constant 0 : i32
    %c0_i32_0 = arith.constant 0 : i32
    %c0_i32_1 = arith.constant 0 : i32
    return %c0_i32, %c0_i32_0 : i32, i32
  }
  func.func @transform_6(%arg0: i32, %arg1: i32) -> (i32, i32) {
    %c0_i32 = arith.constant 0 : i32
    %c0_i32_0 = arith.constant 0 : i32
    %c0_i32_1 = arith.constant 0 : i32
    return %c0_i32, %c0_i32_0 : i32, i32
  }
  func.func @transform_7(%arg0: i32, %arg1: i32) -> (i32, i32) {
    %c0_i32 = arith.constant 0 : i32
    %c0_i32_0 = arith.constant 0 : i32
    return %arg0, %c0_i32 : i32, i32
  }
}

</mosaic_0001>

<bundles_post_ra>
// kernel: botgcn_forward.4
= control target key start
LH: loop header
LB: loop body
LE: loop exit
PB: predicated region body
PF: predicated region fallthrough
CT: control target
= control target key end

     0   :  { %s1155_s15 = smov 0   ;;  %s1157_s16 = smov 0   ;;  %s1378_s0 = inlined_call_operand.vmem [shape: bf16[256,256], index: 0, kind: input, shape index: {}]   ;;  %s1379_s1 = inlined_call_operand.vmem [shape: bf16[256,32], index: 1, kind: input, shape index: {}]   ;;  %s1380_s2 = inlined_call_operand.vmem [shape: f32[1,32], index: 2, kind: input, shape index: {}]   ;;  %s1381_s3 = inlined_call_operand.vmem [shape: bf16[32,32], index: 3, kind: input, shape index: {}]   ;;  %s1382_s4 = inlined_call_operand.vmem [shape: bf16[256,32], index: 4, kind: output, shape index: {}]  }
   0x1   :  { %s1159_s17 = smov 0  }
   0x2 LB: > { %s26_s18 = sadd.s32 1, %s1123_s16  ;;  %p876_p0 = scmp.ge.s32.totalorder %s1127_s17, 1  ;;  %s1127_s17 = sphi %s1159_s17, %s14_s17   ;;  %s1123_s16 = sphi %s1157_s16, %s1384_s16   ;;  %s1119_s15 = sphi %s1155_s15, %s1383_s15  }
   0x3   : > { %p28_p1 = scmp.ge.s32.totalorder %s26_s18, 2  ;;  %p183_p2 = scmp.lt.s32.totalorder %s1127_s17, 3 }
   0x5   : > { %s1386_s18 = smov (%p28_p1, %s26_s18), 0  ;;  %p184_p3 = pnand %p876_p0, %p183_p2 }
   0x6   : > { %s877_s5 = sshll.u32 (!%p184_p3), %s1119_s15, 4 }
   0x7   : > { %187 = sbr.rel (%p184_p3) target bundleno = 450 (0x1c2), region = 36  ;;  %p216_p4 = scmp.lt.s32.totalorder (!%p184_p3), %s877_s5, 31 }
   0xc   : > { %v1036_v0 = vld [vmem:[%s1379_s1 + $0x38] sm:$0xff]  ;;  %v1035_v2 = vld [vmem:[%s1379_s1 + $0x30] sm:$0xff]  ;;  %v1034_v4 = vld [vmem:[%s1379_s1 + $0x28] sm:$0xff]  ;;  %s1388_s5 = smov (!%p216_p4, %s877_s5), 31  ;;  %vm237_vm0 = vcmask 261120   ;;  %vm782_vm1 = vcmask 257024  }
   0xd   : > { %v1044_v1 = vld [vmem:[%s1379_s1 + $0x78] sm:$0xff]  ;;  %499 = vmatpush.bf16.msra.mxu0 %v1036_v0  ;;  %v1043_v3 = vld [vmem:[%s1379_s1 + $0x70] sm:$0xff]  ;;  %1063 = vmatpush.bf16.msra.mxu3 %v1036_v0  ;;  %v1042_v5 = vld [vmem:[%s1379_s1 + $0x68] sm:$0xff]  ;;  %s1028_s21 = sshll.u32 %s1388_s5, 3  ;;  %v1129_v0 = vmov 0.0   ;;  %s881_s14 = sshll.u32 %s1388_s5, 2 }
   0xe   : > { %548 = vmatpush.bf16.msra.mxu1 %v1044_v1  ;;  %v1033_v6 = vld [vmem:[%s1379_s1 + $0x20] sm:$0xff]  ;;  %v1032_v8 = vld [vmem:[%s1379_s1 + $0x18] sm:$0xff]  ;;  %v1031_v10 = vld [vmem:[%s1379_s1 + $0x10] sm:$0xff]  ;;  %s1224_s28 = scalar_lea.vmem %s1378_s0, %s1028_s21  ;;  %238 = vst.msk [vmem:[#allocation2] sm:$0xff] %vm237_vm0, %v1129_v0  ;;  %s1335_s20 = scalar_lea.vmem %s1382_s4, %s881_s14 }
   0xf   : > { %v1041_v7 = vld [vmem:[%s1379_s1 + $0x60] sm:$0xff]  ;;  %v1040_v9 = vld [vmem:[%s1379_s1 + $0x58] sm:$0xff]  ;;  %v1039_v11 = vld [vmem:[%s1379_s1 + $0x50] sm:$0xff]  ;;  %239 = vst.msk [vmem:[#allocation2 + $0x8] sm:$0xff] %vm237_vm0, %v1129_v0 }
  0x10   : > { %v1030_v12 = vld [vmem:[%s1379_s1 + $0x8] sm:$0xff]  ;;  %v1029_v14 = vld [vmem:[%s1379_s1] sm:$0xff]  ;;  %v892_v25 = vld [vmem:[%s1224_s28 + $0x10] sm:$0xf]  ;;  %240 = vst.msk [vmem:[#allocation2 + $0x10] sm:$0xff] %vm237_vm0, %v1129_v0 }
  0x11   : > { %500 = vmatpush.bf16.msra.mxu0 %v1035_v2  ;;  %1064 = vmatpush.bf16.msra.mxu3 %v1035_v2  ;;  %v1038_v13 = vld [vmem:[%s1379_s1 + $0x48] sm:$0xff]  ;;  %v1037_v15 = vld [vmem:[%s1379_s1 + $0x40] sm:$0xff]  ;;  %v1048_v26 = vld [vmem:[%s1224_s28 + $0x14] sm:$0xf0]  ;;  %241 = vst.msk [vmem:[#allocation2 + $0x18] sm:$0xff] %vm237_vm0, %v1129_v0 }
  0x12   : > { %549 = vmatpush.bf16.msra.mxu1 %v1043_v3  ;;  %v884_v16 = vld [vmem:[%s1224_s28] sm:$0xf]  ;;  %v1046_v17 = vld [vmem:[%s1224_s28 + $0x4] sm:$0xf0]  ;;  %v1045_v18 = vld [vmem:[%s1224_s28 + $0x4] sm:$0xf]  ;;  %v893_v31 = vor.u32 %v1048_v26, %v892_v25 }
  0x13   : > { %v886_v19 = vld [vmem:[%s1224_s28 + $0x8] sm:$0xf0]  ;;  %v932_v20 = vld [vmem:[%s1224_s28 + $0x60] sm:$0xf]  ;;  %v1058_v21 = vld [vmem:[%s1224_s28 + $0x64] sm:$0xf0]  ;;  %v885_v22 = vor.u32 %v1046_v17, %v884_v16 }
  0x14   : > { %v889_v23 = vor.u32 %v1045_v18, %v886_v19  ;;  %v933_v24 = vor.u32 %v1058_v21, %v932_v20  ;;  %v1047_v27 = vld [vmem:[%s1224_s28 + $0x14] sm:$0xf]  ;;  %v894_v28 = vld [vmem:[%s1224_s28 + $0x18] sm:$0xf0]  ;;  %v940_v29 = vld [vmem:[%s1224_s28 + $0x70] sm:$0xf] }
  0x15   : > { %501 = vmatpush.bf16.msra.mxu0 %v1034_v4  ;;  %1065 = vmatpush.bf16.msra.mxu3 %v1034_v4  ;;  %v1060_v30 = vld [vmem:[%s1224_s28 + $0x74] sm:$0xf0]  ;;  %v897_v32 = vor.u32 %v1047_v27, %v894_v28  ;;  %v900_v34 = vld [vmem:[%s1224_s28 + $0x20] sm:$0xf]  ;;  %v1050_v35 = vld [vmem:[%s1224_s28 + $0x24] sm:$0xf0] }
  0x16   : > { %550 = vmatpush.bf16.msra.mxu1 %v1042_v5  ;;  %v941_v33 = vor.u32 %v1060_v30, %v940_v29  ;;  %v1049_v36 = vld [vmem:[%s1224_s28 + $0x24] sm:$0xf]  ;;  %v902_v37 = vld [vmem:[%s1224_s28 + $0x28] sm:$0xf0]  ;;  %v901_v40 = vor.u32 %v1050_v35, %v900_v34  ;;  %v908_v43 = vld [vmem:[%s1224_s28 + $0x30] sm:$0xf] }
  0x17   : > { %v1057_v38 = vld [vmem:[%s1224_s28 + $0x64] sm:$0xf]  ;;  %v934_v39 = vld [vmem:[%s1224_s28 + $0x68] sm:$0xf0]  ;;  %v905_v41 = vor.u32 %v1049_v36, %v902_v37  ;;  %v1052_v44 = vld [vmem:[%s1224_s28 + $0x34] sm:$0xf0] }
  0x18   : > { %v937_v42 = vor.u32 %v1057_v38, %v934_v39  ;;  %v1051_v45 = vld [vmem:[%s1224_s28 + $0x34] sm:$0xf]  ;;  %v910_v46 = vld [vmem:[%s1224_s28 + $0x38] sm:$0xf0]  ;;  %v909_v49 = vor.u32 %v1052_v44, %v908_v43  ;;  %v916_v52 = vld [vmem:[%s1224_s28 + $0x40] sm:$0xf] }
  0x19   : > { %502 = vmatpush.bf16.msra.mxu0 %v1033_v6  ;;  %1066 = vmatpush.bf16.msra.mxu3 %v1033_v6  ;;  %v1059_v47 = vld [vmem:[%s1224_s28 + $0x74] sm:$0xf]  ;;  %v942_v48 = vld [vmem:[%s1224_s28 + $0x78] sm:$0xf0]  ;;  %v913_v50 = vor.u32 %v1051_v45, %v910_v46  ;;  %v1054_v53 = vld [vmem:[%s1224_s28 + $0x44] sm:$0xf0] }
  0x1a   : > { %551 = vmatpush.bf16.msra.mxu1 %v1041_v7  ;;  %v945_v51 = vor.u32 %v1059_v47, %v942_v48  ;;  %v1053_v54 = vld [vmem:[%s1224_s28 + $0x44] sm:$0xf]  ;;  %v918_v55 = vld [vmem:[%s1224_s28 + $0x48] sm:$0xf0]  ;;  %v917_v56 = vor.u32 %v1054_v53, %v916_v52  ;;  %v924_v58 = vld [vmem:[%s1224_s28 + $0x50] sm:$0xf] }
  0x1b   : > { %v921_v57 = vor.u32 %v1053_v54, %v918_v55  ;;  %v1056_v59 = vld [vmem:[%s1224_s28 + $0x54] sm:$0xf0]  ;;  %v1055_v60 = vld [vmem:[%s1224_s28 + $0x54] sm:$0xf]  ;;  %v926_v61 = vld [vmem:[%s1224_s28 + $0x58] sm:$0xf0] }
  0x1c   : > { %v925_v62 = vor.u32 %v1056_v59, %v924_v58  ;;  %v929_v63 = vor.u32 %v1055_v60, %v926_v61  ;;  %242 = vst.msk [vmem:[#allocation2 + $0x20] sm:$0xff] %vm237_vm0, %v1129_v0  ;;  %v1061_v2 = vld [vmem:[%s1381_s3] sm:$0xff]  ;;  %v293_v16 = vld [vmem:[#allocation2 + $0x10] sm:$0xff]  ;;  %v294_v28 = vld [vmem:[#allocation2 + $0x18] sm:$0xff] }
  0x1d   : > { %503 = vmatpush.bf16.msra.mxu0 %v1032_v8  ;;  %1067 = vmatpush.bf16.msra.mxu3 %v1032_v8  ;;  %243 = vst.msk [vmem:[#allocation2 + $0x28] sm:$0xff] %vm237_vm0, %v1129_v0  ;;  %v291_v4 = vld [vmem:[#allocation2] sm:$0xff] }
  0x1e   : > { %552 = vmatpush.bf16.msra.mxu1 %v1040_v9  ;;  %244 = vst.msk [vmem:[#allocation2 + $0x30] sm:$0xff] %vm237_vm0, %v1129_v0  ;;  %v1291_v19 = vld [vmem:[%s1380_s2] ss:$0 sm:$0xff] }
  0x1f   : > { %245 = vst.msk [vmem:[#allocation2 + $0x38] sm:$0xff] %vm237_vm0, %v1129_v0 }
  0x20   : > { %246 = vst.msk [vmem:[#allocation2 + $0x40] sm:$0xff] %vm237_vm0, %v1129_v0 }
  0x21   : > { %504 = vmatpush.bf16.msra.mxu0 %v1031_v10  ;;  %1068 = vmatpush.bf16.msra.mxu3 %v1031_v10  ;;  %247 = vst.msk [vmem:[#allocation2 + $0x48] sm:$0xff] %vm237_vm0, %v1129_v0  ;;  %v292_v10 = vld [vmem:[#allocation2 + $0x8] sm:$0xff] }
  0x22   : > { %553 = vmatpush.bf16.msra.mxu1 %v1039_v11  ;;  %248 = vst.msk [vmem:[#allocation2 + $0x50] sm:$0xff] %vm237_vm0, %v1129_v0 }
  0x23   : > { %249 = vst.msk [vmem:[#allocation2 + $0x58] sm:$0xff] %vm237_vm0, %v1129_v0  ;;  %v295_v34 = vld [vmem:[#allocation2 + $0x20] sm:$0xff] }
  0x24   : > { %250 = vst.msk [vmem:[#allocation2 + $0x60] sm:$0xff] %vm237_vm0, %v1129_v0  ;;  %v296_v46 = vld [vmem:[#allocation2 + $0x28] sm:$0xff] }
  0x25   : > { %505 = vmatpush.bf16.msra.mxu0 %v1030_v12  ;;  %1069 = vmatpush.bf16.msra.mxu3 %v1030_v12  ;;  %251 = vst.msk [vmem:[#allocation2 + $0x68] sm:$0xff] %vm237_vm0, %v1129_v0  ;;  %v297_v55 = vld [vmem:[#allocation2 + $0x30] sm:$0xff] }
  0x26   : > { %554 = vmatpush.bf16.msra.mxu1 %v1038_v13  ;;  %252 = vst.msk [vmem:[#allocation2 + $0x70] sm:$0xff] %vm237_vm0, %v1129_v0 }
  0x27   : > { %253 = vst.msk [vmem:[#allocation2 + $0x78] sm:$0xff] %vm237_vm0, %v1129_v0 }
  0x29   : > { %506 = vmatpush.bf16.msra.mxu0 %v1029_v14  ;;  %1070 = vmatpush.bf16.msra.mxu3 %v1029_v14 }
  0x2a   : > { %555 = vmatpush.bf16.msra.mxu1 %v1037_v15 }
  0x2b   : > { %v303_v43 = vld [vmem:[#allocation2 + $0x60] sm:$0xff] }
  0x2c   : > { %507 = vmatmul.bf16.vlgmr.msra.gmra.mxu0 %v885_v22  ;;  %537 = vmatmul.bf16.vlgmr.msra.gmra.mxu3 %v933_v24  ;;  %v304_v52 = vld [vmem:[#allocation2 + $0x68] sm:$0xff] }
  0x2d   : > { %1071 = vmatpush.bf16.msrb.mxu3 %v1044_v1  ;;  %556 = vmatmul.bf16.vlgmr.msra.gmra.mxu1 %v889_v23  ;;  %v1062_v1 = vld [vmem:[%s1381_s3 + $0x8] sm:$0xff] }
  0x2e   : > { %723 = vmatpush.bf16.msra.mxu2 %v1062_v1 }
  0x31   : > { %1072 = vmatpush.bf16.msrb.mxu3 %v1043_v3 }
  0x32   : > { %724 = vmatpush.bf16.msra.mxu2 %v1061_v2  ;;  %v305_v2 = vld [vmem:[#allocation2 + $0x70] sm:$0xff] }
  0x35   : > { %1073 = vmatpush.bf16.msrb.mxu3 %v1042_v5 }
  0x39   : > { %1074 = vmatpush.bf16.msrb.mxu3 %v1041_v7 }
  0x3c   : > { %512 = vmatmul.bf16.gmra.mxu0 %v893_v31  ;;  %542 = vmatmul.bf16.gmra.mxu3 %v941_v33 }
  0x3d   : > { %1075 = vmatpush.bf16.msrb.mxu3 %v1040_v9  ;;  %561 = vmatmul.bf16.gmra.mxu1 %v897_v32 }
  0x41   : > { %1076 = vmatpush.bf16.msrb.mxu3 %v1039_v11 }
  0x45   : > { %1077 = vmatpush.bf16.msrb.mxu3 %v1038_v13 }
  0x49   : > { %1078 = vmatpush.bf16.msrb.mxu3 %v1037_v15 }
  0x4c   : > { %517 = vmatmul.bf16.gmra.mxu0 %v901_v40  ;;  %586 = vmatmul.bf16.vlgmr.msrb.gmra.mxu3 %v937_v42 }
  0x4d   : > { %566 = vmatmul.bf16.gmra.mxu1 %v905_v41 }
  0x5c   : > { %522 = vmatmul.bf16.gmra.mxu0 %v909_v49  ;;  %591 = vmatmul.bf16.gmra.mxu3 %v945_v51 }
  0x5d   : > { %571 = vmatmul.bf16.gmra.mxu1 %v913_v50 }
  0x6c   : > { %527 = vmatmul.bf16.gmra.mxu0 %v917_v56 }
  0x6d   : > { %576 = vmatmul.bf16.gmra.mxu1 %v921_v57 }
  0x7c   : > { %532 = vmatmul.bf16.gmra.mxu0 %v925_v62 }
  0x7d   : > { %581 = vmatmul.bf16.gmra.mxu1 %v929_v63 }
  0xa9   : > { %v508_v3 = vpop.f32.mrf.mxu0 }
  0xaa   : > { %v557_v5 = vpop.f32.mrf.mxu1 }
  0xab   : > { %v558_v6 = vadd.f32 %v557_v5, %v508_v3  ;;  %v298_v5 = vld [vmem:[#allocation2 + $0x38] sm:$0xff] }
  0xad   : > { %v597_v7 = vadd.f32 %v558_v6, %v291_v4 }
  0xaf   : > { %614 = vst.msk [vmem:[#allocation2] sm:$0xff] %vm237_vm0, %v597_v7  ;;  %v538_v8 = vpop.f32.mrf.mxu3 }
  0xb1   : > { %v510_v9 = vpop.f32.mrf.mxu0 }
  0xb2   : > { %v559_v11 = vpop.f32.mrf.mxu1 }
  0xb3   : > { %v560_v12 = vadd.f32 %v559_v11, %v510_v9  ;;  %v306_v11 = vld [vmem:[#allocation2 + $0x78] sm:$0xff] }
  0xb5   : > { %v598_v13 = vadd.f32 %v560_v12, %v292_v10 }
  0xb6   : > { %v633_v20 = vld [vmem:[#allocation2] sm:$0xff] }
  0xb7   : > { %615 = vst.msk [vmem:[#allocation2 + $0x8] sm:$0xff] %vm237_vm0, %v598_v13  ;;  %v540_v14 = vpop.f32.mrf.mxu3  ;;  %v653_v23 = vadd.f32 %v1291_v19, %v633_v20 }
  0xb9   : > { %v513_v15 = vpop.f32.mrf.mxu0 }
  0xba   : > { %v562_v17 = vpop.f32.mrf.mxu1 }
  0xbb   : > { %v563_v18 = vadd.f32 %v562_v17, %v513_v15 }
  0xbd   : > { %v599_v21 = vadd.f32 %v563_v18, %v293_v16 }
  0xbe   : > { %v634_v22 = vld [vmem:[#allocation2 + $0x8] sm:$0xff] }
  0xbf   : > { %616 = vst.msk [vmem:[#allocation2 + $0x10] sm:$0xff] %vm237_vm0, %v599_v21  ;;  %v654_v24 = vadd.f32 %v1291_v19, %v634_v22  ;;  %v543_v26 = vpop.f32.mrf.mxu3 }
  0xc1   : > { %v669_v25 = vpack.c.bf16 %v654_v24, %v653_v23  ;;  %v515_v27 = vpop.f32.mrf.mxu0 }
  0xc2   : > { %v564_v29 = vpop.f32.mrf.mxu1 }
  0xc3   : > { %v565_v30 = vadd.f32 %v564_v29, %v515_v27  ;;  %1018 = vmatmul.msk.bf16.vlgmr.msra.gmra.mxu2 %vm237_vm0, %v669_v25  ;;  %v300_v27 = vld [vmem:[#allocation2 + $0x48] sm:$0xff] }
  0xc5   : > { %v600_v31 = vadd.f32 %v565_v30, %v294_v28 }
  0xc6   : > { %v635_v37 = vld [vmem:[#allocation2 + $0x10] sm:$0xff] }
  0xc7   : > { %617 = vst.msk [vmem:[#allocation2 + $0x18] sm:$0xff] %vm237_vm0, %v600_v31  ;;  %v545_v32 = vpop.f32.mrf.mxu3  ;;  %v655_v40 = vadd.f32 %v1291_v19, %v635_v37 }
  0xc9   : > { %v518_v33 = vpop.f32.mrf.mxu0 }
  0xca   : > { %v567_v35 = vpop.f32.mrf.mxu1 }
  0xcb   : > { %v568_v36 = vadd.f32 %v567_v35, %v518_v33 }
  0xcd   : > { %v601_v38 = vadd.f32 %v568_v36, %v295_v34 }
  0xce   : > { %v636_v39 = vld [vmem:[#allocation2 + $0x18] sm:$0xff] }
  0xcf   : > { %618 = vst.msk [vmem:[#allocation2 + $0x20] sm:$0xff] %vm237_vm0, %v601_v38  ;;  %v656_v41 = vadd.f32 %v1291_v19, %v636_v39  ;;  %v587_v44 = vpop.f32.mrf.mxu3 }
  0xd0   : > { %v588_v48 = vadd.f32 %v587_v44, %v538_v8 }
  0xd1   : > { %v670_v42 = vpack.c.bf16 %v656_v41, %v655_v40  ;;  %v520_v45 = vpop.f32.mrf.mxu0 }
  0xd2   : > { %v569_v47 = vpop.f32.mrf.mxu1  ;;  %v609_v50 = vadd.f32 %v588_v48, %v303_v43 }
  0xd3   : > { %v570_v49 = vadd.f32 %v569_v47, %v520_v45  ;;  %1019 = vmatmul.msk.bf16.gmra.mxu2 %vm237_vm0, %v670_v42  ;;  %v302_v42 = vld [vmem:[#allocation2 + $0x58] sm:$0xff] }
  0xd4   : > { %626 = vst.msk [vmem:[#allocation2 + $0x60] sm:$0xff] %vm237_vm0, %v609_v50 }
  0xd5   : > { %v602_v51 = vadd.f32 %v570_v49, %v296_v46 }
  0xd6   : > { %v637_v59 = vld [vmem:[#allocation2 + $0x20] sm:$0xff] }
  0xd7   : > { %619 = vst.msk [vmem:[#allocation2 + $0x28] sm:$0xff] %vm237_vm0, %v602_v51  ;;  %v589_v53 = vpop.f32.mrf.mxu3  ;;  %v657_v63 = vadd.f32 %v1291_v19, %v637_v59 }
  0xd8   : > { %v590_v57 = vadd.f32 %v589_v53, %v540_v14  ;;  %v299_v14 = vld [vmem:[#allocation2 + $0x40] sm:$0xff] }
  0xd9   : > { %v523_v54 = vpop.f32.mrf.mxu0 }
  0xda   : > { %v572_v56 = vpop.f32.mrf.mxu1  ;;  %v610_v60 = vadd.f32 %v590_v57, %v304_v52 }
  0xdb   : > { %v573_v58 = vadd.f32 %v572_v56, %v523_v54  ;;  %v645_v51 = vld [vmem:[#allocation2 + $0x60] sm:$0xff] }
  0xdc   : > { %627 = vst.msk [vmem:[#allocation2 + $0x68] sm:$0xff] %vm237_vm0, %v610_v60  ;;  %v665_v53 = vadd.f32 %v1291_v19, %v645_v51 }
  0xdd   : > { %v603_v61 = vadd.f32 %v573_v58, %v297_v55 }
  0xde   : > { %v638_v62 = vld [vmem:[#allocation2 + $0x28] sm:$0xff] }
  0xdf   : > { %620 = vst.msk [vmem:[#allocation2 + $0x30] sm:$0xff] %vm237_vm0, %v603_v61  ;;  %v658_v0 = vadd.f32 %v1291_v19, %v638_v62  ;;  %v592_v3 = vpop.f32.mrf.mxu3 }
  0xe0   : > { %v593_v7 = vadd.f32 %v592_v3, %v543_v26 }
  0xe1   : > { %v671_v1 = vpack.c.bf16 %v658_v0, %v657_v63  ;;  %v525_v4 = vpop.f32.mrf.mxu0 }
  0xe2   : > { %v574_v6 = vpop.f32.mrf.mxu1  ;;  %v611_v9 = vadd.f32 %v593_v7, %v305_v2 }
  0xe3   : > { %v575_v8 = vadd.f32 %v574_v6, %v525_v4  ;;  %1020 = vmatmul.msk.bf16.gmra.mxu2 %vm237_vm0, %v671_v1  ;;  %v646_v52 = vld [vmem:[#allocation2 + $0x68] sm:$0xff] }
  0xe4   : > { %628 = vst.msk [vmem:[#allocation2 + $0x70] sm:$0xff] %vm237_vm0, %v611_v9  ;;  %v666_v54 = vadd.f32 %v1291_v19, %v646_v52 }
  0xe5   : > { %v604_v10 = vadd.f32 %v575_v8, %v298_v5 }
  0xe6   : > { %v639_v18 = vld [vmem:[#allocation2 + $0x30] sm:$0xff]  ;;  %v675_v55 = vpack.c.bf16 %v666_v54, %v665_v53 }
  0xe7   : > { %621 = vst.msk [vmem:[#allocation2 + $0x38] sm:$0xff] %vm237_vm0, %v604_v10  ;;  %v594_v12 = vpop.f32.mrf.mxu3  ;;  %v659_v23 = vadd.f32 %v1291_v19, %v639_v18 }
  0xe8   : > { %v595_v16 = vadd.f32 %v594_v12, %v545_v32  ;;  %v301_v32 = vld [vmem:[#allocation2 + $0x50] sm:$0xff] }
  0xe9   : > { %v528_v13 = vpop.f32.mrf.mxu0 }
  0xea   : > { %v577_v15 = vpop.f32.mrf.mxu1  ;;  %v612_v20 = vadd.f32 %v595_v16, %v306_v11 }
  0xeb   : > { %v578_v17 = vadd.f32 %v577_v15, %v528_v13  ;;  %v647_v56 = vld [vmem:[#allocation2 + $0x70] sm:$0xff] }
  0xec   : > { %629 = vst.msk [vmem:[#allocation2 + $0x78] sm:$0xff] %vm237_vm0, %v612_v20  ;;  %v667_v58 = vadd.f32 %v1291_v19, %v647_v56 }
  0xed   : > { %v605_v21 = vadd.f32 %v578_v17, %v299_v14 }
  0xee   : > { %v640_v22 = vld [vmem:[#allocation2 + $0x38] sm:$0xff] }
  0xef   : > { %622 = vst.msk [vmem:[#allocation2 + $0x40] sm:$0xff] %vm237_vm0, %v605_v21  ;;  %v660_v24 = vadd.f32 %v1291_v19, %v640_v22 }
  0xf1   : > { %v672_v25 = vpack.c.bf16 %v660_v24, %v659_v23  ;;  %v530_v26 = vpop.f32.mrf.mxu0 }
  0xf2   : > { %v579_v28 = vpop.f32.mrf.mxu1 }
  0xf3   : > { %v580_v29 = vadd.f32 %v579_v28, %v530_v26  ;;  %1021 = vmatmul.msk.bf16.gmra.mxu2 %vm237_vm0, %v672_v25  ;;  %v648_v57 = vld [vmem:[#allocation2 + $0x78] sm:$0xff] }
  0xf4   : > { %v668_v59 = vadd.f32 %v1291_v19, %v648_v57 }
  0xf5   : > { %v606_v30 = vadd.f32 %v580_v29, %v300_v27 }
  0xf6   : > { %v641_v35 = vld [vmem:[#allocation2 + $0x40] sm:$0xff]  ;;  %v676_v60 = vpack.c.bf16 %v668_v59, %v667_v58 }
  0xf7   : > { %623 = vst.msk [vmem:[#allocation2 + $0x48] sm:$0xff] %vm237_vm0, %v606_v30  ;;  %v661_v38 = vadd.f32 %v1291_v19, %v641_v35 }
  0xf9   : > { %v533_v31 = vpop.f32.mrf.mxu0 }
  0xfa   : > { %v582_v33 = vpop.f32.mrf.mxu1 }
  0xfb   : > { %v583_v34 = vadd.f32 %v582_v33, %v533_v31 }
  0xfd   : > { %v607_v36 = vadd.f32 %v583_v34, %v301_v32 }
  0xfe   : > { %v642_v37 = vld [vmem:[#allocation2 + $0x48] sm:$0xff] }
  0xff   : > { %624 = vst.msk [vmem:[#allocation2 + $0x50] sm:$0xff] %vm237_vm0, %v607_v36  ;;  %v662_v39 = vadd.f32 %v1291_v19, %v642_v37 }
 0x101   : > { %v673_v40 = vpack.c.bf16 %v662_v39, %v661_v38  ;;  %v535_v41 = vpop.f32.mrf.mxu0 }
 0x102   : > { %v584_v43 = vpop.f32.mrf.mxu1 }
 0x103   : > { %v585_v44 = vadd.f32 %v584_v43, %v535_v41  ;;  %1022 = vmatmul.msk.bf16.gmra.mxu2 %vm237_vm0, %v673_v40 }
 0x105   : > { %v608_v45 = vadd.f32 %v585_v44, %v302_v42 }
 0x106   : > { %v643_v46 = vld [vmem:[#allocation2 + $0x50] sm:$0xff] }
 0x107   : > { %625 = vst.msk [vmem:[#allocation2 + $0x58] sm:$0xff] %vm237_vm0, %v608_v45  ;;  %v663_v48 = vadd.f32 %v1291_v19, %v643_v46 }
 0x10e   : > { %v644_v47 = vld [vmem:[#allocation2 + $0x58] sm:$0xff] }
 0x10f   : > { %v664_v49 = vadd.f32 %v1291_v19, %v644_v47 }
 0x111   : > { %v674_v50 = vpack.c.bf16 %v664_v49, %v663_v48 }
 0x113   : > { %1023 = vmatmul.msk.bf16.gmra.mxu2 %vm237_vm0, %v674_v50 }
 0x123   : > { %1024 = vmatmul.msk.bf16.gmra.mxu2 %vm237_vm0, %v675_v55 }
 0x133   : > { %1025 = vmatmul.msk.bf16.gmra.mxu2 %vm237_vm0, %v676_v60 }
 0x146   : > { %v726_v61 = vpop.f32.mrf.mxu2 }
 0x147   : > { %v766_v62 = vpack.c.bf16 %v726_v61, %v726_v61 }
 0x149   : > { %783 = vst.msk [vmem:[%s1335_s20] sm:$0xf] %vm782_vm1, %v766_v62 }
 0x14e   : > { %v728_v19 = vpop.f32.mrf.mxu2 }
 0x14f   : > { %v767_v63 = vpack.c.bf16 %v728_v19, %v728_v19 }
 0x151   : > { %784 = vst.msk [vmem:[%s1335_s20 + $0x4] sm:$0xf] %vm782_vm1, %v767_v63 }
 0x156   : > { %v731_v0 = vpop.f32.mrf.mxu2 }
 0x157   : > { %v768_v1 = vpack.c.bf16 %v731_v0, %v731_v0 }
 0x159   : > { %785 = vst.msk [vmem:[%s1335_s20 + $0x8] sm:$0xf] %vm782_vm1, %v768_v1 }
 0x15e   : > { %v733_v2 = vpop.f32.mrf.mxu2 }
 0x15f   : > { %v769_v3 = vpack.c.bf16 %v733_v2, %v733_v2 }
 0x161   : > { %786 = vst.msk [vmem:[%s1335_s20 + $0xc] sm:$0xf] %vm782_vm1, %v769_v3 }
 0x166   : > { %v736_v4 = vpop.f32.mrf.mxu2 }
 0x167   : > { %v770_v5 = vpack.c.bf16 %v736_v4, %v736_v4 }
 0x169   : > { %787 = vst.msk [vmem:[%s1335_s20 + $0x10] sm:$0xf] %vm782_vm1, %v770_v5 }
 0x16e   : > { %v738_v6 = vpop.f32.mrf.mxu2 }
 0x16f   : > { %v771_v7 = vpack.c.bf16 %v738_v6, %v738_v6 }
 0x171   : > { %788 = vst.msk [vmem:[%s1335_s20 + $0x14] sm:$0xf] %vm782_vm1, %v771_v7 }
 0x176   : > { %v741_v8 = vpop.f32.mrf.mxu2 }
 0x177   : > { %v772_v9 = vpack.c.bf16 %v741_v8, %v741_v8 }
 0x179   : > { %789 = vst.msk [vmem:[%s1335_s20 + $0x18] sm:$0xf] %vm782_vm1, %v772_v9 }
 0x17e   : > { %v743_v10 = vpop.f32.mrf.mxu2 }
 0x17f   : > { %v773_v11 = vpack.c.bf16 %v743_v10, %v743_v10 }
 0x181   : > { %790 = vst.msk [vmem:[%s1335_s20 + $0x1c] sm:$0xf] %vm782_vm1, %v773_v11 }
 0x186   : > { %v746_v12 = vpop.f32.mrf.mxu2 }
 0x187   : > { %v774_v13 = vpack.c.bf16 %v746_v12, %v746_v12 }
 0x189   : > { %791 = vst.msk [vmem:[%s1335_s20 + $0x20] sm:$0xf] %vm782_vm1, %v774_v13 }
 0x18e   : > { %v748_v14 = vpop.f32.mrf.mxu2 }
 0x18f   : > { %v775_v15 = vpack.c.bf16 %v748_v14, %v748_v14 }
 0x191   : > { %792 = vst.msk [vmem:[%s1335_s20 + $0x24] sm:$0xf] %vm782_vm1, %v775_v15 }
 0x196   : > { %v751_v16 = vpop.f32.mrf.mxu2 }
 0x197   : > { %v776_v17 = vpack.c.bf16 %v751_v16, %v751_v16 }
 0x199   : > { %793 = vst.msk [vmem:[%s1335_s20 + $0x28] sm:$0xf] %vm782_vm1, %v776_v17 }
 0x19e   : > { %v753_v18 = vpop.f32.mrf.mxu2 }
 0x19f   : > { %v777_v20 = vpack.c.bf16 %v753_v18, %v753_v18 }
 0x1a1   : > { %794 = vst.msk [vmem:[%s1335_s20 + $0x2c] sm:$0xf] %vm782_vm1, %v777_v20 }
 0x1a6   : > { %v756_v21 = vpop.f32.mrf.mxu2 }
 0x1a7   : > { %v778_v22 = vpack.c.bf16 %v756_v21, %v756_v21 }
 0x1a9   : > { %795 = vst.msk [vmem:[%s1335_s20 + $0x30] sm:$0xf] %vm782_vm1, %v778_v22 }
 0x1ae   : > { %v758_v23 = vpop.f32.mrf.mxu2 }
 0x1af   : > { %v779_v24 = vpack.c.bf16 %v758_v23, %v758_v23 }
 0x1b1   : > { %796 = vst.msk [vmem:[%s1335_s20 + $0x34] sm:$0xf] %vm782_vm1, %v779_v24 }
 0x1b6   : > { %v761_v25 = vpop.f32.mrf.mxu2 }
 0x1b7   : > { %v780_v26 = vpack.c.bf16 %v761_v25, %v761_v25 }
 0x1b9   : > { %797 = vst.msk [vmem:[%s1335_s20 + $0x38] sm:$0xf] %vm782_vm1, %v780_v26 }
 0x1be   : > { %v763_v27 = vpop.f32.mrf.mxu2 }
 0x1bf   : > { %v781_v28 = vpack.c.bf16 %v763_v27, %v763_v27 }
 0x1c1   : > { %798 = vst.msk [vmem:[%s1335_s20 + $0x3c] sm:$0xf] %vm782_vm1, %v781_v28 }
 0x1c2 PF: > { %s14_s17 = sadd.s32 1, %s1127_s17   ;;  %s1383_s15 = smov %s1123_s16 }
 0x1c3   : > { %p11_p5 = scmp.ge.s32.totalorder %s14_s17, 4   ;;  %s1384_s16 = smov %s1386_s18 }
 0x1c5   :  { %13 = sbr.rel (!%p11_p5) target bundleno = 2 (0x2), region = 75 }

// kernel: botgcn_forward.5
= control target key start
LH: loop header
LB: loop body
LE: loop exit
PB: predicated region body
PF: predicated region fallthrough
CT: control target
= control target key end

     0   :  { %s1391_s24 = smov 0   ;;  %s1393_s25 = smov 0   ;;  %s1639_s0 = inlined_call_operand.vmem [shape: bf16[256,256], index: 0, kind: input, shape index: {}]   ;;  %s1640_s1 = inlined_call_operand.vmem [shape: bf16[256,32], index: 1, kind: input, shape index: {}]   ;;  %s1641_s2 = inlined_call_operand.vmem [shape: f32[1,32], index: 2, kind: input, shape index: {}]   ;;  %s1642_s3 = inlined_call_operand.vmem [shape: bf16[32,32], index: 3, kind: input, shape index: {}]   ;;  %s1643_s4 = inlined_call_operand.vmem [shape: f32[1,32], index: 4, kind: input, shape index: {}]   ;;  %s1644_s5 = inlined_call_operand.vmem [shape: bf16[32,128], index: 5, kind: input, shape index: {}]   ;;  %s1645_s6 = inlined_call_operand.vmem [shape: f32[1,128], index: 6, kind: input, shape index: {}]   ;;  %s1646_s7 = inlined_call_operand.vmem [shape: f32[256,128], index: 7, kind: output, shape index: {}]  }
   0x1   :  { %s1395_s26 = smov 0  }
   0x2 LB: > { %s29_s27 = sadd.s32 1, %s1344_s25  ;;  %p1093_p0 = scmp.ge.s32.totalorder %s1348_s26, 1  ;;  %s1348_s26 = sphi %s1395_s26, %s17_s26   ;;  %s1344_s25 = sphi %s1393_s25, %s1648_s25   ;;  %s1340_s24 = sphi %s1391_s24, %s1647_s24  }
   0x3   : > { %p31_p1 = scmp.ge.s32.totalorder %s29_s27, 2  ;;  %p258_p2 = scmp.lt.s32.totalorder %s1348_s26, 3 }
   0x5   : > { %s1650_s27 = smov (%p31_p1, %s29_s27), 0  ;;  %p259_p3 = pnand %p1093_p0, %p258_p2 }
   0x6   : > { %s1094_s17 = sshll.u32 (!%p259_p3), %s1340_s24, 4 }
   0x7   : > { %262 = sbr.rel (%p259_p3) target bundleno = 597 (0x255), region = 48  ;;  %p297_p4 = scmp.lt.s32.totalorder (!%p259_p3), %s1094_s17, 31 }
   0xc   : > { %v1269_v0 = vld [vmem:[%s1640_s1 + $0x38] sm:$0xff]  ;;  %v1268_v2 = vld [vmem:[%s1640_s1 + $0x30] sm:$0xff]  ;;  %v1267_v4 = vld [vmem:[%s1640_s1 + $0x28] sm:$0xff]  ;;  %s1652_s17 = smov (!%p297_p4, %s1094_s17), 31  ;;  %vm318_vm0 = vcmask 261120   ;;  %v1350_v54 = vmov 0.0  }
   0xd   : > { %v1277_v1 = vld [vmem:[%s1640_s1 + $0x78] sm:$0xff]  ;;  %580 = vmatpush.bf16.msra.mxu0 %v1269_v0  ;;  %v1276_v3 = vld [vmem:[%s1640_s1 + $0x70] sm:$0xff]  ;;  %v1275_v5 = vld [vmem:[%s1640_s1 + $0x68] sm:$0xff]  ;;  %s1261_s10 = sshll.u32 %s1652_s17, 3  ;;  %319 = vst.msk [vmem:[#allocation2] sm:$0xff] %vm318_vm0, %v1350_v54 }
   0xe   : > { %629 = vmatpush.bf16.msra.mxu1 %v1277_v1  ;;  %v1266_v6 = vld [vmem:[%s1640_s1 + $0x20] sm:$0xff]  ;;  %v1265_v8 = vld [vmem:[%s1640_s1 + $0x18] sm:$0xff]  ;;  %v1264_v10 = vld [vmem:[%s1640_s1 + $0x10] sm:$0xff]  ;;  %s1462_s18 = scalar_lea.vmem %s1639_s0, %s1261_s10  ;;  %320 = vst.msk [vmem:[#allocation2 + $0x8] sm:$0xff] %vm318_vm0, %v1350_v54  ;;  %s1612_s21 = scalar_lea.vmem %s1646_s7, %s1261_s10 }
   0xf   : > { %v1274_v7 = vld [vmem:[%s1640_s1 + $0x60] sm:$0xff]  ;;  %v1273_v9 = vld [vmem:[%s1640_s1 + $0x58] sm:$0xff]  ;;  %v1272_v11 = vld [vmem:[%s1640_s1 + $0x50] sm:$0xff]  ;;  %321 = vst.msk [vmem:[#allocation2 + $0x10] sm:$0xff] %vm318_vm0, %v1350_v54 }
  0x10   : > { %v1263_v12 = vld [vmem:[%s1640_s1 + $0x8] sm:$0xff]  ;;  %v1262_v14 = vld [vmem:[%s1640_s1] sm:$0xff]  ;;  %v1109_v22 = vld [vmem:[%s1462_s18 + $0x10] sm:$0xf]  ;;  %322 = vst.msk [vmem:[#allocation2 + $0x18] sm:$0xff] %vm318_vm0, %v1350_v54 }
  0x11   : > { %581 = vmatpush.bf16.msra.mxu0 %v1268_v2  ;;  %v1271_v13 = vld [vmem:[%s1640_s1 + $0x48] sm:$0xff]  ;;  %v1270_v15 = vld [vmem:[%s1640_s1 + $0x40] sm:$0xff]  ;;  %v1281_v23 = vld [vmem:[%s1462_s18 + $0x14] sm:$0xf0]  ;;  %323 = vst.msk [vmem:[#allocation2 + $0x20] sm:$0xff] %vm318_vm0, %v1350_v54 }
  0x12   : > { %630 = vmatpush.bf16.msra.mxu1 %v1276_v3  ;;  %v1101_v16 = vld [vmem:[%s1462_s18] sm:$0xf]  ;;  %v1279_v17 = vld [vmem:[%s1462_s18 + $0x4] sm:$0xf0]  ;;  %v1278_v18 = vld [vmem:[%s1462_s18 + $0x4] sm:$0xf]  ;;  %v1110_v26 = vor.u32 %v1281_v23, %v1109_v22 }
  0x13   : > { %v1103_v19 = vld [vmem:[%s1462_s18 + $0x8] sm:$0xf0]  ;;  %v1102_v20 = vor.u32 %v1279_v17, %v1101_v16  ;;  %v1280_v24 = vld [vmem:[%s1462_s18 + $0x14] sm:$0xf]  ;;  %v1111_v25 = vld [vmem:[%s1462_s18 + $0x18] sm:$0xf0] }
  0x14   : > { %v1106_v21 = vor.u32 %v1278_v18, %v1103_v19  ;;  %v1114_v27 = vor.u32 %v1280_v24, %v1111_v25  ;;  %v1117_v28 = vld [vmem:[%s1462_s18 + $0x20] sm:$0xf]  ;;  %v1283_v29 = vld [vmem:[%s1462_s18 + $0x24] sm:$0xf0]  ;;  %v1282_v30 = vld [vmem:[%s1462_s18 + $0x24] sm:$0xf] }
  0x15   : > { %582 = vmatpush.bf16.msra.mxu0 %v1267_v4  ;;  %v1119_v31 = vld [vmem:[%s1462_s18 + $0x28] sm:$0xf0]  ;;  %v1118_v32 = vor.u32 %v1283_v29, %v1117_v28  ;;  %v1125_v34 = vld [vmem:[%s1462_s18 + $0x30] sm:$0xf]  ;;  %v1285_v35 = vld [vmem:[%s1462_s18 + $0x34] sm:$0xf0] }
  0x16   : > { %631 = vmatpush.bf16.msra.mxu1 %v1275_v5  ;;  %v1122_v33 = vor.u32 %v1282_v30, %v1119_v31  ;;  %v1284_v36 = vld [vmem:[%s1462_s18 + $0x34] sm:$0xf]  ;;  %v1127_v37 = vld [vmem:[%s1462_s18 + $0x38] sm:$0xf0]  ;;  %v1126_v38 = vor.u32 %v1285_v35, %v1125_v34  ;;  %v1133_v40 = vld [vmem:[%s1462_s18 + $0x40] sm:$0xf] }
  0x17   : > { %v1130_v39 = vor.u32 %v1284_v36, %v1127_v37  ;;  %v1287_v41 = vld [vmem:[%s1462_s18 + $0x44] sm:$0xf0]  ;;  %v1286_v42 = vld [vmem:[%s1462_s18 + $0x44] sm:$0xf]  ;;  %v1135_v43 = vld [vmem:[%s1462_s18 + $0x48] sm:$0xf0] }
  0x18   : > { %v1134_v44 = vor.u32 %v1287_v41, %v1133_v40  ;;  %v1138_v45 = vor.u32 %v1286_v42, %v1135_v43  ;;  %v1141_v46 = vld [vmem:[%s1462_s18 + $0x50] sm:$0xf]  ;;  %v1289_v47 = vld [vmem:[%s1462_s18 + $0x54] sm:$0xf0]  ;;  %v1288_v48 = vld [vmem:[%s1462_s18 + $0x54] sm:$0xf] }
  0x19   : > { %583 = vmatpush.bf16.msra.mxu0 %v1266_v6  ;;  %v1143_v49 = vld [vmem:[%s1462_s18 + $0x58] sm:$0xf0]  ;;  %v1142_v50 = vor.u32 %v1289_v47, %v1141_v46  ;;  %v1149_v52 = vld [vmem:[%s1462_s18 + $0x60] sm:$0xf]  ;;  %v1291_v53 = vld [vmem:[%s1462_s18 + $0x64] sm:$0xf0] }
  0x1a   : > { %632 = vmatpush.bf16.msra.mxu1 %v1274_v7  ;;  %v1146_v51 = vor.u32 %v1288_v48, %v1143_v49  ;;  %v1290_v55 = vld [vmem:[%s1462_s18 + $0x64] sm:$0xf]  ;;  %v1151_v56 = vld [vmem:[%s1462_s18 + $0x68] sm:$0xf0]  ;;  %v1150_v57 = vor.u32 %v1291_v53, %v1149_v52  ;;  %324 = vst.msk [vmem:[#allocation2 + $0x28] sm:$0xff] %vm318_vm0, %v1350_v54  ;;  %v375_v25 = vld [vmem:[#allocation2 + $0x18] sm:$0xff] }
  0x1b   : > { %v1154_v58 = vor.u32 %v1290_v55, %v1151_v56  ;;  %325 = vst.msk [vmem:[#allocation2 + $0x30] sm:$0xff] %vm318_vm0, %v1350_v54  ;;  %v1157_v59 = vld [vmem:[%s1462_s18 + $0x70] sm:$0xf]  ;;  %v1293_v60 = vld [vmem:[%s1462_s18 + $0x74] sm:$0xf0]  ;;  %v1295_v1 = vld [vmem:[%s1642_s3 + $0x8] sm:$0xff] }
  0x1c   : > { %326 = vst.msk [vmem:[#allocation2 + $0x38] sm:$0xff] %vm318_vm0, %v1350_v54  ;;  %v1292_v61 = vld [vmem:[%s1462_s18 + $0x74] sm:$0xf]  ;;  %v1159_v62 = vld [vmem:[%s1462_s18 + $0x78] sm:$0xf0]  ;;  %v1158_v63 = vor.u32 %v1293_v60, %v1157_v59  ;;  %808 = vmatpush.bf16.msra.mxu2 %v1295_v1  ;;  %v1294_v2 = vld [vmem:[%s1642_s3] sm:$0xff] }
  0x1d   : > { %584 = vmatpush.bf16.msra.mxu0 %v1265_v8  ;;  %327 = vst.msk [vmem:[#allocation2 + $0x40] sm:$0xff] %vm318_vm0, %v1350_v54  ;;  %v1162_v0 = vor.u32 %v1292_v61, %v1159_v62  ;;  %v372_v4 = vld [vmem:[#allocation2] sm:$0xff] }
  0x1e   : > { %633 = vmatpush.bf16.msra.mxu1 %v1273_v9  ;;  %328 = vst.msk [vmem:[#allocation2 + $0x48] sm:$0xff] %vm318_vm0, %v1350_v54  ;;  %v373_v9 = vld [vmem:[#allocation2 + $0x8] sm:$0xff]  ;;  %v1529_v17 = vld [vmem:[%s1641_s2] ss:$0 sm:$0xff] }
  0x1f   : > { %329 = vst.msk [vmem:[#allocation2 + $0x50] sm:$0xff] %vm318_vm0, %v1350_v54  ;;  %v376_v30 = vld [vmem:[#allocation2 + $0x20] sm:$0xff] }
  0x20   : > { %330 = vst.msk [vmem:[#allocation2 + $0x58] sm:$0xff] %vm318_vm0, %v1350_v54  ;;  %809 = vmatpush.bf16.msra.mxu2 %v1294_v2 }
  0x21   : > { %585 = vmatpush.bf16.msra.mxu0 %v1264_v10  ;;  %331 = vst.msk [vmem:[#allocation2 + $0x60] sm:$0xff] %vm318_vm0, %v1350_v54  ;;  %v377_v40 = vld [vmem:[#allocation2 + $0x28] sm:$0xff] }
  0x22   : > { %634 = vmatpush.bf16.msra.mxu1 %v1272_v11  ;;  %332 = vst.msk [vmem:[#allocation2 + $0x68] sm:$0xff] %vm318_vm0, %v1350_v54 }
  0x23   : > { %333 = vst.msk [vmem:[#allocation2 + $0x70] sm:$0xff] %vm318_vm0, %v1350_v54  ;;  %v379_v55 = vld [vmem:[#allocation2 + $0x38] sm:$0xff] }
  0x24   : > { %334 = vst.msk [vmem:[#allocation2 + $0x78] sm:$0xff] %vm318_vm0, %v1350_v54  ;;  %v380_v60 = vld [vmem:[#allocation2 + $0x40] sm:$0xff] }
  0x25   : > { %586 = vmatpush.bf16.msra.mxu0 %v1263_v12 }
  0x26   : > { %635 = vmatpush.bf16.msra.mxu1 %v1271_v13 }
  0x29   : > { %587 = vmatpush.bf16.msra.mxu0 %v1262_v14  ;;  %v374_v14 = vld [vmem:[#allocation2 + $0x10] sm:$0xff] }
  0x2a   : > { %636 = vmatpush.bf16.msra.mxu1 %v1270_v15 }
  0x2c   : > { %588 = vmatmul.bf16.vlgmr.msra.gmra.mxu0 %v1102_v20 }
  0x2d   : > { %637 = vmatmul.bf16.vlgmr.msra.gmra.mxu1 %v1106_v21 }
  0x3c   : > { %593 = vmatmul.bf16.gmra.mxu0 %v1110_v26 }
  0x3d   : > { %642 = vmatmul.bf16.gmra.mxu1 %v1114_v27 }
  0x4c   : > { %598 = vmatmul.bf16.gmra.mxu0 %v1118_v32 }
  0x4d   : > { %647 = vmatmul.bf16.gmra.mxu1 %v1122_v33 }
  0x5c   : > { %603 = vmatmul.bf16.gmra.mxu0 %v1126_v38 }
  0x5d   : > { %652 = vmatmul.bf16.gmra.mxu1 %v1130_v39 }
  0x6c   : > { %608 = vmatmul.bf16.gmra.mxu0 %v1134_v44 }
  0x6d   : > { %657 = vmatmul.bf16.gmra.mxu1 %v1138_v45  ;;  %v378_v45 = vld [vmem:[#allocation2 + $0x30] sm:$0xff] }
  0x7c   : > { %613 = vmatmul.bf16.gmra.mxu0 %v1142_v50 }
  0x7d   : > { %662 = vmatmul.bf16.gmra.mxu1 %v1146_v51 }
  0x8c   : > { %618 = vmatmul.bf16.gmra.mxu0 %v1150_v57 }
  0x8d   : > { %667 = vmatmul.bf16.gmra.mxu1 %v1154_v58 }
  0x9c   : > { %623 = vmatmul.bf16.gmra.mxu0 %v1158_v63 }
  0x9d   : > { %672 = vmatmul.bf16.gmra.mxu1 %v1162_v0 }
  0xa9   : > { %v589_v3 = vpop.f32.mrf.mxu0 }
  0xaa   : > { %v638_v5 = vpop.f32.mrf.mxu1 }
  0xab   : > { %v639_v6 = vadd.f32 %v638_v5, %v589_v3 }
  0xad   : > { %v678_v7 = vadd.f32 %v639_v6, %v372_v4  ;;  %v381_v6 = vld [vmem:[#allocation2 + $0x48] sm:$0xff] }
  0xaf   : > { %695 = vst.msk [vmem:[#allocation2] sm:$0xff] %vm318_vm0, %v678_v7 }
  0xb1   : > { %v591_v8 = vpop.f32.mrf.mxu0 }
  0xb2   : > { %v640_v10 = vpop.f32.mrf.mxu1 }
  0xb3   : > { %v641_v11 = vadd.f32 %v640_v10, %v591_v8 }
  0xb5   : > { %v679_v12 = vadd.f32 %v641_v11, %v373_v9  ;;  %v382_v11 = vld [vmem:[#allocation2 + $0x50] sm:$0xff] }
  0xb6   : > { %v714_v18 = vld [vmem:[#allocation2] sm:$0xff] }
  0xb7   : > { %696 = vst.msk [vmem:[#allocation2 + $0x8] sm:$0xff] %vm318_vm0, %v679_v12  ;;  %v734_v21 = vadd.f32 %v1529_v17, %v714_v18 }
  0xb9   : > { %v594_v13 = vpop.f32.mrf.mxu0 }
  0xba   : > { %v643_v15 = vpop.f32.mrf.mxu1 }
  0xbb   : > { %v644_v16 = vadd.f32 %v643_v15, %v594_v13 }
  0xbd   : > { %v680_v19 = vadd.f32 %v644_v16, %v374_v14 }
  0xbe   : > { %v715_v20 = vld [vmem:[#allocation2 + $0x8] sm:$0xff] }
  0xbf   : > { %697 = vst.msk [vmem:[#allocation2 + $0x10] sm:$0xff] %vm318_vm0, %v680_v19  ;;  %v735_v22 = vadd.f32 %v1529_v17, %v715_v20 }
  0xc1   : > { %v750_v23 = vpack.c.bf16 %v735_v22, %v734_v21  ;;  %v596_v24 = vpop.f32.mrf.mxu0  ;;  %v383_v22 = vld [vmem:[#allocation2 + $0x58] sm:$0xff] }
  0xc2   : > { %v645_v26 = vpop.f32.mrf.mxu1 }
  0xc3   : > { %v646_v27 = vadd.f32 %v645_v26, %v596_v24  ;;  %1235 = vmatmul.msk.bf16.vlgmr.msra.gmra.mxu2 %vm318_vm0, %v750_v23 }
  0xc5   : > { %v681_v28 = vadd.f32 %v646_v27, %v375_v25  ;;  %v384_v27 = vld [vmem:[#allocation2 + $0x60] sm:$0xff] }
  0xc6   : > { %v716_v33 = vld [vmem:[#allocation2 + $0x10] sm:$0xff] }
  0xc7   : > { %698 = vst.msk [vmem:[#allocation2 + $0x18] sm:$0xff] %vm318_vm0, %v681_v28  ;;  %v736_v36 = vadd.f32 %v1529_v17, %v716_v33 }
  0xc9   : > { %v599_v29 = vpop.f32.mrf.mxu0 }
  0xca   : > { %v648_v31 = vpop.f32.mrf.mxu1 }
  0xcb   : > { %v649_v32 = vadd.f32 %v648_v31, %v599_v29 }
  0xcd   : > { %v682_v34 = vadd.f32 %v649_v32, %v376_v30 }
  0xce   : > { %v717_v35 = vld [vmem:[#allocation2 + $0x18] sm:$0xff] }
  0xcf   : > { %699 = vst.msk [vmem:[#allocation2 + $0x20] sm:$0xff] %vm318_vm0, %v682_v34  ;;  %v737_v37 = vadd.f32 %v1529_v17, %v717_v35 }
  0xd1   : > { %v751_v38 = vpack.c.bf16 %v737_v37, %v736_v36  ;;  %v601_v39 = vpop.f32.mrf.mxu0  ;;  %v385_v37 = vld [vmem:[#allocation2 + $0x68] sm:$0xff] }
  0xd2   : > { %v650_v41 = vpop.f32.mrf.mxu1 }
  0xd3   : > { %v651_v42 = vadd.f32 %v650_v41, %v601_v39  ;;  %1236 = vmatmul.msk.bf16.gmra.mxu2 %vm318_vm0, %v751_v38 }
  0xd5   : > { %v683_v43 = vadd.f32 %v651_v42, %v377_v40  ;;  %v386_v42 = vld [vmem:[#allocation2 + $0x70] sm:$0xff] }
  0xd6   : > { %v718_v48 = vld [vmem:[#allocation2 + $0x20] sm:$0xff] }
  0xd7   : > { %700 = vst.msk [vmem:[#allocation2 + $0x28] sm:$0xff] %vm318_vm0, %v683_v43  ;;  %v738_v51 = vadd.f32 %v1529_v17, %v718_v48 }
  0xd9   : > { %v604_v44 = vpop.f32.mrf.mxu0 }
  0xda   : > { %v653_v46 = vpop.f32.mrf.mxu1 }
  0xdb   : > { %v654_v47 = vadd.f32 %v653_v46, %v604_v44 }
  0xdd   : > { %v684_v49 = vadd.f32 %v654_v47, %v378_v45 }
  0xde   : > { %v719_v50 = vld [vmem:[#allocation2 + $0x28] sm:$0xff] }
  0xdf   : > { %701 = vst.msk [vmem:[#allocation2 + $0x30] sm:$0xff] %vm318_vm0, %v684_v49  ;;  %v739_v52 = vadd.f32 %v1529_v17, %v719_v50 }
  0xe1   : > { %v752_v53 = vpack.c.bf16 %v739_v52, %v738_v51  ;;  %v606_v54 = vpop.f32.mrf.mxu0  ;;  %v387_v52 = vld [vmem:[#allocation2 + $0x78] sm:$0xff] }
  0xe2   : > { %v655_v56 = vpop.f32.mrf.mxu1 }
  0xe3   : > { %v656_v57 = vadd.f32 %v655_v56, %v606_v54  ;;  %1237 = vmatmul.msk.bf16.gmra.mxu2 %vm318_vm0, %v752_v53 }
  0xe5   : > { %v685_v58 = vadd.f32 %v656_v57, %v379_v55  ;;  %v1297_v57 = vld [vmem:[%s1644_s5 + $0x8] sm:$0xff] }
  0xe6   : > { %v720_v63 = vld [vmem:[#allocation2 + $0x30] sm:$0xff]  ;;  %957 = vmatpush.bf16.msra.mxu3 %v1297_v57 }
  0xe7   : > { %702 = vst.msk [vmem:[#allocation2 + $0x38] sm:$0xff] %vm318_vm0, %v685_v58  ;;  %v740_v2 = vadd.f32 %v1529_v17, %v720_v63 }
  0xe9   : > { %v609_v59 = vpop.f32.mrf.mxu0 }
  0xea   : > { %v658_v61 = vpop.f32.mrf.mxu1 }
  0xeb   : > { %v659_v62 = vadd.f32 %v658_v61, %v609_v59 }
  0xed   : > { %v686_v0 = vadd.f32 %v659_v62, %v380_v60  ;;  %v1296_v62 = vld [vmem:[%s1644_s5] sm:$0xff] }
  0xee   : > { %v721_v1 = vld [vmem:[#allocation2 + $0x38] sm:$0xff]  ;;  %958 = vmatpush.bf16.msra.mxu3 %v1296_v62 }
  0xef   : > { %703 = vst.msk [vmem:[#allocation2 + $0x40] sm:$0xff] %vm318_vm0, %v686_v0  ;;  %v741_v3 = vadd.f32 %v1529_v17, %v721_v1  ;;  %v1578_v0 = vld [vmem:[%s1643_s4] ss:$0 sm:$0xff] }
  0xf1   : > { %v753_v4 = vpack.c.bf16 %v741_v3, %v740_v2  ;;  %v611_v5 = vpop.f32.mrf.mxu0 }
  0xf2   : > { %v660_v7 = vpop.f32.mrf.mxu1 }
  0xf3   : > { %v661_v8 = vadd.f32 %v660_v7, %v611_v5  ;;  %1238 = vmatmul.msk.bf16.gmra.mxu2 %vm318_vm0, %v753_v4 }
  0xf5   : > { %v687_v9 = vadd.f32 %v661_v8, %v381_v6 }
  0xf6   : > { %v722_v14 = vld [vmem:[#allocation2 + $0x40] sm:$0xff] }
  0xf7   : > { %704 = vst.msk [vmem:[#allocation2 + $0x48] sm:$0xff] %vm318_vm0, %v687_v9  ;;  %v742_v18 = vadd.f32 %v1529_v17, %v722_v14 }
  0xf9   : > { %v614_v10 = vpop.f32.mrf.mxu0 }
  0xfa   : > { %v663_v12 = vpop.f32.mrf.mxu1 }
  0xfb   : > { %v664_v13 = vadd.f32 %v663_v12, %v614_v10 }
  0xfd   : > { %v688_v15 = vadd.f32 %v664_v13, %v382_v11 }
  0xfe   : > { %v723_v16 = vld [vmem:[#allocation2 + $0x48] sm:$0xff] }
  0xff   : > { %705 = vst.msk [vmem:[#allocation2 + $0x50] sm:$0xff] %vm318_vm0, %v688_v15  ;;  %v743_v19 = vadd.f32 %v1529_v17, %v723_v16 }
 0x101   : > { %v754_v20 = vpack.c.bf16 %v743_v19, %v742_v18  ;;  %v616_v21 = vpop.f32.mrf.mxu0 }
 0x102   : > { %v665_v23 = vpop.f32.mrf.mxu1 }
 0x103   : > { %v666_v24 = vadd.f32 %v665_v23, %v616_v21  ;;  %1239 = vmatmul.msk.bf16.gmra.mxu2 %vm318_vm0, %v754_v20 }
 0x105   : > { %v689_v25 = vadd.f32 %v666_v24, %v383_v22 }
 0x106   : > { %v724_v30 = vld [vmem:[#allocation2 + $0x50] sm:$0xff] }
 0x107   : > { %706 = vst.msk [vmem:[#allocation2 + $0x58] sm:$0xff] %vm318_vm0, %v689_v25  ;;  %v744_v33 = vadd.f32 %v1529_v17, %v724_v30 }
 0x109   : > { %v619_v26 = vpop.f32.mrf.mxu0 }
 0x10a   : > { %v668_v28 = vpop.f32.mrf.mxu1 }
 0x10b   : > { %v669_v29 = vadd.f32 %v668_v28, %v619_v26 }
 0x10d   : > { %v690_v31 = vadd.f32 %v669_v29, %v384_v27 }
 0x10e   : > { %v725_v32 = vld [vmem:[#allocation2 + $0x58] sm:$0xff] }
 0x10f   : > { %707 = vst.msk [vmem:[#allocation2 + $0x60] sm:$0xff] %vm318_vm0, %v690_v31  ;;  %v745_v34 = vadd.f32 %v1529_v17, %v725_v32 }
 0x111   : > { %v755_v35 = vpack.c.bf16 %v745_v34, %v744_v33  ;;  %v621_v36 = vpop.f32.mrf.mxu0 }
 0x112   : > { %v670_v38 = vpop.f32.mrf.mxu1 }
 0x113   : > { %v671_v39 = vadd.f32 %v670_v38, %v621_v36  ;;  %1240 = vmatmul.msk.bf16.gmra.mxu2 %vm318_vm0, %v755_v35 }
 0x115   : > { %v691_v40 = vadd.f32 %v671_v39, %v385_v37 }
 0x116   : > { %v726_v45 = vld [vmem:[#allocation2 + $0x60] sm:$0xff] }
 0x117   : > { %708 = vst.msk [vmem:[#allocation2 + $0x68] sm:$0xff] %vm318_vm0, %v691_v40  ;;  %v746_v48 = vadd.f32 %v1529_v17, %v726_v45 }
 0x119   : > { %v624_v41 = vpop.f32.mrf.mxu0 }
 0x11a   : > { %v673_v43 = vpop.f32.mrf.mxu1 }
 0x11b   : > { %v674_v44 = vadd.f32 %v673_v43, %v624_v41 }
 0x11d   : > { %v692_v46 = vadd.f32 %v674_v44, %v386_v42 }
 0x11e   : > { %v727_v47 = vld [vmem:[#allocation2 + $0x68] sm:$0xff] }
 0x11f   : > { %709 = vst.msk [vmem:[#allocation2 + $0x70] sm:$0xff] %vm318_vm0, %v692_v46  ;;  %v747_v49 = vadd.f32 %v1529_v17, %v727_v47 }
 0x121   : > { %v756_v50 = vpack.c.bf16 %v747_v49, %v746_v48  ;;  %v626_v51 = vpop.f32.mrf.mxu0 }
 0x122   : > { %v675_v53 = vpop.f32.mrf.mxu1 }
 0x123   : > { %v676_v54 = vadd.f32 %v675_v53, %v626_v51  ;;  %1241 = vmatmul.msk.bf16.gmra.mxu2 %vm318_vm0, %v756_v50 }
 0x125   : > { %v693_v55 = vadd.f32 %v676_v54, %v387_v52 }
 0x126   : > { %v728_v56 = vld [vmem:[#allocation2 + $0x70] sm:$0xff] }
 0x127   : > { %710 = vst.msk [vmem:[#allocation2 + $0x78] sm:$0xff] %vm318_vm0, %v693_v55  ;;  %v748_v59 = vadd.f32 %v1529_v17, %v728_v56 }
 0x12e   : > { %v729_v58 = vld [vmem:[#allocation2 + $0x78] sm:$0xff] }
 0x12f   : > { %v749_v60 = vadd.f32 %v1529_v17, %v729_v58 }
 0x131   : > { %v757_v61 = vpack.c.bf16 %v749_v60, %v748_v59 }
 0x133   : > { %1242 = vmatmul.msk.bf16.gmra.mxu2 %vm318_vm0, %v757_v61 }
 0x146   : > { %v811_v63 = vpop.f32.mrf.mxu2 }
 0x147   : > { %v812_v1 = vadd.f32 %v1578_v0, %v811_v63 }
 0x149   : > { %v867_v3 = vmul.f32 0.01, %v812_v1  ;;  %vm851_vm1 = vcmp.gt.f32.partialorder %v812_v1, 0.0 }
 0x14b   : > { %v883_v5 = vsel %vm851_vm1, %v812_v1, %v867_v3 }
 0x14e   : > { %v813_v2 = vpop.f32.mrf.mxu2 }
 0x14f   : > { %v814_v17 = vadd.f32 %v1578_v0, %v813_v2 }
 0x151   : > { %vm852_vm2 = vcmp.gt.f32.partialorder %v814_v17, 0.0  ;;  %v868_v4 = vmul.f32 0.01, %v814_v17 }
 0x153   : > { %v884_v6 = vsel %vm852_vm2, %v814_v17, %v868_v4 }
 0x154   : > { %v899_v7 = vpack.c.bf16 %v884_v6, %v883_v5 }
 0x156   : > { %v816_v8 = vpop.f32.mrf.mxu2  ;;  %1251 = vmatmul.msk.bf16.vlgmr.msra.gmra.mxu3 %vm318_vm0, %v899_v7 }
 0x157   : > { %v817_v9 = vadd.f32 %v1578_v0, %v816_v8  ;;  %v1325_v8 = vld [vmem:[%s1645_s6] ss:$0 sm:$0xff] }
 0x159   : > { %v869_v11 = vmul.f32 0.01, %v817_v9  ;;  %vm853_vm3 = vcmp.gt.f32.partialorder %v817_v9, 0.0 }
 0x15b   : > { %v885_v14 = vsel %vm853_vm3, %v817_v9, %v869_v11 }
 0x15e   : > { %v818_v10 = vpop.f32.mrf.mxu2 }
 0x15f   : > { %v819_v12 = vadd.f32 %v1578_v0, %v818_v10 }
 0x161   : > { %vm854_vm4 = vcmp.gt.f32.partialorder %v819_v12, 0.0  ;;  %v870_v13 = vmul.f32 0.01, %v819_v12 }
 0x163   : > { %v886_v15 = vsel %vm854_vm4, %v819_v12, %v870_v13 }
 0x164   : > { %v900_v16 = vpack.c.bf16 %v886_v15, %v885_v14 }
 0x166   : > { %v821_v18 = vpop.f32.mrf.mxu2  ;;  %1252 = vmatmul.msk.bf16.gmra.mxu3 %vm318_vm0, %v900_v16 }
 0x167   : > { %v822_v19 = vadd.f32 %v1578_v0, %v821_v18 }
 0x169   : > { %v871_v21 = vmul.f32 0.01, %v822_v19  ;;  %vm855_vm5 = vcmp.gt.f32.partialorder %v822_v19, 0.0 }
 0x16b   : > { %v887_v24 = vsel %vm855_vm5, %v822_v19, %v871_v21 }
 0x16e   : > { %v823_v20 = vpop.f32.mrf.mxu2 }
 0x16f   : > { %v824_v22 = vadd.f32 %v1578_v0, %v823_v20 }
 0x171   : > { %vm856_vm6 = vcmp.gt.f32.partialorder %v824_v22, 0.0  ;;  %v872_v23 = vmul.f32 0.01, %v824_v22 }
 0x173   : > { %v888_v25 = vsel %vm856_vm6, %v824_v22, %v872_v23 }
 0x174   : > { %v901_v26 = vpack.c.bf16 %v888_v25, %v887_v24 }
 0x176   : > { %v826_v27 = vpop.f32.mrf.mxu2  ;;  %1253 = vmatmul.msk.bf16.gmra.mxu3 %vm318_vm0, %v901_v26 }
 0x177   : > { %v827_v28 = vadd.f32 %v1578_v0, %v826_v27 }
 0x179   : > { %v873_v30 = vmul.f32 0.01, %v827_v28  ;;  %vm857_vm7 = vcmp.gt.f32.partialorder %v827_v28, 0.0 }
 0x17b   : > { %v889_v33 = vsel %vm857_vm7, %v827_v28, %v873_v30 }
 0x17e   : > { %v828_v29 = vpop.f32.mrf.mxu2 }
 0x17f   : > { %v829_v31 = vadd.f32 %v1578_v0, %v828_v29 }
 0x181   : > { %vm858_vm8 = vcmp.gt.f32.partialorder %v829_v31, 0.0  ;;  %v874_v32 = vmul.f32 0.01, %v829_v31 }
 0x183   : > { %v890_v34 = vsel %vm858_vm8, %v829_v31, %v874_v32 }
 0x184   : > { %v902_v35 = vpack.c.bf16 %v890_v34, %v889_v33 }
 0x186   : > { %v831_v36 = vpop.f32.mrf.mxu2  ;;  %1254 = vmatmul.msk.bf16.gmra.mxu3 %vm318_vm0, %v902_v35 }
 0x187   : > { %v832_v37 = vadd.f32 %v1578_v0, %v831_v36 }
 0x189   : > { %v875_v39 = vmul.f32 0.01, %v832_v37  ;;  %vm859_vm9 = vcmp.gt.f32.partialorder %v832_v37, 0.0 }
 0x18b   : > { %v891_v42 = vsel %vm859_vm9, %v832_v37, %v875_v39 }
 0x18e   : > { %v833_v38 = vpop.f32.mrf.mxu2 }
 0x18f   : > { %v834_v40 = vadd.f32 %v1578_v0, %v833_v38 }
 0x191   : > { %vm860_vm10 = vcmp.gt.f32.partialorder %v834_v40, 0.0  ;;  %v876_v41 = vmul.f32 0.01, %v834_v40 }
 0x193   : > { %v892_v43 = vsel %vm860_vm10, %v834_v40, %v876_v41 }
 0x194   : > { %v903_v44 = vpack.c.bf16 %v892_v43, %v891_v42 }
 0x196   : > { %v836_v45 = vpop.f32.mrf.mxu2  ;;  %1255 = vmatmul.msk.bf16.gmra.mxu3 %vm318_vm0, %v903_v44 }
 0x197   : > { %v837_v46 = vadd.f32 %v1578_v0, %v836_v45 }
 0x199   : > { %v877_v48 = vmul.f32 0.01, %v837_v46  ;;  %vm861_vm11 = vcmp.gt.f32.partialorder %v837_v46, 0.0 }
 0x19b   : > { %v893_v51 = vsel %vm861_vm11, %v837_v46, %v877_v48 }
 0x19e   : > { %v838_v47 = vpop.f32.mrf.mxu2 }
 0x19f   : > { %v839_v49 = vadd.f32 %v1578_v0, %v838_v47 }
 0x1a1   : > { %vm862_vm12 = vcmp.gt.f32.partialorder %v839_v49, 0.0  ;;  %v878_v50 = vmul.f32 0.01, %v839_v49 }
 0x1a3   : > { %v894_v52 = vsel %vm862_vm12, %v839_v49, %v878_v50 }
 0x1a4   : > { %v904_v53 = vpack.c.bf16 %v894_v52, %v893_v51 }
 0x1a6   : > { %v841_v54 = vpop.f32.mrf.mxu2  ;;  %1256 = vmatmul.msk.bf16.gmra.mxu3 %vm318_vm0, %v904_v53 }
 0x1a7   : > { %v842_v55 = vadd.f32 %v1578_v0, %v841_v54 }
 0x1a9   : > { %v879_v57 = vmul.f32 0.01, %v842_v55  ;;  %vm863_vm13 = vcmp.gt.f32.partialorder %v842_v55, 0.0 }
 0x1ab   : > { %v895_v60 = vsel %vm863_vm13, %v842_v55, %v879_v57 }
 0x1ae   : > { %v843_v56 = vpop.f32.mrf.mxu2 }
 0x1af   : > { %v844_v58 = vadd.f32 %v1578_v0, %v843_v56 }
 0x1b1   : > { %vm864_vm14 = vcmp.gt.f32.partialorder %v844_v58, 0.0  ;;  %v880_v59 = vmul.f32 0.01, %v844_v58 }
 0x1b3   : > { %v896_v61 = vsel %vm864_vm14, %v844_v58, %v880_v59 }
 0x1b4   : > { %v905_v62 = vpack.c.bf16 %v896_v61, %v895_v60 }
 0x1b6   : > { %v846_v63 = vpop.f32.mrf.mxu2  ;;  %1257 = vmatmul.msk.bf16.gmra.mxu3 %vm318_vm0, %v905_v62 }
 0x1b7   : > { %v847_v1 = vadd.f32 %v1578_v0, %v846_v63 }
 0x1b9   : > { %v881_v3 = vmul.f32 0.01, %v847_v1  ;;  %vm865_vm15 = vcmp.gt.f32.partialorder %v847_v1, 0.0 }
 0x1bb   : > { %v897_v5 = vsel %vm865_vm15, %v847_v1, %v881_v3 }
 0x1be   : > { %v848_v2 = vpop.f32.mrf.mxu2 }
 0x1bf   : > { %v849_v17 = vadd.f32 %v1578_v0, %v848_v2 }
 0x1c1   : > { %vm866_vm1 = vcmp.gt.f32.partialorder %v849_v17, 0.0  ;;  %v882_v4 = vmul.f32 0.01, %v849_v17 }
 0x1c3   : > { %v898_v6 = vsel %vm866_vm1, %v849_v17, %v882_v4 }
 0x1c4   : > { %v906_v7 = vpack.c.bf16 %v898_v6, %v897_v5 }
 0x1c6   : > { %1258 = vmatmul.msk.bf16.gmra.mxu3 %vm318_vm0, %v906_v7 }
 0x1d9   : > { %v960_v0 = vpop.f32.mrf.mxu3 }
 0x1da   : > { %v961_v9 = vadd.f32 %v1325_v8, %v960_v0 }
 0x1dc   : > { %1000 = vst [vmem:[%s1612_s21] sm:$0xff] %v961_v9 }
 0x1e1   : > { %v962_v10 = vpop.f32.mrf.mxu3 }
 0x1e2   : > { %v963_v11 = vadd.f32 %v1325_v8, %v962_v10 }
 0x1e4   : > { %1001 = vst [vmem:[%s1612_s21 + $0x8] sm:$0xff] %v963_v11 }
 0x1e9   : > { %v965_v12 = vpop.f32.mrf.mxu3 }
 0x1ea   : > { %v966_v13 = vadd.f32 %v1325_v8, %v965_v12 }
 0x1ec   : > { %1002 = vst [vmem:[%s1612_s21 + $0x10] sm:$0xff] %v966_v13 }
 0x1f1   : > { %v967_v14 = vpop.f32.mrf.mxu3 }
 0x1f2   : > { %v968_v15 = vadd.f32 %v1325_v8, %v967_v14 }
 0x1f4   : > { %1003 = vst [vmem:[%s1612_s21 + $0x18] sm:$0xff] %v968_v15 }
 0x1f9   : > { %v970_v16 = vpop.f32.mrf.mxu3 }
 0x1fa   : > { %v971_v18 = vadd.f32 %v1325_v8, %v970_v16 }
 0x1fc   : > { %1004 = vst [vmem:[%s1612_s21 + $0x20] sm:$0xff] %v971_v18 }
 0x201   : > { %v972_v19 = vpop.f32.mrf.mxu3 }
 0x202   : > { %v973_v20 = vadd.f32 %v1325_v8, %v972_v19 }
 0x204   : > { %1005 = vst [vmem:[%s1612_s21 + $0x28] sm:$0xff] %v973_v20 }
 0x209   : > { %v975_v21 = vpop.f32.mrf.mxu3 }
 0x20a   : > { %v976_v22 = vadd.f32 %v1325_v8, %v975_v21 }
 0x20c   : > { %1006 = vst [vmem:[%s1612_s21 + $0x30] sm:$0xff] %v976_v22 }
 0x211   : > { %v977_v23 = vpop.f32.mrf.mxu3 }
 0x212   : > { %v978_v24 = vadd.f32 %v1325_v8, %v977_v23 }
 0x214   : > { %1007 = vst [vmem:[%s1612_s21 + $0x38] sm:$0xff] %v978_v24 }
 0x219   : > { %v980_v25 = vpop.f32.mrf.mxu3 }
 0x21a   : > { %v981_v26 = vadd.f32 %v1325_v8, %v980_v25 }
 0x21c   : > { %1008 = vst [vmem:[%s1612_s21 + $0x40] sm:$0xff] %v981_v26 }
 0x221   : > { %v982_v27 = vpop.f32.mrf.mxu3 }
 0x222   : > { %v983_v28 = vadd.f32 %v1325_v8, %v982_v27 }
 0x224   : > { %1009 = vst [vmem:[%s1612_s21 + $0x48] sm:$0xff] %v983_v28 }
 0x229   : > { %v985_v29 = vpop.f32.mrf.mxu3 }
 0x22a   : > { %v986_v30 = vadd.f32 %v1325_v8, %v985_v29 }
 0x22c   : > { %1010 = vst [vmem:[%s1612_s21 + $0x50] sm:$0xff] %v986_v30 }
 0x231   : > { %v987_v31 = vpop.f32.mrf.mxu3 }
 0x232   : > { %v988_v32 = vadd.f32 %v1325_v8, %v987_v31 }
 0x234   : > { %1011 = vst [vmem:[%s1612_s21 + $0x58] sm:$0xff] %v988_v32 }
 0x239   : > { %v990_v33 = vpop.f32.mrf.mxu3 }
 0x23a   : > { %v991_v34 = vadd.f32 %v1325_v8, %v990_v33 }
 0x23c   : > { %1012 = vst [vmem:[%s1612_s21 + $0x60] sm:$0xff] %v991_v34 }
 0x241   : > { %v992_v35 = vpop.f32.mrf.mxu3 }
 0x242   : > { %v993_v36 = vadd.f32 %v1325_v8, %v992_v35 }
 0x244   : > { %1013 = vst [vmem:[%s1612_s21 + $0x68] sm:$0xff] %v993_v36 }
 0x249   : > { %v995_v37 = vpop.f32.mrf.mxu3 }
 0x24a   : > { %v996_v38 = vadd.f32 %v1325_v8, %v995_v37 }
 0x24c   : > { %1014 = vst [vmem:[%s1612_s21 + $0x70] sm:$0xff] %v996_v38 }
 0x251   : > { %v997_v39 = vpop.f32.mrf.mxu3 }
 0x252   : > { %v998_v40 = vadd.f32 %v1325_v8, %v997_v39 }
 0x254   : > { %1015 = vst [vmem:[%s1612_s21 + $0x78] sm:$0xff] %v998_v40 }
 0x255 PF: > { %s17_s26 = sadd.s32 1, %s1348_s26   ;;  %s1647_s24 = smov %s1344_s25 }
 0x256   : > { %p14_p5 = scmp.ge.s32.totalorder %s17_s26, 4   ;;  %s1648_s25 = smov %s1650_s27 }
 0x258   :  { %16 = sbr.rel (!%p14_p5) target bundleno = 2 (0x2), region = 87 }

// kernel: botgcn_forward.3
= control target key start
LH: loop header
LB: loop body
LE: loop exit
PB: predicated region body
PF: predicated region fallthrough
CT: control target
= control target key end

     0   :  { %s2600_s27 = smov 0   ;;  %s2986_s0 = inlined_call_operand.vmem [shape: bf16[256,128], index: 0, kind: input, shape index: {}]   ;;  %s2987_s1 = inlined_call_operand.vmem [shape: bf16[256,128], index: 1, kind: input, shape index: {}]   ;;  %s2988_s2 = inlined_call_operand.vmem [shape: bf16[256,16], index: 2, kind: input, shape index: {}]   ;;  %s2989_s3 = inlined_call_operand.vmem [shape: bf16[256,16], index: 3, kind: input, shape index: {}]   ;;  %s2990_s4 = inlined_call_operand.vmem [shape: bf16[128,8], index: 4, kind: input, shape index: {}]   ;;  %s2991_s5 = inlined_call_operand.vmem [shape: f32[1,8], index: 5, kind: input, shape index: {}]   ;;  %s2992_s6 = inlined_call_operand.vmem [shape: bf16[128,8], index: 6, kind: input, shape index: {}]   ;;  %s2993_s7 = inlined_call_operand.vmem [shape: f32[1,8], index: 7, kind: input, shape index: {}]   ;;  %s2994_s8 = inlined_call_operand.vmem [shape: bf16[16,8], index: 8, kind: input, shape index: {}]   ;;  %s2995_s9 = inlined_call_operand.vmem [shape: f32[1,8], index: 9, kind: input, shape index: {}]   ;;  %s2996_s10 = inlined_call_operand.vmem [shape: bf16[16,8], index: 10, kind: input, shape index: {}]   ;;  %s2997_s11 = inlined_call_operand.vmem [shape: f32[1,8], index: 11, kind: input, shape index: {}]   ;;  %s2998_s12 = inlined_call_operand.vmem [shape: bf16[8,32], index: 12, kind: input, shape index: {}]   ;;  %s2999_s13 = inlined_call_operand.vmem [shape: bf16[8,32], index: 13, kind: input, shape index: {}]   ;;  %s3000_s14 = inlined_call_operand.vmem [shape: bf16[8,32], index: 14, kind: input, shape index: {}]   ;;  %s3001_s15 = inlined_call_operand.vmem [shape: bf16[8,32], index: 15, kind: input, shape index: {}]   ;;  %s3002_s16 = inlined_call_operand.vmem [shape: f32[1,32], index: 16, kind: input, shape index: {}]   ;;  %s3003_s17 = inlined_call_operand.vmem [shape: bf16[32,32], index: 17, kind: input, shape index: {}]   ;;  %s3004_s18 = inlined_call_operand.vmem [shape: bf16[256,32], index: 18, kind: output, shape index: {}]  }
   0x1   :  { %3005 = sst [smem:[#allocation2_spill]] %s2986_s0 }
   0x2   :  { %3006 = sst [smem:[#allocation3_spill]] %s2987_s1 }
   0x3   :  { %3007 = sst [smem:[#allocation4_spill]] %s2988_s2 }
   0x4 LB: > { %s2148_s28 = sadd.s32 4294967295, %s2503_s27   ;;  %p2152_p0 = scmp.ge.s32.totalorder %s2503_s27, 1  ;;  %s2503_s27 = sphi %s2600_s27, %s28_s27  }
   0x5   : > { %p546_p1 = scmp.lt.s32.totalorder %s2503_s27, 3 }
   0x7   : > { %p547_p2 = pnand %p2152_p0, %p546_p1 }
   0x8   : > { %s2153_s1 = sshll.u32 (!%p547_p2), %s2148_s28, 4  ;;  %s3008_s20 = sld [smem:[#allocation4_spill]] (!%p547_p2) }
   0x9   : > { %550 = sbr.rel (%p547_p2) target bundleno = 715 (0x2cb), region = 92  ;;  %p616_p3 = scmp.lt.s32.totalorder (!%p547_p2), %s2153_s1, 31 }
   0xa   : > { %s3010_s24 = sld [smem:[#allocation3_spill]] (!%p547_p2) }
   0xe   : > { %v2444_v0 = vld [vmem:[%s2990_s4 + $0x38] sm:$0xff]  ;;  %v2469_v2 = vld [vmem:[%s2994_s8] sm:$0xff]  ;;  %v2443_v3 = vld [vmem:[%s2990_s4 + $0x30] sm:$0xff]  ;;  %s3012_s1 = smov (!%p616_p3, %s2153_s1), 31  ;;  %vm1188_vm0 = vcmask 130048   ;;  %vm1542_vm1 = vcmask 1043456  }
   0xf   : > { %v2460_v1 = vld [vmem:[%s2992_s6 + $0x38] sm:$0xff]  ;;  %778 = vmatpush.bf16.msra.mxu0 %v2444_v0  ;;  %v2459_v4 = vld [vmem:[%s2992_s6 + $0x30] sm:$0xff]  ;;  %2483 = vmatpush.bf16.msra.mxu3 %v2469_v2  ;;  %s2623_s25 = sshll.u32 %s3012_s1, 2  ;;  %v2442_v5 = vld [vmem:[%s2990_s4 + $0x28] sm:$0xff]  ;;  %s3009_s1 = sld [smem:[#allocation2_spill]]  ;;  %vm1517_vm8 = vcmask 64512  }
  0x10   : > { %1015 = vmatpush.bf16.msra.mxu1 %v2460_v1  ;;  %2482 = vmatpush.bf16.msra.mxu2 %v2469_v2  ;;  %v2458_v6 = vld [vmem:[%s2992_s6 + $0x28] sm:$0xff]  ;;  %s2635_s21 = scalar_lea.vmem %s3008_s20, %s2623_s25  ;;  %v2441_v8 = vld [vmem:[%s2990_s4 + $0x20] sm:$0xff]  ;;  %v2440_v10 = vld [vmem:[%s2990_s4 + $0x18] sm:$0xff]  ;;  %s2684_s26 = scalar_lea.vmem %s3010_s24, %s2623_s25 }
  0x11   : > { %v2466_v7 = vld [vmem:[%s2635_s21 + $0x28] sm:$0xff]  ;;  %v2457_v9 = vld [vmem:[%s2992_s6 + $0x20] sm:$0xff]  ;;  %v2456_v11 = vld [vmem:[%s2992_s6 + $0x18] sm:$0xff]  ;;  %s2696_s30 = scalar_lea.vmem %s2989_s3, %s2623_s25  ;;  %s2949_s29 = scalar_lea.vmem %s3004_s18, %s2623_s25 }
  0x12   : > { %2332 = vmatmul.msk.bf16.vlgmr.msra.gmra.mxu3 %vm1188_vm0, %v2466_v7  ;;  %v2478_v12 = vld [vmem:[%s2996_s10] sm:$0xff]  ;;  %v2439_v13 = vld [vmem:[%s2990_s4 + $0x10] sm:$0xff]  ;;  %v2438_v16 = vld [vmem:[%s2990_s4 + $0x8] sm:$0xff] }
  0x13   : > { %779 = vmatpush.bf16.msra.mxu0 %v2443_v3  ;;  %v2455_v14 = vld [vmem:[%s2992_s6 + $0x10] sm:$0xff]  ;;  %1417 = vmatpush.bf16.msrb.mxu3 %v2478_v12  ;;  %v2454_v17 = vld [vmem:[%s2992_s6 + $0x8] sm:$0xff]  ;;  %v2437_v18 = vld [vmem:[%s2990_s4] sm:$0xff] }
  0x14   : > { %1016 = vmatpush.bf16.msra.mxu1 %v2459_v4  ;;  %v2467_v15 = vld [vmem:[%s2635_s21 + $0x30] sm:$0xff]  ;;  %v2453_v19 = vld [vmem:[%s2992_s6] sm:$0xff]  ;;  %v2468_v22 = vld [vmem:[%s2635_s21 + $0x38] sm:$0xff] }
  0x15   : > { %s2678_s22 = scalar_lea.vmem %s3009_s1, %s2623_s25  ;;  %v2445_v21 = vld [vmem:[%s2684_s26] sm:$0xff]  ;;  %v2446_v24 = vld [vmem:[%s2684_s26 + $0x8] sm:$0xff]  ;;  %v2447_v27 = vld [vmem:[%s2684_s26 + $0x10] sm:$0xff] }
  0x16   : > { %v2429_v20 = vld [vmem:[%s2678_s22] sm:$0xff]  ;;  %v2430_v23 = vld [vmem:[%s2678_s22 + $0x8] sm:$0xff]  ;;  %v2431_v26 = vld [vmem:[%s2678_s22 + $0x10] sm:$0xff] }
  0x17   : > { %780 = vmatpush.bf16.msra.mxu0 %v2442_v5  ;;  %v2470_v25 = vld [vmem:[%s2696_s30] sm:$0xff]  ;;  %v2471_v28 = vld [vmem:[%s2696_s30 + $0x8] sm:$0xff]  ;;  %v2432_v29 = vld [vmem:[%s2678_s22 + $0x18] sm:$0xff] }
  0x18   : > { %1017 = vmatpush.bf16.msra.mxu1 %v2458_v6  ;;  %v2448_v30 = vld [vmem:[%s2684_s26 + $0x18] sm:$0xff]  ;;  %v2472_v31 = vld [vmem:[%s2696_s30 + $0x10] sm:$0xff]  ;;  %v2433_v33 = vld [vmem:[%s2678_s22 + $0x20] sm:$0xff] }
  0x19   : > { %v2463_v32 = vld [vmem:[%s2635_s21 + $0x10] sm:$0xff]  ;;  %v2449_v34 = vld [vmem:[%s2684_s26 + $0x20] sm:$0xff]  ;;  %v2473_v35 = vld [vmem:[%s2696_s30 + $0x18] sm:$0xff] }
  0x1a   : > { %2329 = vmatmul.msk.bf16.vlgmr.msra.gmra.mxu2 %vm1188_vm0, %v2463_v32  ;;  %v2464_v36 = vld [vmem:[%s2635_s21 + $0x18] sm:$0xff]  ;;  %v2434_v37 = vld [vmem:[%s2678_s22 + $0x28] sm:$0xff]  ;;  %v2474_v39 = vld [vmem:[%s2696_s30 + $0x20] sm:$0xff] }
  0x1b   : > { %781 = vmatpush.bf16.msra.mxu0 %v2441_v8  ;;  %v2450_v38 = vld [vmem:[%s2684_s26 + $0x28] sm:$0xff]  ;;  %v2465_v40 = vld [vmem:[%s2635_s21 + $0x20] sm:$0xff]  ;;  %v2435_v41 = vld [vmem:[%s2678_s22 + $0x30] sm:$0xff] }
  0x1c   : > { %1018 = vmatpush.bf16.msra.mxu1 %v2457_v9  ;;  %v2451_v42 = vld [vmem:[%s2684_s26 + $0x30] sm:$0xff]  ;;  %v2475_v43 = vld [vmem:[%s2696_s30 + $0x28] sm:$0xff]  ;;  %v1516_v44 = vld [vmem:[%s2999_s13] sm:$0xf] }
  0x1d   : > { %v2732_v45 = vld [vmem:[%s2995_s9] ss:$0 sm:$0xff]  ;;  %v1544_v46 = vsel %vm1542_vm1, %v1516_v44, 0  ;;  %v2436_v48 = vld [vmem:[%s2678_s22 + $0x38] sm:$0xff]  ;;  %v2476_v56 = vld [vmem:[%s2696_s30 + $0x30] sm:$0xff] }
  0x1e   : > { %1553 = vmatpush.bf16.msrb.mxu2 %v1544_v46  ;;  %v2452_v49 = vld [vmem:[%s2684_s26 + $0x38] sm:$0xff]  ;;  %v1515_v50 = vld [vmem:[%s2998_s12] sm:$0xf]  ;;  %v2462_v63 = vld [vmem:[%s2635_s21 + $0x8] sm:$0xff] }
  0x1f   : > { %782 = vmatpush.bf16.msra.mxu0 %v2440_v10  ;;  %v1620_v51 = vsel %vm1542_vm1, %v1515_v50, 0  ;;  %v2461_v62 = vld [vmem:[%s2635_s21] sm:$0xff]  ;;  %v2477_v8 = vld [vmem:[%s2696_s30 + $0x38] sm:$0xff] }
  0x20   : > { %1019 = vmatpush.bf16.msra.mxu1 %v2456_v11  ;;  %1629 = vmatpush.bf16.msra.mxu3 %v1620_v51 }
  0x22   : > { %2333 = vmatmul.msk.bf16.gmra.mxu3 %vm1188_vm0, %v2467_v15  ;;  %v2770_v15 = vld [vmem:[%s2991_s5] ss:$0 sm:$0xff] }
  0x23   : > { %783 = vmatpush.bf16.msra.mxu0 %v2439_v13 }
  0x24   : > { %1020 = vmatpush.bf16.msra.mxu1 %v2455_v14 }
  0x27   : > { %784 = vmatpush.bf16.msra.mxu0 %v2438_v16 }
  0x28   : > { %1021 = vmatpush.bf16.msra.mxu1 %v2454_v17 }
  0x2a   : > { %2330 = vmatmul.msk.bf16.gmra.mxu2 %vm1188_vm0, %v2464_v36 }
  0x2b   : > { %785 = vmatpush.bf16.msra.mxu0 %v2437_v18 }
  0x2c   : > { %1022 = vmatpush.bf16.msra.mxu1 %v2453_v19 }
  0x2e   : > { %786 = vmatmul.bf16.vlgmr.msra.gmra.mxu0 %v2429_v20 }
  0x2f   : > { %1220 = vmatpush.bf16.msrb.mxu0 %v2469_v2  ;;  %1023 = vmatmul.bf16.vlgmr.msra.gmra.mxu1 %v2445_v21 }
  0x30   : > { %2481 = vmatpush.bf16.msrb.mxu1 %v2469_v2  ;;  %v2757_v2 = vld [vmem:[%s2993_s7] ss:$0 sm:$0xff] }
  0x32   : > { %2334 = vmatmul.msk.bf16.gmra.mxu3 %vm1188_vm0, %v2468_v22 }
  0x3a   : > { %2331 = vmatmul.msk.bf16.gmra.mxu2 %vm1188_vm0, %v2465_v40 }
  0x3e   : > { %791 = vmatmul.bf16.gmra.mxu0 %v2430_v23 }
  0x3f   : > { %1028 = vmatmul.bf16.gmra.mxu1 %v2446_v24 }
  0x42   : > { %2371 = vmatmul.msk.bf16.vlgmr.msrb.gmra.mxu3 %vm1188_vm0, %v2470_v25 }
  0x4e   : > { %796 = vmatmul.bf16.gmra.mxu0 %v2431_v26 }
  0x4f   : > { %1033 = vmatmul.bf16.gmra.mxu1 %v2447_v27 }
  0x52   : > { %2372 = vmatmul.msk.bf16.gmra.mxu3 %vm1188_vm0, %v2471_v28 }
  0x5e   : > { %801 = vmatmul.bf16.gmra.mxu0 %v2432_v29 }
  0x5f   : > { %1038 = vmatmul.bf16.gmra.mxu1 %v2448_v30 }
  0x62   : > { %2373 = vmatmul.msk.bf16.gmra.mxu3 %vm1188_vm0, %v2472_v31 }
  0x6e   : > { %806 = vmatmul.bf16.gmra.mxu0 %v2433_v33 }
  0x6f   : > { %1043 = vmatmul.bf16.gmra.mxu1 %v2449_v34 }
  0x72   : > { %2374 = vmatmul.msk.bf16.gmra.mxu3 %vm1188_vm0, %v2473_v35 }
  0x7e   : > { %811 = vmatmul.bf16.gmra.mxu0 %v2434_v37 }
  0x7f   : > { %1048 = vmatmul.bf16.gmra.mxu1 %v2450_v38 }
  0x82   : > { %2375 = vmatmul.msk.bf16.gmra.mxu3 %vm1188_vm0, %v2474_v39 }
  0x8e   : > { %816 = vmatmul.bf16.gmra.mxu0 %v2435_v41 }
  0x8f   : > { %1053 = vmatmul.bf16.gmra.mxu1 %v2451_v42 }
  0x92   : > { %2376 = vmatmul.msk.bf16.gmra.mxu3 %vm1188_vm0, %v2475_v43 }
  0x95   : > { %v1247_v47 = vpop.f32.mrf.mxu3 }
  0x96   : > { %v1248_v52 = vadd.f32 %v2732_v45, %v1247_v47 }
  0x98   : > { %v1288_v53 = vmul.f32 0.01, %v1248_v52  ;;  %vm1272_vm2 = vcmp.gt.f32.partialorder %v1248_v52, 0.0 }
  0x9a   : > { %v2744_v57 = vsel %vm1272_vm2, %v1248_v52, %v1288_v53 }
  0x9d   : > { %v1249_v54 = vpop.f32.mrf.mxu3 }
  0x9e   : > { %821 = vmatmul.bf16.gmra.mxu0 %v2436_v48  ;;  %v1250_v55 = vadd.f32 %v2732_v45, %v1249_v54 }
  0x9f   : > { %1058 = vmatmul.bf16.gmra.mxu1 %v2452_v49 }
  0xa0   : > { %vm1273_vm3 = vcmp.gt.f32.partialorder %v1250_v55, 0.0  ;;  %v1289_v58 = vmul.f32 0.01, %v1250_v55 }
  0xa2   : > { %v2746_v59 = vsel %vm1273_vm3, %v1250_v55, %v1289_v58  ;;  %2377 = vmatmul.msk.bf16.gmra.mxu3 %vm1188_vm0, %v2476_v56 }
  0xa3   : > { %v1315_v60 = vpack.c.bf16 %v2746_v59, %v2744_v57 }
  0xa5   : > { %v1252_v61 = vpop.f32.mrf.mxu3 }
  0xa6   : > { %v1253_v0 = vadd.f32 %v2732_v45, %v1252_v61 }
  0xa8   : > { %v1290_v4 = vmul.f32 0.01, %v1253_v0  ;;  %vm1274_vm4 = vcmp.gt.f32.partialorder %v1253_v0, 0.0 }
  0xaa   : > { %v2764_v9 = vsel %vm1274_vm4, %v1253_v0, %v1290_v4 }
  0xab   : > { %v787_v1 = vpop.f32.mrf.mxu0 }
  0xac   : > { %v1024_v3 = vpop.f32.mrf.mxu1  ;;  %v788_v23 = vadd.f32 %v2770_v15, %v787_v1 }
  0xad   : > { %v1025_v5 = vadd.f32 %v2757_v2, %v1024_v3  ;;  %v1254_v6 = vpop.f32.mrf.mxu3 }
  0xae   : > { %2327 = vmatmul.msk.bf16.vlgmr.msrb.gmra.mxu0 %vm1188_vm0, %v2461_v62  ;;  %v1255_v7 = vadd.f32 %v2732_v45, %v1254_v6  ;;  %v843_v29 = vmul.f32 0.01, %v788_v23  ;;  %vm827_vm10 = vcmp.gt.f32.partialorder %v788_v23, 0.0 }
  0xaf   : > { %2328 = vmatmul.msk.bf16.vlgmr.msrb.gmra.mxu1 %vm1188_vm0, %v2462_v63  ;;  %v1080_v10 = vmul.f32 0.01, %v1025_v5  ;;  %vm1064_vm5 = vcmp.gt.f32.partialorder %v1025_v5, 0.0 }
  0xb0   : > { %vm1275_vm6 = vcmp.gt.f32.partialorder %v1255_v7, 0.0  ;;  %v1291_v13 = vmul.f32 0.01, %v1255_v7  ;;  %v859_v34 = vsel %vm827_vm10, %v788_v23, %v843_v29 }
  0xb1   : > { %v1096_v17 = vsel %vm1064_vm5, %v1025_v5, %v1080_v10 }
  0xb2   : > { %v2772_v16 = vsel %vm1275_vm6, %v1255_v7, %v1291_v13  ;;  %2378 = vmatmul.msk.bf16.gmra.mxu3 %vm1188_vm0, %v2477_v8 }
  0xb3   : > { %v789_v11 = vpop.f32.mrf.mxu0  ;;  %v1316_v18 = vpack.c.bf16 %v2772_v16, %v2764_v9 }
  0xb4   : > { %v1026_v12 = vpop.f32.mrf.mxu1  ;;  %v790_v20 = vadd.f32 %v2770_v15, %v789_v11 }
  0xb5   : > { %v1027_v14 = vadd.f32 %v2757_v2, %v1026_v12  ;;  %v1257_v22 = vpop.f32.mrf.mxu3 }
  0xb6   : > { %v1258_v25 = vadd.f32 %v2732_v45, %v1257_v22  ;;  %v844_v28 = vmul.f32 0.01, %v790_v20  ;;  %vm828_vm9 = vcmp.gt.f32.partialorder %v790_v20, 0.0 }
  0xb7   : > { %vm1065_vm7 = vcmp.gt.f32.partialorder %v1027_v14, 0.0  ;;  %v1081_v19 = vmul.f32 0.01, %v1027_v14 }
  0xb8   : > { %v1292_v30 = vmul.f32 0.01, %v1258_v25  ;;  %v860_v32 = vsel %vm828_vm9, %v790_v20, %v844_v28  ;;  %vm1276_vm11 = vcmp.gt.f32.partialorder %v1258_v25, 0.0 }
  0xb9   : > { %v1097_v21 = vsel %vm1065_vm7, %v1027_v14, %v1081_v19  ;;  %v875_v36 = vpack.c.bf16 %v860_v32, %v859_v34 }
  0xba   : > { %v1112_v24 = vpack.c.bf16 %v1097_v21, %v1096_v17  ;;  %v2783_v37 = vsel %vm1276_vm11, %v1258_v25, %v1292_v30 }
  0xbb   : > { %v792_v26 = vpop.f32.mrf.mxu0 }
  0xbc   : > { %v1029_v27 = vpop.f32.mrf.mxu1  ;;  %2379 = vmatmul.msk.bf16.vlgmr.msrb.gmra.mxu2 %vm1517_vm8, %v1112_v24  ;;  %v793_v51 = vadd.f32 %v2770_v15, %v792_v26 }
  0xbd   : > { %v1030_v31 = vadd.f32 %v2757_v2, %v1029_v27  ;;  %v1259_v33 = vpop.f32.mrf.mxu3 }
  0xbe   : > { %v1260_v35 = vadd.f32 %v2732_v45, %v1259_v33  ;;  %v845_v55 = vmul.f32 0.01, %v793_v51  ;;  %vm829_vm0 = vcmp.gt.f32.partialorder %v793_v51, 0.0 }
  0xbf   : > { %v1082_v38 = vmul.f32 0.01, %v1030_v31  ;;  %vm1066_vm12 = vcmp.gt.f32.partialorder %v1030_v31, 0.0 }
  0xc0   : > { %vm1277_vm13 = vcmp.gt.f32.partialorder %v1260_v35, 0.0  ;;  %v1293_v41 = vmul.f32 0.01, %v1260_v35  ;;  %v861_v61 = vsel %vm829_vm0, %v793_v51, %v845_v55  ;;  %v2818_v55 = vld [vmem:[%s2997_s11] ss:$0 sm:$0xff] }
  0xc1   : > { %v1098_v47 = vsel %vm1066_vm12, %v1030_v31, %v1082_v38 }
  0xc2   : > { %v2786_v43 = vsel %vm1277_vm13, %v1260_v35, %v1293_v41  ;;  %2387 = vmatmul.msk.bf16.vlgmr.msra.gmra.mxu3 %vm1517_vm8, %v875_v36 }
  0xc3   : > { %v794_v39 = vpop.f32.mrf.mxu0  ;;  %v1317_v44 = vpack.c.bf16 %v2786_v43, %v2783_v37 }
  0xc4   : > { %v1031_v40 = vpop.f32.mrf.mxu1  ;;  %v795_v48 = vadd.f32 %v2770_v15, %v794_v39 }
  0xc5   : > { %v1032_v42 = vadd.f32 %v2757_v2, %v1031_v40  ;;  %v2796_v4 = vpop.f32.mrf.mxu3 }
  0xc6   : > { %v846_v54 = vmul.f32 0.01, %v795_v48  ;;  %vm830_vm15 = vcmp.gt.f32.partialorder %v795_v48, 0.0 }
  0xc7   : > { %vm1067_vm14 = vcmp.gt.f32.partialorder %v1032_v42, 0.0  ;;  %v1083_v46 = vmul.f32 0.01, %v1032_v42 }
  0xc8   : > { %v862_v58 = vsel %vm830_vm15, %v795_v48, %v846_v54 }
  0xc9   : > { %v1099_v49 = vsel %vm1067_vm14, %v1032_v42, %v1083_v46  ;;  %v876_v1 = vpack.c.bf16 %v862_v58, %v861_v61 }
  0xca   : > { %v1113_v50 = vpack.c.bf16 %v1099_v49, %v1098_v47 }
  0xcb   : > { %v797_v52 = vpop.f32.mrf.mxu0 }
  0xcc   : > { %v1034_v53 = vpop.f32.mrf.mxu1  ;;  %2380 = vmatmul.msk.bf16.gmra.mxu2 %vm1517_vm8, %v1113_v50  ;;  %v798_v11 = vadd.f32 %v2770_v15, %v797_v52 }
  0xcd   : > { %v1035_v56 = vadd.f32 %v2757_v2, %v1034_v53  ;;  %v1421_v20 = vpop.f32.mrf.mxu3 }
  0xce   : > { %v847_v19 = vmul.f32 0.01, %v798_v11  ;;  %vm831_vm5 = vcmp.gt.f32.partialorder %v798_v11, 0.0 }
  0xcf   : > { %v1084_v62 = vmul.f32 0.01, %v1035_v56  ;;  %vm1068_vm2 = vcmp.gt.f32.partialorder %v1035_v56, 0.0 }
  0xd0   : > { %v863_v23 = vsel %vm831_vm5, %v798_v11, %v847_v19 }
  0xd1   : > { %v1100_v6 = vsel %vm1068_vm2, %v1035_v56, %v1084_v62 }
  0xd2   : > { %2388 = vmatmul.msk.bf16.gmra.mxu3 %vm1517_vm8, %v876_v1  ;;  %v1422_v1 = vadd.f32 %v2818_v55, %v1421_v20 }
  0xd3   : > { %v799_v63 = vpop.f32.mrf.mxu0 }
  0xd4   : > { %v1036_v0 = vpop.f32.mrf.mxu1  ;;  %v800_v7 = vadd.f32 %v2770_v15, %v799_v63  ;;  %vm1460_vm0 = vcmp.gt.f32.partialorder %v1422_v1, 0.0 }
  0xd5   : > { %v1037_v3 = vadd.f32 %v2757_v2, %v1036_v0  ;;  %v2806_v33 = vpop.f32.mrf.mxu3  ;;  %v1420_v0 = vadd.f32 %v2818_v55, %v2796_v4 }
  0xd6   : > { %v848_v14 = vmul.f32 0.01, %v800_v7  ;;  %vm832_vm4 = vcmp.gt.f32.partialorder %v800_v7, 0.0 }
  0xd7   : > { %vm1069_vm3 = vcmp.gt.f32.partialorder %v1037_v3, 0.0  ;;  %v1085_v5 = vmul.f32 0.01, %v1037_v3  ;;  %vm1459_vm15 = vcmp.gt.f32.partialorder %v1420_v0, 0.0 }
  0xd8   : > { %v864_v21 = vsel %vm832_vm4, %v800_v7, %v848_v14 }
  0xd9   : > { %v1101_v8 = vsel %vm1069_vm3, %v1037_v3, %v1085_v5  ;;  %v877_v26 = vpack.c.bf16 %v864_v21, %v863_v23 }
  0xda   : > { %v1114_v10 = vpack.c.bf16 %v1101_v8, %v1100_v6  ;;  %v1475_v8 = vmul.f32 0.01, %v1420_v0 }
  0xdb   : > { %v802_v12 = vpop.f32.mrf.mxu0 }
  0xdc   : > { %v1039_v13 = vpop.f32.mrf.mxu1  ;;  %2381 = vmatmul.msk.bf16.gmra.mxu2 %vm1517_vm8, %v1114_v10  ;;  %v803_v34 = vadd.f32 %v2770_v15, %v802_v12  ;;  %v1476_v10 = vmul.f32 0.01, %v1422_v1  ;;  %v1491_v20 = vsel %vm1459_vm15, %v1420_v0, %v1475_v8 }
  0xdd   : > { %v1040_v17 = vadd.f32 %v2757_v2, %v1039_v13  ;;  %v2811_v49 = vpop.f32.mrf.mxu3 }
  0xde   : > { %v849_v40 = vmul.f32 0.01, %v803_v34  ;;  %vm833_vm10 = vcmp.gt.f32.partialorder %v803_v34, 0.0  ;;  %v1492_v21 = vsel %vm1460_vm0, %v1422_v1, %v1476_v10 }
  0xdf   : > { %v1086_v22 = vmul.f32 0.01, %v1040_v17  ;;  %vm1070_vm6 = vcmp.gt.f32.partialorder %v1040_v17, 0.0 }
  0xe0   : > { %v865_v46 = vsel %vm833_vm10, %v803_v34, %v849_v40  ;;  %v1425_v40 = vadd.f32 %v2818_v55, %v2806_v33 }
  0xe1   : > { %v1102_v29 = vsel %vm1070_vm6, %v1040_v17, %v1086_v22 }
  0xe2   : > { %2389 = vmatmul.msk.bf16.gmra.mxu3 %vm1517_vm8, %v877_v26 }
  0xe3   : > { %v804_v24 = vpop.f32.mrf.mxu0 }
  0xe4   : > { %v1041_v25 = vpop.f32.mrf.mxu1  ;;  %v805_v31 = vadd.f32 %v2770_v15, %v804_v24  ;;  %v1764_v24 = vld [vmem:[%s3001_s15] sm:$0xf] }
  0xe5   : > { %v1042_v27 = vadd.f32 %v2757_v2, %v1041_v25  ;;  %v2826_v5 = vpop.f32.mrf.mxu3  ;;  %v1507_v25 = vpack.c.bf16 %v1492_v21, %v1491_v20 }
  0xe6   : > { %v850_v38 = vmul.f32 0.01, %v805_v31  ;;  %vm834_vm9 = vcmp.gt.f32.partialorder %v805_v31, 0.0 }
  0xe7   : > { %vm1071_vm7 = vcmp.gt.f32.partialorder %v1042_v27, 0.0  ;;  %v1087_v28 = vmul.f32 0.01, %v1042_v27 }
  0xe8   : > { %v866_v41 = vsel %vm834_vm9, %v805_v31, %v850_v38 }
  0xe9   : > { %v1103_v30 = vsel %vm1071_vm7, %v1042_v27, %v1087_v28  ;;  %v878_v50 = vpack.c.bf16 %v866_v41, %v865_v46  ;;  %v1790_v27 = vsel %vm1542_vm1, %v1764_v24, 0  ;;  %v1427_v46 = vadd.f32 %v2818_v55, %v2811_v49 }
  0xea   : > { %v1115_v32 = vpack.c.bf16 %v1103_v30, %v1102_v29  ;;  %1799 = vmatpush.bf16.msra.mxu1 %v1790_v27  ;;  %vm1461_vm7 = vcmp.gt.f32.partialorder %v1425_v40, 0.0 }
  0xeb   : > { %v807_v35 = vpop.f32.mrf.mxu0  ;;  %v1478_v33 = vmul.f32 0.01, %v1427_v46 }
  0xec   : > { %v1044_v36 = vpop.f32.mrf.mxu1  ;;  %2382 = vmatmul.msk.bf16.gmra.mxu2 %vm1517_vm8, %v1115_v32  ;;  %v808_v61 = vadd.f32 %v2770_v15, %v807_v35 }
  0xed   : > { %v1045_v39 = vadd.f32 %v2757_v2, %v1044_v36  ;;  %v1431_v26 = vpop.f32.mrf.mxu3  ;;  %2403 = vmatmul.msk.bf16.vlgmr.msra.gmra.mxu1 %vm1517_vm8, %v1507_v25 }
  0xee   : > { %v851_v6 = vmul.f32 0.01, %v808_v61  ;;  %vm835_vm14 = vcmp.gt.f32.partialorder %v808_v61, 0.0 }
  0xef   : > { %v1088_v42 = vmul.f32 0.01, %v1045_v39  ;;  %vm1072_vm11 = vcmp.gt.f32.partialorder %v1045_v39, 0.0 }
  0xf0   : > { %v867_v12 = vsel %vm835_vm14, %v808_v61, %v851_v6 }
  0xf1   : > { %v1104_v53 = vsel %vm1072_vm11, %v1045_v39, %v1088_v42  ;;  %v1671_v39 = vld [vmem:[%s3000_s14] sm:$0xf] }
  0xf2   : > { %2390 = vmatmul.msk.bf16.gmra.mxu3 %vm1517_vm8, %v878_v50  ;;  %v1697_v42 = vsel %vm1542_vm1, %v1671_v39, 0  ;;  %vm1462_vm1 = vcmp.gt.f32.partialorder %v1427_v46, 0.0 }
  0xf3   : > { %v809_v47 = vpop.f32.mrf.mxu0  ;;  %1706 = vmatpush.bf16.msra.mxu0 %v1697_v42  ;;  %v1494_v1 = vsel %vm1462_vm1, %v1427_v46, %v1478_v33 }
  0xf4   : > { %v1046_v48 = vpop.f32.mrf.mxu1  ;;  %v810_v56 = vadd.f32 %v2770_v15, %v809_v47 }
  0xf5   : > { %v1047_v51 = vadd.f32 %v2757_v2, %v1046_v48  ;;  %v2848_v47 = vpop.f32.mrf.mxu3 }
  0xf6   : > { %v852_v3 = vmul.f32 0.01, %v810_v56  ;;  %vm836_vm13 = vcmp.gt.f32.partialorder %v810_v56, 0.0 }
  0xf7   : > { %vm1073_vm12 = vcmp.gt.f32.partialorder %v1047_v51, 0.0  ;;  %v1089_v52 = vmul.f32 0.01, %v1047_v51 }
  0xf8   : > { %v868_v11 = vsel %vm836_vm13, %v810_v56, %v852_v3  ;;  %v1477_v56 = vmul.f32 0.01, %v1425_v40 }
  0xf9   : > { %v1105_v54 = vsel %vm1073_vm12, %v1047_v51, %v1089_v52  ;;  %v879_v4 = vpack.c.bf16 %v868_v11, %v867_v12 }
  0xfa   : > { %v1116_v58 = vpack.c.bf16 %v1105_v54, %v1104_v53 }
  0xfb   : > { %v812_v62 = vpop.f32.mrf.mxu0 }
  0xfc   : > { %v1049_v63 = vpop.f32.mrf.mxu1  ;;  %2383 = vmatmul.msk.bf16.gmra.mxu2 %vm1517_vm8, %v1116_v58  ;;  %v813_v31 = vadd.f32 %v2770_v15, %v812_v62 }
  0xfd   : > { %v1050_v7 = vadd.f32 %v2757_v2, %v1049_v63  ;;  %v1493_v63 = vsel %vm1461_vm7, %v1425_v40, %v1477_v56  ;;  %v1436_v10 = vpop.f32.mrf.mxu3  ;;  %v1435_v40 = vadd.f32 %v2818_v55, %v2848_v47 }
  0xfe   : > { %v853_v36 = vmul.f32 0.01, %v813_v31  ;;  %vm837_vm5 = vcmp.gt.f32.partialorder %v813_v31, 0.0  ;;  %v1508_v8 = vpack.c.bf16 %v1494_v1, %v1493_v63 }
  0xff   : > { %v1090_v13 = vmul.f32 0.01, %v1050_v7  ;;  %vm1074_vm2 = vcmp.gt.f32.partialorder %v1050_v7, 0.0 }
 0x100   : > { %v869_v48 = vsel %vm837_vm5, %v813_v31, %v853_v36  ;;  %2404 = vmatmul.msk.bf16.gmra.mxu1 %vm1517_vm8, %v1508_v8 }
 0x101   : > { %v1106_v23 = vsel %vm1074_vm2, %v1050_v7, %v1090_v13 }
 0x102   : > { %2391 = vmatmul.msk.bf16.gmra.mxu3 %vm1517_vm8, %v879_v4 }
 0x103   : > { %v814_v14 = vpop.f32.mrf.mxu0 }
 0x104   : > { %v1051_v17 = vpop.f32.mrf.mxu1  ;;  %v815_v28 = vadd.f32 %v2770_v15, %v814_v14  ;;  %v1430_v14 = vadd.f32 %v2818_v55, %v2826_v5 }
 0x105   : > { %v1052_v19 = vadd.f32 %v2757_v2, %v1051_v17  ;;  %v1432_v17 = vadd.f32 %v2818_v55, %v1431_v26 }
 0x106   : > { %v854_v35 = vmul.f32 0.01, %v815_v28  ;;  %vm838_vm4 = vcmp.gt.f32.partialorder %v815_v28, 0.0  ;;  %v1479_v25 = vmul.f32 0.01, %v1430_v14  ;;  %vm1463_vm13 = vcmp.gt.f32.partialorder %v1430_v14, 0.0 }
 0x107   : > { %vm1075_vm3 = vcmp.gt.f32.partialorder %v1052_v19, 0.0  ;;  %v1091_v22 = vmul.f32 0.01, %v1052_v19  ;;  %v1480_v27 = vmul.f32 0.01, %v1432_v17  ;;  %vm1464_vm14 = vcmp.gt.f32.partialorder %v1432_v17, 0.0 }
 0x108   : > { %v870_v41 = vsel %vm838_vm4, %v815_v28, %v854_v35  ;;  %v1439_v28 = vpop.f32.mrf.mxu3  ;;  %v1495_v31 = vsel %vm1463_vm13, %v1430_v14, %v1479_v25 }
 0x109   : > { %v1107_v29 = vsel %vm1075_vm3, %v1052_v19, %v1091_v22  ;;  %v880_v53 = vpack.c.bf16 %v870_v41, %v869_v48  ;;  %v1437_v41 = vadd.f32 %v2818_v55, %v1436_v10  ;;  %vm1465_vm3 = vcmp.gt.f32.partialorder %v1435_v40, 0.0 }
 0x10a   : > { %v1117_v30 = vpack.c.bf16 %v1107_v29, %v1106_v23  ;;  %v1440_v8 = vadd.f32 %v2818_v55, %v1439_v28 }
 0x10b   : > { %v817_v32 = vpop.f32.mrf.mxu0  ;;  %vm1466_vm4 = vcmp.gt.f32.partialorder %v1437_v41, 0.0 }
 0x10c   : > { %v1054_v34 = vpop.f32.mrf.mxu1  ;;  %2384 = vmatmul.msk.bf16.gmra.mxu2 %vm1517_vm8, %v1117_v30  ;;  %v818_v3 = vadd.f32 %v2770_v15, %v817_v32  ;;  %v1496_v32 = vsel %vm1464_vm14, %v1432_v17, %v1480_v27  ;;  %vm1467_vm7 = vcmp.gt.f32.partialorder %v1440_v8, 0.0 }
 0x10d   : > { %v1055_v38 = vadd.f32 %v2757_v2, %v1054_v34  ;;  %v1509_v35 = vpack.c.bf16 %v1496_v32, %v1495_v31 }
 0x10e   : > { %v855_v12 = vmul.f32 0.01, %v818_v3  ;;  %vm839_vm11 = vcmp.gt.f32.partialorder %v818_v3, 0.0 }
 0x10f   : > { %v1092_v50 = vmul.f32 0.01, %v1055_v38  ;;  %vm1076_vm6 = vcmp.gt.f32.partialorder %v1055_v38, 0.0 }
 0x110   : > { %v871_v19 = vsel %vm839_vm11, %v818_v3, %v855_v12  ;;  %2405 = vmatmul.msk.bf16.gmra.mxu1 %vm1517_vm8, %v1509_v35  ;;  %v1441_v46 = vpop.f32.mrf.mxu3  ;;  %v1232_v3 = vpop.f32.mrf.mxu2 }
 0x111   : > { %v1108_v49 = vsel %vm1076_vm6, %v1055_v38, %v1092_v50  ;;  %v2480_v38 = vld [vmem:[%s3003_s17 + $0x8] sm:$0xff]  ;;  %v1442_v10 = vadd.f32 %v2818_v55, %v1441_v46  ;;  %v1233_v28 = vadd.f32 %v2732_v45, %v1232_v3  ;;  %v2479_v3 = vld [vmem:[%s3003_s17] sm:$0xff] }
 0x112   : > { %2392 = vmatmul.msk.bf16.gmra.mxu3 %vm1517_vm8, %v880_v53  ;;  %1980 = vmatpush.bf16.msra.mxu2 %v2480_v38 }
 0x113   : > { %v819_v51 = vpop.f32.mrf.mxu0  ;;  %v1484_v14 = vmul.f32 0.01, %v1442_v10  ;;  %v1282_v32 = vmul.f32 0.01, %v1233_v28  ;;  %vm1266_vm11 = vcmp.gt.f32.partialorder %v1233_v28, 0.0 }
 0x114   : > { %v1056_v52 = vpop.f32.mrf.mxu1  ;;  %v820_v61 = vadd.f32 %v2770_v15, %v819_v51  ;;  %v1481_v51 = vmul.f32 0.01, %v1435_v40 }
 0x115   : > { %v1057_v54 = vadd.f32 %v2757_v2, %v1056_v52  ;;  %v1482_v52 = vmul.f32 0.01, %v1437_v41 }
 0x116   : > { %v856_v11 = vmul.f32 0.01, %v820_v61  ;;  %vm840_vm10 = vcmp.gt.f32.partialorder %v820_v61, 0.0  ;;  %1981 = vmatpush.bf16.msra.mxu2 %v2479_v3 }
 0x117   : > { %vm1077_vm9 = vcmp.gt.f32.partialorder %v1057_v54, 0.0  ;;  %v1093_v58 = vmul.f32 0.01, %v1057_v54 }
 0x118   : > { %v872_v4 = vsel %vm840_vm10, %v820_v61, %v856_v11 }
 0x119   : > { %v1109_v62 = vsel %vm1077_vm9, %v1057_v54, %v1093_v58  ;;  %v881_v23 = vpack.c.bf16 %v872_v4, %v871_v19  ;;  %v1497_v58 = vsel %vm1465_vm3, %v1435_v40, %v1481_v51  ;;  %vm1468_vm9 = vcmp.gt.f32.partialorder %v1442_v10, 0.0  ;;  %v1234_v19 = vpop.f32.mrf.mxu2 }
 0x11a   : > { %v1118_v0 = vpack.c.bf16 %v1109_v62, %v1108_v49  ;;  %v1498_v49 = vsel %vm1466_vm4, %v1437_v41, %v1482_v52 }
 0x11b   : > { %v822_v6 = vpop.f32.mrf.mxu0 }
 0x11c   : > { %v1059_v7 = vpop.f32.mrf.mxu1  ;;  %2385 = vmatmul.msk.bf16.gmra.mxu2 %vm1517_vm8, %v1118_v0  ;;  %v823_v36 = vadd.f32 %v2770_v15, %v822_v6  ;;  %v1510_v0 = vpack.c.bf16 %v1498_v49, %v1497_v58  ;;  %v1444_v6 = vpop.f32.mrf.mxu3 }
 0x11d   : > { %v1060_v13 = vadd.f32 %v2757_v2, %v1059_v7 }
 0x11e   : > { %v857_v42 = vmul.f32 0.01, %v823_v36  ;;  %vm841_vm2 = vcmp.gt.f32.partialorder %v823_v36, 0.0 }
 0x11f   : > { %v1094_v20 = vmul.f32 0.01, %v1060_v13  ;;  %vm1078_vm12 = vcmp.gt.f32.partialorder %v1060_v13, 0.0 }
 0x120   : > { %v873_v53 = vsel %vm841_vm2, %v823_v36, %v857_v42  ;;  %2406 = vmatmul.msk.bf16.gmra.mxu1 %vm1517_vm8, %v1510_v0 }
 0x121   : > { %v1110_v29 = vsel %vm1078_vm12, %v1060_v13, %v1094_v20  ;;  %v1483_v13 = vmul.f32 0.01, %v1440_v8 }
 0x122   : > { %2393 = vmatmul.msk.bf16.gmra.mxu3 %vm1517_vm8, %v881_v23 }
 0x123   : > { %v824_v21 = vpop.f32.mrf.mxu0 }
 0x124   : > { %v1061_v22 = vpop.f32.mrf.mxu1  ;;  %v825_v26 = vadd.f32 %v2770_v15, %v824_v21  ;;  %v1446_v20 = vpop.f32.mrf.mxu3  ;;  %v1499_v21 = vsel %vm1467_vm7, %v1440_v8, %v1483_v13 }
 0x125   : > { %v1062_v24 = vadd.f32 %v2757_v2, %v1061_v22  ;;  %v1500_v22 = vsel %vm1468_vm9, %v1442_v10, %v1484_v14 }
 0x126   : > { %v858_v39 = vmul.f32 0.01, %v825_v26  ;;  %vm842_vm0 = vcmp.gt.f32.partialorder %v825_v26, 0.0  ;;  %v1511_v25 = vpack.c.bf16 %v1500_v22, %v1499_v21 }
 0x127   : > { %vm1079_vm15 = vcmp.gt.f32.partialorder %v1062_v24, 0.0  ;;  %v1095_v5 = vmul.f32 0.01, %v1062_v24 }
 0x128   : > { %v874_v48 = vsel %vm842_vm0, %v825_v26, %v858_v39  ;;  %v1447_v26 = vadd.f32 %v2818_v55, %v1446_v20  ;;  %v1298_v39 = vsel %vm1266_vm11, %v1233_v28, %v1282_v32 }
 0x129   : > { %v1111_v30 = vsel %vm1079_vm15, %v1062_v24, %v1095_v5  ;;  %v882_v56 = vpack.c.bf16 %v874_v48, %v873_v53  ;;  %v1235_v5 = vadd.f32 %v2732_v45, %v1234_v19 }
 0x12a   : > { %v1119_v34 = vpack.c.bf16 %v1111_v30, %v1110_v29  ;;  %v1445_v29 = vadd.f32 %v2818_v55, %v1444_v6  ;;  %v1237_v30 = vpop.f32.mrf.mxu2  ;;  %v1486_v36 = vmul.f32 0.01, %v1447_v26  ;;  %vm1470_vm14 = vcmp.gt.f32.partialorder %v1447_v26, 0.0 }
 0x12b   : > { %v1222_v2 = vpop.f32.mrf.mxu0  ;;  %vm1267_vm12 = vcmp.gt.f32.partialorder %v1235_v5, 0.0  ;;  %v1238_v48 = vadd.f32 %v2732_v45, %v1237_v30 }
 0x12c   : > { %2386 = vmatmul.msk.bf16.gmra.mxu2 %vm1517_vm8, %v1119_v34  ;;  %v1223_v15 = vadd.f32 %v2732_v45, %v1222_v2  ;;  %v1227_v50 = vpop.f32.mrf.mxu1  ;;  %v1449_v31 = vpop.f32.mrf.mxu3  ;;  %v1283_v34 = vmul.f32 0.01, %v1235_v5  ;;  %v1485_v35 = vmul.f32 0.01, %v1445_v29  ;;  %vm1469_vm13 = vcmp.gt.f32.partialorder %v1445_v29, 0.0 }
 0x12d   : > { %v1228_v11 = vadd.f32 %v2732_v45, %v1227_v50  ;;  %v1502_v38 = vsel %vm1470_vm14, %v1447_v26, %v1486_v36  ;;  %v1450_v51 = vadd.f32 %v2818_v55, %v1449_v31  ;;  %v1284_v53 = vmul.f32 0.01, %v1238_v48 }
 0x12e   : > { %v1278_v33 = vmul.f32 0.01, %v1223_v15  ;;  %vm1262_vm5 = vcmp.gt.f32.partialorder %v1223_v15, 0.0  ;;  %v1501_v2 = vsel %vm1469_vm13, %v1445_v29, %v1485_v35  ;;  %v1299_v40 = vsel %vm1267_vm12, %v1235_v5, %v1283_v34 }
 0x12f   : > { %v1280_v17 = vmul.f32 0.01, %v1228_v11  ;;  %vm1264_vm1 = vcmp.gt.f32.partialorder %v1228_v11, 0.0  ;;  %v1512_v41 = vpack.c.bf16 %v1502_v38, %v1501_v2  ;;  %v1312_v46 = vpack.c.bf16 %v1299_v40, %v1298_v39 }
 0x130   : > { %v1294_v62 = vsel %vm1262_vm5, %v1223_v15, %v1278_v33  ;;  %2407 = vmatmul.msk.bf16.gmra.mxu1 %vm1517_vm8, %v1511_v25  ;;  %vm1268_vm15 = vcmp.gt.f32.partialorder %v1238_v48, 0.0  ;;  %vm1471_vm2 = vcmp.gt.f32.partialorder %v1450_v51, 0.0 }
 0x131   : > { %v1296_v23 = vsel %vm1264_vm1, %v1228_v11, %v1280_v17  ;;  %v1300_v49 = vsel %vm1268_vm15, %v1238_v48, %v1284_v53  ;;  %vm1949_vm1 = vcmask 261120  }
 0x132   : > { %2394 = vmatmul.msk.bf16.gmra.mxu3 %vm1517_vm8, %v882_v56  ;;  %v1239_v42 = vpop.f32.mrf.mxu2  ;;  %v1487_v56 = vmul.f32 0.01, %v1450_v51 }
 0x133   : > { %v1224_v54 = vpop.f32.mrf.mxu0  ;;  %v1240_v50 = vadd.f32 %v2732_v45, %v1239_v42 }
 0x134   : > { %v1225_v47 = vadd.f32 %v2732_v45, %v1224_v54  ;;  %v1229_v7 = vpop.f32.mrf.mxu1  ;;  %v1451_v15 = vpop.f32.mrf.mxu3 }
 0x135   : > { %v1230_v12 = vadd.f32 %v2732_v45, %v1229_v7  ;;  %v1452_v52 = vadd.f32 %v2818_v55, %v1451_v15  ;;  %v1285_v54 = vmul.f32 0.01, %v1240_v50  ;;  %vm1269_vm0 = vcmp.gt.f32.partialorder %v1240_v50, 0.0 }
 0x136   : > { %vm1263_vm6 = vcmp.gt.f32.partialorder %v1225_v47, 0.0  ;;  %v1279_v61 = vmul.f32 0.01, %v1225_v47 }
 0x137   : > { %v1281_v4 = vmul.f32 0.01, %v1230_v12  ;;  %vm1265_vm10 = vcmp.gt.f32.partialorder %v1230_v12, 0.0  ;;  %v1488_v33 = vmul.f32 0.01, %v1452_v52  ;;  %vm1472_vm3 = vcmp.gt.f32.partialorder %v1452_v52, 0.0 }
 0x138   : > { %v1295_v63 = vsel %vm1263_vm6, %v1225_v47, %v1279_v61  ;;  %v1301_v61 = vsel %vm1269_vm0, %v1240_v50, %v1285_v54 }
 0x139   : > { %v1310_v1 = vpack.c.bf16 %v1295_v63, %v1294_v62  ;;  %v1297_v24 = vsel %vm1265_vm10, %v1230_v12, %v1281_v4  ;;  %v1503_v62 = vsel %vm1471_vm2, %v1450_v51, %v1487_v56  ;;  %v1504_v63 = vsel %vm1472_vm3, %v1452_v52, %v1488_v33 }
 0x13a   : > { %v1311_v27 = vpack.c.bf16 %v1297_v24, %v1296_v23  ;;  %v1242_v47 = vpop.f32.mrf.mxu2  ;;  %v1313_v0 = vpack.c.bf16 %v1301_v61, %v1300_v49 }
 0x13b   : > { %2395 = vmatmul.msk.bf16.vlgmr.msra.gmra.mxu0 %vm1517_vm8, %v1310_v1  ;;  %v1513_v1 = vpack.c.bf16 %v1504_v63, %v1503_v62  ;;  %v1243_v6 = vadd.f32 %v2732_v45, %v1242_v47 }
 0x13c   : > { %v1454_v58 = vpop.f32.mrf.mxu3 }
 0x13d   : > { %v1455_v11 = vadd.f32 %v2818_v55, %v1454_v58  ;;  %v1286_v13 = vmul.f32 0.01, %v1243_v6  ;;  %vm1270_vm4 = vcmp.gt.f32.partialorder %v1243_v6, 0.0 }
 0x13f   : > { %v1489_v17 = vmul.f32 0.01, %v1455_v11  ;;  %vm1473_vm6 = vcmp.gt.f32.partialorder %v1455_v11, 0.0  ;;  %v1302_v19 = vsel %vm1270_vm4, %v1243_v6, %v1286_v13 }
 0x140   : > { %2408 = vmatmul.msk.bf16.gmra.mxu1 %vm1517_vm8, %v1512_v41 }
 0x141   : > { %v1505_v21 = vsel %vm1473_vm6, %v1455_v11, %v1489_v17 }
 0x142   : > { %v1244_v7 = vpop.f32.mrf.mxu2 }
 0x143   : > { %v1245_v10 = vadd.f32 %v2732_v45, %v1244_v7 }
 0x144   : > { %v1456_v8 = vpop.f32.mrf.mxu3 }
 0x145   : > { %v1457_v12 = vadd.f32 %v2818_v55, %v1456_v8  ;;  %v1287_v14 = vmul.f32 0.01, %v1245_v10  ;;  %vm1271_vm5 = vcmp.gt.f32.partialorder %v1245_v10, 0.0 }
 0x147   : > { %v1490_v4 = vmul.f32 0.01, %v1457_v12  ;;  %vm1474_vm7 = vcmp.gt.f32.partialorder %v1457_v12, 0.0  ;;  %v1303_v20 = vsel %vm1271_vm5, %v1245_v10, %v1287_v14 }
 0x148   : > { %v1314_v23 = vpack.c.bf16 %v1303_v20, %v1302_v19 }
 0x149   : > { %v1506_v22 = vsel %vm1474_vm7, %v1457_v12, %v1490_v4 }
 0x14a   : > { %v1514_v24 = vpack.c.bf16 %v1506_v22, %v1505_v21  ;;  %v1555_v55 = vpop.f32.mrf.mxu2 }
 0x14b   : > { %2396 = vmatmul.msk.bf16.gmra.mxu0 %vm1517_vm8, %v1311_v27 }
 0x14c   : > { %v1631_v45 = vpop.f32.mrf.mxu3 }
 0x14d   : > { %v1632_v30 = vadd.f32 %v1631_v45, %v1555_v55 }
 0x150   : > { %2409 = vmatmul.msk.bf16.gmra.mxu1 %vm1517_vm8, %v1513_v1 }
 0x152   : > { %v1557_v28 = vpop.f32.mrf.mxu2 }
 0x154   : > { %v1633_v27 = vpop.f32.mrf.mxu3 }
 0x155   : > { %v1634_v35 = vadd.f32 %v1633_v27, %v1557_v28 }
 0x15a   : > { %v1560_v57 = vpop.f32.mrf.mxu2 }
 0x15b   : > { %2397 = vmatmul.msk.bf16.gmra.mxu0 %vm1517_vm8, %v1312_v46 }
 0x15c   : > { %v1636_v29 = vpop.f32.mrf.mxu3 }
 0x15d   : > { %v1637_v41 = vadd.f32 %v1636_v29, %v1560_v57 }
 0x160   : > { %2410 = vmatmul.msk.bf16.gmra.mxu1 %vm1517_vm8, %v1514_v24 }
 0x162   : > { %v1562_v26 = vpop.f32.mrf.mxu2 }
 0x16a   : > { %v1801_v25 = vpop.f32.mrf.mxu1  ;;  %v1565_v36 = vpop.f32.mrf.mxu2 }
 0x16b   : > { %2398 = vmatmul.msk.bf16.gmra.mxu0 %vm1517_vm8, %v1313_v0 }
 0x172   : > { %v1803_v5 = vpop.f32.mrf.mxu1  ;;  %v1567_v52 = vpop.f32.mrf.mxu2 }
 0x17a   : > { %v1570_v63 = vpop.f32.mrf.mxu2 }
 0x17b   : > { %2399 = vmatmul.msk.bf16.gmra.mxu0 %vm1517_vm8, %v1314_v23 }
 0x17d   : > { %v1806_v59 = vpop.f32.mrf.mxu1 }
 0x182   : > { %v1572_v4 = vpop.f32.mrf.mxu2 }
 0x185   : > { %v1808_v9 = vpop.f32.mrf.mxu1 }
 0x18b   : > { %2400 = vmatmul.msk.bf16.gmra.mxu0 %vm1517_vm8, %v1315_v60  ;;  %v1638_v60 = vpop.f32.mrf.mxu3 }
 0x18c   : > { %v1639_v33 = vadd.f32 %v1638_v60, %v1562_v26 }
 0x18d   : > { %v1811_v38 = vpop.f32.mrf.mxu1 }
 0x193   : > { %v1641_v34 = vpop.f32.mrf.mxu3 }
 0x194   : > { %v1642_v3 = vadd.f32 %v1641_v34, %v1565_v36 }
 0x195   : > { %v1813_v56 = vpop.f32.mrf.mxu1 }
 0x19b   : > { %2401 = vmatmul.msk.bf16.gmra.mxu0 %vm1517_vm8, %v1316_v18  ;;  %v2919_v18 = vld [vmem:[%s3002_s16] ss:$0 sm:$0xff]  ;;  %v1643_v15 = vpop.f32.mrf.mxu3 }
 0x19c   : > { %v1644_v19 = vadd.f32 %v1643_v15, %v1567_v52 }
 0x19d   : > { %v1816_v8 = vpop.f32.mrf.mxu1 }
 0x1a3   : > { %v1646_v61 = vpop.f32.mrf.mxu3 }
 0x1a4   : > { %v1647_v27 = vadd.f32 %v1646_v61, %v1570_v63 }
 0x1a5   : > { %v1818_v23 = vpop.f32.mrf.mxu1 }
 0x1ab   : > { %2402 = vmatmul.msk.bf16.gmra.mxu0 %vm1517_vm8, %v1317_v44  ;;  %v1648_v14 = vpop.f32.mrf.mxu3 }
 0x1b8   : > { %v1708_v31 = vpop.f32.mrf.mxu0 }
 0x1b9   : > { %v1748_v32 = vadd.f32 %v1708_v31, %v1632_v30  ;;  %v1821_v30 = vpop.f32.mrf.mxu1 }
 0x1bb   : > { %v1841_v16 = vadd.f32 %v1801_v25, %v1748_v32  ;;  %v1651_v25 = vpop.f32.mrf.mxu3  ;;  %v1649_v32 = vadd.f32 %v1648_v14, %v1572_v4 }
 0x1bd   : > { %v1861_v43 = vadd.f32 %v2919_v18, %v1841_v16 }
 0x1bf   : > { %v1893_v39 = vmul.f32 0.01, %v1861_v43  ;;  %vm1877_vm8 = vcmp.gt.f32.partialorder %v1861_v43, 0.0 }
 0x1c0   : > { %v1710_v37 = vpop.f32.mrf.mxu0 }
 0x1c1   : > { %v1749_v44 = vadd.f32 %v1710_v37, %v1634_v35  ;;  %v1909_v48 = vsel %vm1877_vm8, %v1861_v43, %v1893_v39 }
 0x1c3   : > { %v1842_v2 = vadd.f32 %v1803_v5, %v1749_v44  ;;  %v1575_v5 = vpop.f32.mrf.mxu2 }
 0x1c5   : > { %v1862_v40 = vadd.f32 %v2919_v18, %v1842_v2  ;;  %v1823_v2 = vpop.f32.mrf.mxu1 }
 0x1c7   : > { %vm1878_vm9 = vcmp.gt.f32.partialorder %v1862_v40, 0.0  ;;  %v1894_v42 = vmul.f32 0.01, %v1862_v40 }
 0x1c8   : > { %v1713_v46 = vpop.f32.mrf.mxu0 }
 0x1c9   : > { %v1910_v50 = vsel %vm1878_vm9, %v1862_v40, %v1894_v42  ;;  %v1750_v51 = vadd.f32 %v1713_v46, %v1637_v41  ;;  %vm2039_vm9 = vcmask 257024  }
 0x1ca   : > { %v1925_v53 = vpack.c.bf16 %v1910_v50, %v1909_v48 }
 0x1cb   : > { %v1843_v54 = vadd.f32 %v1806_v59, %v1750_v51  ;;  %v1577_v36 = vpop.f32.mrf.mxu2 }
 0x1cc   : > { %2419 = vmatmul.msk.bf16.vlgmr.msra.gmra.mxu2 %vm1949_vm1, %v1925_v53 }
 0x1cd   : > { %v1863_v58 = vadd.f32 %v2919_v18, %v1843_v54  ;;  %v1826_v53 = vpop.f32.mrf.mxu1 }
 0x1cf   : > { %v1895_v0 = vmul.f32 0.01, %v1863_v58  ;;  %vm1879_vm10 = vcmp.gt.f32.partialorder %v1863_v58, 0.0 }
 0x1d0   : > { %v1715_v47 = vpop.f32.mrf.mxu0 }
 0x1d1   : > { %v1751_v49 = vadd.f32 %v1715_v47, %v1639_v33  ;;  %v1911_v11 = vsel %vm1879_vm10, %v1863_v58, %v1895_v0 }
 0x1d3   : > { %v1844_v62 = vadd.f32 %v1808_v9, %v1751_v49  ;;  %v1653_v9 = vpop.f32.mrf.mxu3  ;;  %v1580_v50 = vpop.f32.mrf.mxu2 }
 0x1d4   : > { %v1654_v52 = vadd.f32 %v1653_v9, %v1577_v36 }
 0x1d5   : > { %v1864_v1 = vadd.f32 %v2919_v18, %v1844_v62 }
 0x1d7   : > { %vm1880_vm11 = vcmp.gt.f32.partialorder %v1864_v1, 0.0  ;;  %v1896_v6 = vmul.f32 0.01, %v1864_v1 }
 0x1d8   : > { %v1718_v7 = vpop.f32.mrf.mxu0 }
 0x1d9   : > { %v1752_v10 = vadd.f32 %v1718_v7, %v1642_v3  ;;  %v1912_v12 = vsel %vm1880_vm11, %v1864_v1, %v1896_v6 }
 0x1da   : > { %v1926_v13 = vpack.c.bf16 %v1912_v12, %v1911_v11 }
 0x1db   : > { %v1845_v17 = vadd.f32 %v1811_v38, %v1752_v10  ;;  %v1652_v38 = vadd.f32 %v1651_v25, %v1575_v5  ;;  %v1656_v46 = vpop.f32.mrf.mxu3  ;;  %v1582_v62 = vpop.f32.mrf.mxu2 }
 0x1dc   : > { %2420 = vmatmul.msk.bf16.gmra.mxu2 %vm1949_vm1, %v1926_v13  ;;  %v1657_v63 = vadd.f32 %v1656_v46, %v1580_v50 }
 0x1dd   : > { %v1865_v21 = vadd.f32 %v2919_v18, %v1845_v17 }
 0x1df   : > { %v1897_v45 = vmul.f32 0.01, %v1865_v21  ;;  %vm1881_vm12 = vcmp.gt.f32.partialorder %v1865_v21, 0.0 }
 0x1e0   : > { %v1720_v20 = vpop.f32.mrf.mxu0 }
 0x1e1   : > { %v1753_v22 = vadd.f32 %v1720_v20, %v1644_v19  ;;  %v1913_v59 = vsel %vm1881_vm12, %v1865_v21, %v1897_v45 }
 0x1e3   : > { %v1846_v24 = vadd.f32 %v1813_v56, %v1753_v22  ;;  %v1658_v58 = vpop.f32.mrf.mxu3  ;;  %v1585_v14 = vpop.f32.mrf.mxu2 }
 0x1e4   : > { %v1659_v13 = vadd.f32 %v1658_v58, %v1582_v62 }
 0x1e5   : > { %v1866_v55 = vadd.f32 %v2919_v18, %v1846_v24 }
 0x1e7   : > { %vm1882_vm13 = vcmp.gt.f32.partialorder %v1866_v55, 0.0  ;;  %v1898_v28 = vmul.f32 0.01, %v1866_v55 }
 0x1e8   : > { %v1723_v29 = vpop.f32.mrf.mxu0 }
 0x1e9   : > { %v1754_v57 = vadd.f32 %v1723_v29, %v1647_v27  ;;  %v1914_v60 = vsel %vm1882_vm13, %v1866_v55, %v1898_v28 }
 0x1ea   : > { %v1927_v26 = vpack.c.bf16 %v1914_v60, %v1913_v59 }
 0x1eb   : > { %v1847_v31 = vadd.f32 %v1816_v8, %v1754_v57  ;;  %v1828_v8 = vpop.f32.mrf.mxu1  ;;  %v1661_v12 = vpop.f32.mrf.mxu3 }
 0x1ec   : > { %2421 = vmatmul.msk.bf16.gmra.mxu2 %vm1949_vm1, %v1927_v26  ;;  %v1662_v24 = vadd.f32 %v1661_v12, %v1585_v14  ;;  %v1587_v29 = vpop.f32.mrf.mxu2 }
 0x1ed   : > { %v1867_v34 = vadd.f32 %v2919_v18, %v1847_v31 }
 0x1ef   : > { %v1899_v43 = vmul.f32 0.01, %v1867_v34  ;;  %vm1883_vm14 = vcmp.gt.f32.partialorder %v1867_v34, 0.0 }
 0x1f0   : > { %v1725_v16 = vpop.f32.mrf.mxu0 }
 0x1f1   : > { %v1755_v35 = vadd.f32 %v1725_v16, %v1649_v32  ;;  %v1915_v42 = vsel %vm1883_vm14, %v1867_v34, %v1899_v43 }
 0x1f3   : > { %v1848_v37 = vadd.f32 %v1818_v23, %v1755_v35  ;;  %v1831_v21 = vpop.f32.mrf.mxu1  ;;  %v1663_v55 = vpop.f32.mrf.mxu3 }
 0x1f4   : > { %v1664_v26 = vadd.f32 %v1663_v55, %v1587_v29  ;;  %v1590_v34 = vpop.f32.mrf.mxu2 }
 0x1f5   : > { %v1868_v44 = vadd.f32 %v2919_v18, %v1848_v37 }
 0x1f7   : > { %vm1884_vm15 = vcmp.gt.f32.partialorder %v1868_v44, 0.0  ;;  %v1900_v39 = vmul.f32 0.01, %v1868_v44 }
 0x1f8   : > { %v1728_v40 = vpop.f32.mrf.mxu0 }
 0x1f9   : > { %v1756_v41 = vadd.f32 %v1728_v40, %v1652_v38  ;;  %v1916_v15 = vsel %vm1884_vm15, %v1868_v44, %v1900_v39 }
 0x1fa   : > { %v1928_v48 = vpack.c.bf16 %v1916_v15, %v1915_v42 }
 0x1fb   : > { %v1849_v51 = vadd.f32 %v1821_v30, %v1756_v41  ;;  %v1833_v60 = vpop.f32.mrf.mxu1  ;;  %v1666_v9 = vpop.f32.mrf.mxu3 }
 0x1fc   : > { %2422 = vmatmul.msk.bf16.gmra.mxu2 %vm1949_vm1, %v1928_v48  ;;  %v1667_v37 = vadd.f32 %v1666_v9, %v1590_v34  ;;  %v1592_v46 = vpop.f32.mrf.mxu2 }
 0x1fd   : > { %v1869_v56 = vadd.f32 %v2919_v18, %v1849_v51 }
 0x1ff   : > { %v1901_v49 = vmul.f32 0.01, %v1869_v56  ;;  %vm1885_vm0 = vcmp.gt.f32.partialorder %v1869_v56, 0.0 }
 0x200   : > { %v1730_v54 = vpop.f32.mrf.mxu0 }
 0x201   : > { %v1757_v33 = vadd.f32 %v1730_v54, %v1654_v52  ;;  %v1917_v6 = vsel %vm1885_vm0, %v1869_v56, %v1901_v49 }
 0x203   : > { %v1850_v47 = vadd.f32 %v1823_v2, %v1757_v33  ;;  %v1836_v44 = vpop.f32.mrf.mxu1  ;;  %v1668_v42 = vpop.f32.mrf.mxu3 }
 0x204   : > { %v1669_v48 = vadd.f32 %v1668_v42, %v1592_v46 }
 0x205   : > { %v1870_v61 = vadd.f32 %v2919_v18, %v1850_v47 }
 0x207   : > { %vm1886_vm2 = vcmp.gt.f32.partialorder %v1870_v61, 0.0  ;;  %v1902_v0 = vmul.f32 0.01, %v1870_v61 }
 0x208   : > { %v1733_v1 = vpop.f32.mrf.mxu0 }
 0x209   : > { %v1758_v3 = vadd.f32 %v1733_v1, %v1657_v63  ;;  %v1918_v7 = vsel %vm1886_vm2, %v1870_v61, %v1902_v0 }
 0x20a   : > { %v1929_v10 = vpack.c.bf16 %v1918_v7, %v1917_v6 }
 0x20b   : > { %v1851_v11 = vadd.f32 %v1826_v53, %v1758_v3  ;;  %v1838_v53 = vpop.f32.mrf.mxu1 }
 0x20c   : > { %2423 = vmatmul.msk.bf16.gmra.mxu2 %vm1949_vm1, %v1929_v10 }
 0x20d   : > { %v1871_v4 = vadd.f32 %v2919_v18, %v1851_v11 }
 0x20f   : > { %v1903_v22 = vmul.f32 0.01, %v1871_v4  ;;  %vm1887_vm3 = vcmp.gt.f32.partialorder %v1871_v4, 0.0 }
 0x210   : > { %v1735_v17 = vpop.f32.mrf.mxu0 }
 0x211   : > { %v1759_v19 = vadd.f32 %v1735_v17, %v1659_v13  ;;  %v1919_v28 = vsel %vm1887_vm3, %v1871_v4, %v1903_v22 }
 0x213   : > { %v1852_v20 = vadd.f32 %v1828_v8, %v1759_v19 }
 0x215   : > { %v1872_v23 = vadd.f32 %v2919_v18, %v1852_v20 }
 0x217   : > { %vm1888_vm4 = vcmp.gt.f32.partialorder %v1872_v23, 0.0  ;;  %v1904_v45 = vmul.f32 0.01, %v1872_v23 }
 0x218   : > { %v1738_v25 = vpop.f32.mrf.mxu0 }
 0x219   : > { %v1760_v27 = vadd.f32 %v1738_v25, %v1662_v24  ;;  %v1920_v5 = vsel %vm1888_vm4, %v1872_v23, %v1904_v45 }
 0x21a   : > { %v1930_v57 = vpack.c.bf16 %v1920_v5, %v1919_v28 }
 0x21b   : > { %v1853_v59 = vadd.f32 %v1831_v21, %v1760_v27 }
 0x21c   : > { %2424 = vmatmul.msk.bf16.gmra.mxu2 %vm1949_vm1, %v1930_v57 }
 0x21d   : > { %v1873_v31 = vadd.f32 %v2919_v18, %v1853_v59 }
 0x21f   : > { %v1905_v35 = vmul.f32 0.01, %v1873_v31  ;;  %vm1889_vm5 = vcmp.gt.f32.partialorder %v1873_v31, 0.0 }
 0x220   : > { %v1740_v30 = vpop.f32.mrf.mxu0 }
 0x221   : > { %v1761_v32 = vadd.f32 %v1740_v30, %v1664_v26  ;;  %v1921_v39 = vsel %vm1889_vm5, %v1873_v31, %v1905_v35 }
 0x223   : > { %v1854_v16 = vadd.f32 %v1833_v60, %v1761_v32 }
 0x225   : > { %v1874_v36 = vadd.f32 %v2919_v18, %v1854_v16 }
 0x227   : > { %vm1890_vm6 = vcmp.gt.f32.partialorder %v1874_v36, 0.0  ;;  %v1906_v43 = vmul.f32 0.01, %v1874_v36 }
 0x228   : > { %v1743_v2 = vpop.f32.mrf.mxu0 }
 0x229   : > { %v1762_v38 = vadd.f32 %v1743_v2, %v1667_v37  ;;  %v1922_v40 = vsel %vm1890_vm6, %v1874_v36, %v1906_v43 }
 0x22a   : > { %v1931_v41 = vpack.c.bf16 %v1922_v40, %v1921_v39 }
 0x22b   : > { %v1855_v15 = vadd.f32 %v1836_v44, %v1762_v38 }
 0x22c   : > { %2425 = vmatmul.msk.bf16.gmra.mxu2 %vm1949_vm1, %v1931_v41 }
 0x22d   : > { %v1875_v51 = vadd.f32 %v2919_v18, %v1855_v15 }
 0x22f   : > { %v1907_v56 = vmul.f32 0.01, %v1875_v51  ;;  %vm1891_vm7 = vcmp.gt.f32.partialorder %v1875_v51, 0.0 }
 0x230   : > { %v1745_v50 = vpop.f32.mrf.mxu0 }
 0x231   : > { %v1763_v52 = vadd.f32 %v1745_v50, %v1669_v48  ;;  %v1923_v58 = vsel %vm1891_vm7, %v1875_v51, %v1907_v56 }
 0x233   : > { %v1856_v54 = vadd.f32 %v1838_v53, %v1763_v52 }
 0x235   : > { %v1876_v33 = vadd.f32 %v2919_v18, %v1856_v54 }
 0x237   : > { %vm1892_vm8 = vcmp.gt.f32.partialorder %v1876_v33, 0.0  ;;  %v1908_v47 = vmul.f32 0.01, %v1876_v33 }
 0x239   : > { %v1924_v49 = vsel %vm1892_vm8, %v1876_v33, %v1908_v47 }
 0x23a   : > { %v1932_v61 = vpack.c.bf16 %v1924_v49, %v1923_v58 }
 0x23c   : > { %2426 = vmatmul.msk.bf16.gmra.mxu2 %vm1949_vm1, %v1932_v61 }
 0x24f   : > { %v1983_v62 = vpop.f32.mrf.mxu2 }
 0x250   : > { %v2023_v18 = vpack.c.bf16 %v1983_v62, %v1983_v62 }
 0x252   : > { %2040 = vst.msk [vmem:[%s2949_s29] sm:$0xf] %vm2039_vm9, %v2023_v18 }
 0x257   : > { %v1985_v63 = vpop.f32.mrf.mxu2 }
 0x258   : > { %v2024_v0 = vpack.c.bf16 %v1985_v63, %v1985_v63 }
 0x25a   : > { %2041 = vst.msk [vmem:[%s2949_s29 + $0x4] sm:$0xf] %vm2039_vm9, %v2024_v0 }
 0x25f   : > { %v1988_v1 = vpop.f32.mrf.mxu2 }
 0x260   : > { %v2025_v3 = vpack.c.bf16 %v1988_v1, %v1988_v1 }
 0x262   : > { %2042 = vst.msk [vmem:[%s2949_s29 + $0x8] sm:$0xf] %vm2039_vm9, %v2025_v3 }
 0x267   : > { %v1990_v6 = vpop.f32.mrf.mxu2 }
 0x268   : > { %v2026_v7 = vpack.c.bf16 %v1990_v6, %v1990_v6 }
 0x26a   : > { %2043 = vst.msk [vmem:[%s2949_s29 + $0xc] sm:$0xf] %vm2039_vm9, %v2026_v7 }
 0x26f   : > { %v1993_v8 = vpop.f32.mrf.mxu2 }
 0x270   : > { %v2027_v10 = vpack.c.bf16 %v1993_v8, %v1993_v8 }
 0x272   : > { %2044 = vst.msk [vmem:[%s2949_s29 + $0x10] sm:$0xf] %vm2039_vm9, %v2027_v10 }
 0x277   : > { %v1995_v11 = vpop.f32.mrf.mxu2 }
 0x278   : > { %v2028_v12 = vpack.c.bf16 %v1995_v11, %v1995_v11 }
 0x27a   : > { %2045 = vst.msk [vmem:[%s2949_s29 + $0x14] sm:$0xf] %vm2039_vm9, %v2028_v12 }
 0x27f   : > { %v1998_v13 = vpop.f32.mrf.mxu2 }
 0x280   : > { %v2029_v14 = vpack.c.bf16 %v1998_v13, %v1998_v13 }
 0x282   : > { %2046 = vst.msk [vmem:[%s2949_s29 + $0x18] sm:$0xf] %vm2039_vm9, %v2029_v14 }
 0x287   : > { %v2000_v17 = vpop.f32.mrf.mxu2 }
 0x288   : > { %v2030_v4 = vpack.c.bf16 %v2000_v17, %v2000_v17 }
 0x28a   : > { %2047 = vst.msk [vmem:[%s2949_s29 + $0x1c] sm:$0xf] %vm2039_vm9, %v2030_v4 }
 0x28f   : > { %v2003_v19 = vpop.f32.mrf.mxu2 }
 0x290   : > { %v2031_v20 = vpack.c.bf16 %v2003_v19, %v2003_v19 }
 0x292   : > { %2048 = vst.msk [vmem:[%s2949_s29 + $0x20] sm:$0xf] %vm2039_vm9, %v2031_v20 }
 0x297   : > { %v2005_v21 = vpop.f32.mrf.mxu2 }
 0x298   : > { %v2032_v22 = vpack.c.bf16 %v2005_v21, %v2005_v21 }
 0x29a   : > { %2049 = vst.msk [vmem:[%s2949_s29 + $0x24] sm:$0xf] %vm2039_vm9, %v2032_v22 }
 0x29f   : > { %v2008_v23 = vpop.f32.mrf.mxu2 }
 0x2a0   : > { %v2033_v24 = vpack.c.bf16 %v2008_v23, %v2008_v23 }
 0x2a2   : > { %2050 = vst.msk [vmem:[%s2949_s29 + $0x28] sm:$0xf] %vm2039_vm9, %v2033_v24 }
 0x2a7   : > { %v2010_v45 = vpop.f32.mrf.mxu2 }
 0x2a8   : > { %v2034_v55 = vpack.c.bf16 %v2010_v45, %v2010_v45 }
 0x2aa   : > { %2051 = vst.msk [vmem:[%s2949_s29 + $0x2c] sm:$0xf] %vm2039_vm9, %v2034_v55 }
 0x2af   : > { %v2013_v25 = vpop.f32.mrf.mxu2 }
 0x2b0   : > { %v2035_v27 = vpack.c.bf16 %v2013_v25, %v2013_v25 }
 0x2b2   : > { %2052 = vst.msk [vmem:[%s2949_s29 + $0x30] sm:$0xf] %vm2039_vm9, %v2035_v27 }
 0x2b7   : > { %v2015_v28 = vpop.f32.mrf.mxu2 }
 0x2b8   : > { %v2036_v5 = vpack.c.bf16 %v2015_v28, %v2015_v28 }
 0x2ba   : > { %2053 = vst.msk [vmem:[%s2949_s29 + $0x34] sm:$0xf] %vm2039_vm9, %v2036_v5 }
 0x2bf   : > { %v2018_v29 = vpop.f32.mrf.mxu2 }
 0x2c0   : > { %v2037_v57 = vpack.c.bf16 %v2018_v29, %v2018_v29 }
 0x2c2   : > { %2054 = vst.msk [vmem:[%s2949_s29 + $0x38] sm:$0xf] %vm2039_vm9, %v2037_v57 }
 0x2c7   : > { %v2020_v59 = vpop.f32.mrf.mxu2 }
 0x2c8   : > { %v2038_v60 = vpack.c.bf16 %v2020_v59, %v2020_v59 }
 0x2ca   : > { %2055 = vst.msk [vmem:[%s2949_s29 + $0x3c] sm:$0xf] %vm2039_vm9, %v2038_v60 }
 0x2cb PF: > { %s28_s27 = sadd.s32 1, %s2503_s27  }
 0x2cc   : > { %p25_p4 = scmp.ge.s32.totalorder %s28_s27, 4  }
 0x2ce   :  { %27 = sbr.rel (!%p25_p4) target bundleno = 4 (0x4), region = 131 }

</bundles_post_ra>
